<compile_context>
chip_gen: v6e
topology: v6e:2x2x1
jax: 0.10.0
libtpu: 0.0.40
codegen_flags: <defaults>
</compile_context>

<pallas_src>
import functools

import jax
import jax.numpy as jnp
from jax import lax
from jax.experimental import pallas as pl
from jax.experimental.pallas import tpu as pltpu

_MiB = 1 << 20
_VMEM_TILE_BUDGET = 40 * _MiB   # conservative working-set budget across v5e/v6e/v7x


def _round_up(x, m):
    return (x + m - 1) // m * m


def _pick_tile(n, candidates, fits=lambda c: True):
    for c in candidates:
        if n % c == 0 and fits(c):
            return c
    return 1


def _vmem_limit(nbytes):
    # Needed bytes + headroom, clamped to v7x physical VMEM (64 MiB).
    return int(min(max(nbytes * 1.4 + 2 * _MiB, 8 * _MiB), 64 * _MiB))


# ----------------------------------------------------------------------------
# Kernel 1: fused LSTM layer.  Grid over time-blocks; per grid step one large
# input-projection matmul into VMEM scratch, then Tb serial recurrence steps
# (h_{t-1} @ W_hh in bf16 with f32 accumulation).  h/c carried in VMEM scratch.
# ----------------------------------------------------------------------------
def _lstm_layer_kernel(x_ref, wih_ref, whh_ref, b_ref, h0_ref, c0_ref,
                       out_ref, hT_ref, cT_ref,
                       gx_scr, h_scr, c_scr, *, unroll):
    tb = pl.program_id(0)

    @pl.when(tb == 0)
    def _():
        h_scr[...] = h0_ref[...]
        c_scr[...] = c0_ref[...]

    Tb, Bp, Inp = x_ref.shape
    Hp = h_scr.shape[1]

    # Hoisted (per time-block) input projection: one big MXU matmul, result stays in VMEM.
    x2d = x_ref[...].reshape(Tb * Bp, Inp)                                   # bf16
    gx_scr[...] = (jnp.dot(x2d, wih_ref[...],
                           preferred_element_type=jnp.float32) + b_ref[...])  # f32

    def step(s, carry):
        off = pl.multiple_of(s * Bp, Bp)
        # whh_ref is read inside the loop (not hoisted) so Mosaic schedules the VMEM
        # load per step instead of pinning the whole weight in vregs across the unroll.
        gates = gx_scr[pl.ds(off, Bp), :] + jnp.dot(
            h_scr[...].astype(whh_ref.dtype), whh_ref[...],
            preferred_element_type=jnp.float32)                              # (Bp, 4Hp)
        i = jax.nn.sigmoid(gates[:, 0 * Hp:1 * Hp])   # PyTorch gate order i,f,g,o
        f = jax.nn.sigmoid(gates[:, 1 * Hp:2 * Hp])
        g = jnp.tanh(gates[:, 2 * Hp:3 * Hp])
        o = jax.nn.sigmoid(gates[:, 3 * Hp:4 * Hp])
        c = f * c_scr[...] + i * g
        h = o * jnp.tanh(c)
        c_scr[...] = c
        h_scr[...] = h
        out_ref[s] = h.astype(out_ref.dtype)          # bf16 sequence output
        return carry

    lax.fori_loop(0, Tb, step, 0, unroll=unroll)

    @pl.when(tb == pl.num_programs(0) - 1)
    def _():
        hT_ref[...] = h_scr[...]
        cT_ref[...] = c_scr[...]


def lstm_layer(x, wih_t, whh_t, b, h0, c0):
    """x: (T, Bp, Inp) bf16; wih_t: (Inp, 4Hp) bf16; whh_t: (Hp, 4Hp) bf16;
       b: (1, 4Hp) f32; h0, c0: (Bp, Hp) f32.
       Returns out (T, Bp, Hp) bf16, hT, cT (Bp, Hp) f32."""
    T, Bp, Inp = x.shape
    Hp = h0.shape[-1]
    G = 4 * Hp

    weights_bytes = 2 * ((Inp * G + Hp * G) * 2 + G * 4)   # bf16 weights + f32 bias, x2 buffers
    state_bytes = 8 * Bp * Hp * 4                          # h0,c0,hT,cT blocks + h/c scratch

    def fits(tb):
        blk = 2 * (tb * Bp * Inp * 2) + 2 * (tb * Bp * Hp * 2)   # x / out blocks, double-buffered
        scr = tb * Bp * G * 4                                    # gx scratch
        return weights_bytes + state_bytes + blk + scr <= _VMEM_TILE_BUDGET

    Tb = _pick_tile(T, (16, 8, 4, 2, 1), fits)
    unroll = min(Tb, 8)                                          # bounded unroll; divides Tb
    need = (weights_bytes + state_bytes + 2 * (Tb * Bp * Inp * 2)
            + 2 * (Tb * Bp * Hp * 2) + Tb * Bp * G * 4)

    out, hT, cT = pl.pallas_call(
        functools.partial(_lstm_layer_kernel, unroll=unroll),
        out_shape=(
            jax.ShapeDtypeStruct((T, Bp, Hp), jnp.bfloat16),
            jax.ShapeDtypeStruct((Bp, Hp), jnp.float32),
            jax.ShapeDtypeStruct((Bp, Hp), jnp.float32),
        ),
        grid_spec=pltpu.PrefetchScalarGridSpec(
            num_scalar_prefetch=0,
            grid=(T // Tb,),
            in_specs=[
                pl.BlockSpec((Tb, Bp, Inp), lambda t: (t, 0, 0)),
                pl.BlockSpec((Inp, G), lambda t: (0, 0)),
                pl.BlockSpec((Hp, G), lambda t: (0, 0)),
                pl.BlockSpec((1, G), lambda t: (0, 0)),
                pl.BlockSpec((Bp, Hp), lambda t: (0, 0)),
                pl.BlockSpec((Bp, Hp), lambda t: (0, 0)),
            ],
            out_specs=[
                pl.BlockSpec((Tb, Bp, Hp), lambda t: (t, 0, 0)),
                pl.BlockSpec((Bp, Hp), lambda t: (0, 0)),
                pl.BlockSpec((Bp, Hp), lambda t: (0, 0)),
            ],
            scratch_shapes=[
                pltpu.VMEM((Tb * Bp, G), jnp.float32),    # gate inputs for the time block
                pltpu.VMEM((Bp, Hp), jnp.float32),        # h state
                pltpu.VMEM((Bp, Hp), jnp.float32),        # c state
            ],
        ),
        compiler_params=pltpu.CompilerParams(
            dimension_semantics=("arbitrary",),           # sequential recurrence; state in scratch
            vmem_limit_bytes=_vmem_limit(need)),
    )(x, wih_t, whh_t, b, h0, c0)
    return out, hT, cT


# ----------------------------------------------------------------------------
# Kernel 2: Linear(hidden -> vocab) logits + online logsumexp.
# Per (row-tile, vocab-tile) output block; lse written on the last vocab tile.
# VMEM footprint is O(tile_n * tile_v), independent of full vocab width.
# ----------------------------------------------------------------------------
def _logits_lse_kernel(x_ref, wt_ref, b_ref, logits_ref, lse_ref, m_scr, l_scr):
    v = pl.program_id(1)

    @pl.when(v == 0)
    def _():
        m_scr[...] = jnp.full_like(m_scr, -1e30)
        l_scr[...] = jnp.zeros_like(l_scr)

    logits = (jnp.dot(x_ref[...], wt_ref[...], preferred_element_type=jnp.float32)
              + b_ref[...])                                        # (tile_n, tile_v) f32
    logits_ref[...] = logits

    m_new = jnp.maximum(m_scr[...], jnp.max(logits, axis=-1, keepdims=True))
    l_scr[...] = (l_scr[...] * jnp.exp(m_scr[...] - m_new)
                  + jnp.sum(jnp.exp(logits - m_new), axis=-1, keepdims=True))
    m_scr[...] = m_new

    @pl.when(v == pl.num_programs(1) - 1)
    def _():
        lse_ref[...] = m_scr[...] + jnp.log(l_scr[...])


def linear_lse(x, wt, b):
    """x: (N, Hp) bf16; wt: (Hp, Vp) bf16; b: (1, Vp) f32.
       Returns (logits (N, Vp) f32, lse (N, 1) f32)."""
    N, Hp = x.shape
    Vp = wt.shape[1]

    def fits(tn, tv):
        return (2 * (tn * Hp * 2) + 2 * (Hp * tv * 2) + 2 * tv * 4
                + 2 * (tn * tv * 4) + 2 * tn * 4 + 2 * tn * 4) <= _VMEM_TILE_BUDGET

    tile_v = _pick_tile(Vp, (1024, 512, 256, 128), lambda tv: fits(128, tv))
    tile_n = _pick_tile(N, (512, 256, 128, 64, 32, 16, 8), lambda tn: fits(tn, tile_v))
    need = (2 * (tile_n * Hp * 2) + 2 * (Hp * tile_v * 2) + 2 * tile_v * 4
            + 2 * (tile_n * tile_v * 4) + 4 * tile_n * 4)

    return pl.pallas_call(
        _logits_lse_kernel,
        out_shape=(jax.ShapeDtypeStruct((N, Vp), jnp.float32),
                   jax.ShapeDtypeStruct((N, 1), jnp.float32)),
        grid_spec=pltpu.PrefetchScalarGridSpec(
            num_scalar_prefetch=0,
            grid=(N // tile_n, Vp // tile_v),
            in_specs=[
                pl.BlockSpec((tile_n, Hp), lambda n, v: (n, 0)),
                pl.BlockSpec((Hp, tile_v), lambda n, v: (0, v)),
                pl.BlockSpec((1, tile_v), lambda n, v: (0, v)),
            ],
            out_specs=[
                pl.BlockSpec((tile_n, tile_v), lambda n, v: (n, v)),
                pl.BlockSpec((tile_n, 1), lambda n, v: (n, 0)),
            ],
            scratch_shapes=[
                pltpu.VMEM((tile_n, 1), jnp.float32),   # running max
                pltpu.VMEM((tile_n, 1), jnp.float32),   # running sum
            ],
        ),
        compiler_params=pltpu.CompilerParams(
            dimension_semantics=("parallel", "arbitrary"),
            vmem_limit_bytes=_vmem_limit(need)),
    )(x, wt, b)


# ----------------------------------------------------------------------------
# One-time parameter preparation: transpose + zero-pad weights into kernel layout.
# H -> Hp, E -> Ep, V -> Vp (multiples of 128).  Padded hidden units get zero
# weights/bias so they stay exactly zero through the recurrence.
# ----------------------------------------------------------------------------
def _pad_gate_weight(w, H, Hp, In, Inp, dtype):
    # w: (4H, In) PyTorch i,f,g,o order -> (Inp, 4*Hp) transposed, zero-padded.
    w4 = w.reshape(4, H, In).astype(dtype)
    out = jnp.zeros((4, Hp, Inp), dtype).at[:, :H, :In].set(w4)
    return out.transpose(2, 0, 1).reshape(Inp, 4 * Hp)


def _pad_gate_bias(b_ih, b_hh, H, Hp):
    b = (b_ih + b_hh).reshape(4, H).astype(jnp.float32)
    return jnp.zeros((4, Hp), jnp.float32).at[:, :H].set(b).reshape(1, 4 * Hp)


def prepare_kernel_params(params, *, embed_size, hidden_size, vocab_size, num_layers):
    H, Hp = hidden_size, _round_up(hidden_size, 128)
    V, Vp = vocab_size, _round_up(vocab_size, 128)
    E, Ep = embed_size, _round_up(embed_size, 128)
    kp = {}
    # Embedding table padded + bf16 (only ever consumed as a bf16 MXU LHS).
    kp["embed"] = jnp.zeros((V, Ep), jnp.bfloat16).at[:, :E].set(
        params["embed"].astype(jnp.bfloat16))
    for l in range(num_layers):
        In, Inp = (E, Ep) if l == 0 else (H, Hp)
        kp[f"wih_t_l{l}"] = _pad_gate_weight(
            params[f"w_ih_l{l}"], H, Hp, In, Inp, jnp.bfloat16)
        kp[f"whh_t_l{l}"] = _pad_gate_weight(
            params[f"w_hh_l{l}"], H, Hp, H, Hp, jnp.bfloat16)     # bf16 recurrence weight
        kp[f"b_l{l}"] = _pad_gate_bias(
            params[f"b_ih_l{l}"], params[f"b_hh_l{l}"], H, Hp)
    kp["w1_t"] = jnp.zeros((Hp, Vp), jnp.bfloat16).at[:H, :V].set(
        params["w1"].T.astype(jnp.bfloat16))
    # Pad vocab tail with a huge negative bias so padded columns add no softmax mass.
    kp["b1"] = jnp.full((1, Vp), -1e30, jnp.float32).at[0, :V].set(
        params["b1"].astype(jnp.float32))
    return kp


# ----------------------------------------------------------------------------
# Full model forward.
# ----------------------------------------------------------------------------
@functools.partial(jax.jit, static_argnames=("num_layers", "hidden_size", "vocab_size"))
def lstm_lm_forward(kparams, x_ids, h0, c0, *, num_layers, hidden_size, vocab_size):
    B, T = x_ids.shape
    H, V = hidden_size, vocab_size
    Hp = kparams["whh_t_l0"].shape[0]
    Vp = kparams["w1_t"].shape[1]
    Bp = _round_up(B, 8)

    # Embedding gather directly into time-major bf16 layout (no activation transpose).
    emb = kparams["embed"][x_ids.T]                          # (T, B, Ep) bf16
    x = jnp.pad(emb, ((0, 0), (0, Bp - B), (0, 0)))          # (T, Bp, Ep) bf16

    # Zero-padded initial states (padded batch rows / hidden dims are zero).
    h0p = jnp.zeros((num_layers, Bp, Hp), jnp.float32).at[:, :B, :H].set(h0)
    c0p = jnp.zeros((num_layers, Bp, Hp), jnp.float32).at[:, :B, :H].set(c0)

    h_finals, c_finals = [], []
    for l in range(num_layers):
        x, hT, cT = lstm_layer(x, kparams[f"wih_t_l{l}"], kparams[f"whh_t_l{l}"],
                               kparams[f"b_l{l}"], h0p[l], c0p[l])   # (T, Bp, Hp) bf16
        h_finals.append(hT)
        c_finals.append(cT)

    # Vocab projection: logits + logsumexp from the streamed Pallas kernel; the final
    # normalization is a trivial fused XLA elementwise subtract.
    flat = x.reshape(T * Bp, Hp)                                     # bf16
    logits, lse = linear_lse(flat, kparams["w1_t"], kparams["b1"])   # f32
    out = (logits - lse).reshape(T, Bp, Vp)[:, :B, :V].transpose(1, 0, 2)   # (B, T, V)

    h_out = jnp.stack(h_finals, axis=0)[:, :B, :H]                   # (L, B, H)
    c_out = jnp.stack(c_finals, axis=0)[:, :B, :H]
    return out, (h_out, c_out)


# ----------------------------------------------------------------------------
# Deterministic parameter construction (PyTorch-style layouts, small sizes).
# ----------------------------------------------------------------------------
def make_params(key, vocab_size, embed_size, hidden_size, num_layers):
    keys = jax.random.split(key, 3 + 4 * num_layers)
    bound = 1.0 / jnp.sqrt(hidden_size)
    params = {
        "embed": jax.random.normal(keys[0], (vocab_size, embed_size), jnp.float32),
        "w1": jax.random.uniform(keys[1], (vocab_size, hidden_size), jnp.float32,
                                 -bound, bound),
        "b1": jax.random.uniform(keys[2], (vocab_size,), jnp.float32, -bound, bound),
    }
    k = 3
    for layer in range(num_layers):
        in_sz = embed_size if layer == 0 else hidden_size
        params[f"w_ih_l{layer}"] = jax.random.uniform(
            keys[k + 0], (4 * hidden_size, in_sz), jnp.float32, -bound, bound)
        params[f"w_hh_l{layer}"] = jax.random.uniform(
            keys[k + 1], (4 * hidden_size, hidden_size), jnp.float32, -bound, bound)
        params[f"b_ih_l{layer}"] = jax.random.uniform(
            keys[k + 2], (4 * hidden_size,), jnp.float32, -bound, bound)
        params[f"b_hh_l{layer}"] = jax.random.uniform(
            keys[k + 3], (4 * hidden_size,), jnp.float32, -bound, bound)
        k += 4
    return params


if __name__ == "__main__":
    VOCAB, EMBED, HIDDEN, NUM_LAYERS = 64, 16, 32, 2
    BATCH, SEQ = 2, 8

    key = jax.random.PRNGKey(0)
    kp, kx, kh, kc = jax.random.split(key, 4)

    params = make_params(kp, VOCAB, EMBED, HIDDEN, NUM_LAYERS)
    kparams = prepare_kernel_params(params, embed_size=EMBED, hidden_size=HIDDEN,
                                    vocab_size=VOCAB, num_layers=NUM_LAYERS)

    x_ids = jax.random.randint(kx, (BATCH, SEQ), 0, VOCAB, dtype=jnp.int32)
    h0 = jax.random.normal(kh, (NUM_LAYERS, BATCH, HIDDEN), jnp.float32)
    c0 = jax.random.normal(kc, (NUM_LAYERS, BATCH, HIDDEN), jnp.float32)

    out, (h, c) = lstm_lm_forward(kparams, x_ids, h0, c0, num_layers=NUM_LAYERS,
                                  hidden_size=HIDDEN, vocab_size=VOCAB)
    jax.block_until_ready((out, h, c))

    assert out.shape == (BATCH, SEQ, VOCAB)
    assert h.shape == (NUM_LAYERS, BATCH, HIDDEN)
    assert c.shape == (NUM_LAYERS, BATCH, HIDDEN)
    # log_softmax sanity: each row should (log-)sum to ~0.
    assert jnp.max(jnp.abs(jax.scipy.special.logsumexp(out, axis=2))) < 1e-4

    print("KERNEL_OK")
</pallas_src>

<mosaic_0001>
module attributes {stable_mosaic.version = 11 : i64} {
  func.func @_logits_lse_kernel(%arg0: i32, %arg1: i32, %arg2: memref<64x128xbf16, #tpu.memory_space<vmem>>, %arg3: memref<128x128xbf16, #tpu.memory_space<vmem>>, %arg4: memref<1x128xf32, #tpu.memory_space<vmem>>, %arg5: memref<64x128xf32, #tpu.memory_space<vmem>>, %arg6: memref<64x1xf32, #tpu.memory_space<vmem>>, %arg7: memref<64x1xf32, #tpu.memory_space<vmem>>, %arg8: memref<64x1xf32, #tpu.memory_space<vmem>>) attributes {dimension_semantics = [#tpu.dimension_semantics<parallel>, #tpu.dimension_semantics<arbitrary>], iteration_bounds = array<i64: 1, 1>, scalar_prefetch = 0 : i64, scratch_operands = 2 : i64, tpu.core_type = #tpu.core_type<tc>, window_params = [{transform_indices = @transform_0, window_bounds = array<i64: 64, 128>}, {transform_indices = @transform_1, window_bounds = array<i64: 128, 128>}, {transform_indices = @transform_2, window_bounds = array<i64: 1, 128>}, {transform_indices = @transform_3, window_bounds = array<i64: 64, 128>}, {transform_indices = @transform_4, window_bounds = array<i64: 64, 1>}]} {
    %c0_i32 = arith.constant 0 : i32
    %0 = arith.cmpi eq, %arg1, %c0_i32 : i32
    %1 = arith.extui %0 : i1 to i32
    %c0_i32_0 = arith.constant 0 : i32
    %2 = arith.cmpi ne, %1, %c0_i32_0 : i32
    scf.if %2 {
      %cst_22 = arith.constant -1.000000e+30 : f32
      %30 = vector.broadcast %cst_22 : f32 to vector<64x1xf32>
      %c0_23 = arith.constant 0 : index
      %c0_24 = arith.constant 0 : index
      %31 = vector.load %arg7[%c0_23, %c0_24] : memref<64x1xf32, #tpu.memory_space<vmem>>, vector<64x1xf32>
      tpu.vector_store %arg7[%c0_23, %c0_24], %30 {strides = array<i32>} : memref<64x1xf32, #tpu.memory_space<vmem>>, vector<64x1xf32>,
      %cst_25 = arith.constant 0.000000e+00 : f32
      %32 = vector.broadcast %cst_25 : f32 to vector<64x1xf32>
      %c0_26 = arith.constant 0 : index
      %c0_27 = arith.constant 0 : index
      %33 = vector.load %arg8[%c0_26, %c0_27] : memref<64x1xf32, #tpu.memory_space<vmem>>, vector<64x1xf32>
      tpu.vector_store %arg8[%c0_26, %c0_27], %32 {strides = array<i32>} : memref<64x1xf32, #tpu.memory_space<vmem>>, vector<64x1xf32>,
    } else {
    }
    %c0 = arith.constant 0 : index
    %c0_1 = arith.constant 0 : index
    %3 = vector.load %arg2[%c0, %c0_1] : memref<64x128xbf16, #tpu.memory_space<vmem>>, vector<64x128xbf16>
    %c0_2 = arith.constant 0 : index
    %c0_3 = arith.constant 0 : index
    %4 = vector.load %arg3[%c0_2, %c0_3] : memref<128x128xbf16, #tpu.memory_space<vmem>>, vector<128x128xbf16>
    %cst = arith.constant dense<0.000000e+00> : vector<64x128xf32>
    %5 = tpu.matmul %3, %4, %cst {dimension_numbers = #tpu.dot_dimension_numbers<[1], [0], [0], [1], [0, 0, 1, 1], [], []>} : vector<64x128xbf16>, vector<128x128xbf16>, vector<64x128xf32> -> vector<64x128xf32>
    %c0_4 = arith.constant 0 : index
    %c0_5 = arith.constant 0 : index
    %6 = vector.load %arg4[%c0_4, %c0_5] : memref<1x128xf32, #tpu.memory_space<vmem>>, vector<1x128xf32>
    %7 = vector.broadcast %6 : vector<1x128xf32> to vector<64x128xf32>
    %8 = arith.addf %5, %7 : vector<64x128xf32>
    %c0_6 = arith.constant 0 : index
    %c0_7 = arith.constant 0 : index
    %9 = vector.load %arg5[%c0_6, %c0_7] : memref<64x128xf32, #tpu.memory_space<vmem>>, vector<64x128xf32>
    tpu.vector_store %arg5[%c0_6, %c0_7], %8 {strides = array<i32>} : memref<64x128xf32, #tpu.memory_space<vmem>>, vector<64x128xf32>,
    %c0_8 = arith.constant 0 : index
    %c0_9 = arith.constant 0 : index
    %10 = vector.load %arg7[%c0_8, %c0_9] : memref<64x1xf32, #tpu.memory_space<vmem>>, vector<64x1xf32>
    %cst_10 = arith.constant dense<0xFF800000> : vector<64xf32>
    %11 = vector.multi_reduction <maximumf>, %8, %cst_10 [1] : vector<64x128xf32> to vector<64xf32>
    %12 = vector.shape_cast %11 : vector<64xf32> to vector<64x1xf32>
    %13 = arith.maximumf %10, %12 : vector<64x1xf32>
    %c0_11 = arith.constant 0 : index
    %c0_12 = arith.constant 0 : index
    %14 = vector.load %arg8[%c0_11, %c0_12] : memref<64x1xf32, #tpu.memory_space<vmem>>, vector<64x1xf32>
    %c0_13 = arith.constant 0 : index
    %c0_14 = arith.constant 0 : index
    %15 = vector.load %arg7[%c0_13, %c0_14] : memref<64x1xf32, #tpu.memory_space<vmem>>, vector<64x1xf32>
    %16 = arith.subf %15, %13 : vector<64x1xf32>
    %17 = math.exp %16 : vector<64x1xf32>
    %18 = arith.mulf %14, %17 : vector<64x1xf32>
    %19 = vector.broadcast %13 : vector<64x1xf32> to vector<64x128xf32>
    %20 = arith.subf %8, %19 : vector<64x128xf32>
    %21 = math.exp %20 : vector<64x128xf32>
    %cst_15 = arith.constant dense<0.000000e+00> : vector<64xf32>
    %22 = vector.multi_reduction <add>, %21, %cst_15 [1] : vector<64x128xf32> to vector<64xf32>
    %23 = vector.shape_cast %22 : vector<64xf32> to vector<64x1xf32>
    %24 = arith.addf %18, %23 : vector<64x1xf32>
    %c0_16 = arith.constant 0 : index
    %c0_17 = arith.constant 0 : index
    %25 = vector.load %arg8[%c0_16, %c0_17] : memref<64x1xf32, #tpu.memory_space<vmem>>, vector<64x1xf32>
    tpu.vector_store %arg8[%c0_16, %c0_17], %24 {strides = array<i32>} : memref<64x1xf32, #tpu.memory_space<vmem>>, vector<64x1xf32>,
    %c0_18 = arith.constant 0 : index
    %c0_19 = arith.constant 0 : index
    %26 = vector.load %arg7[%c0_18, %c0_19] : memref<64x1xf32, #tpu.memory_space<vmem>>, vector<64x1xf32>
    tpu.vector_store %arg7[%c0_18, %c0_19], %13 {strides = array<i32>} : memref<64x1xf32, #tpu.memory_space<vmem>>, vector<64x1xf32>,
    %c0_i32_20 = arith.constant 0 : i32
    %27 = arith.cmpi eq, %arg1, %c0_i32_20 : i32
    %28 = arith.extui %27 : i1 to i32
    %c0_i32_21 = arith.constant 0 : i32
    %29 = arith.cmpi ne, %28, %c0_i32_21 : i32
    scf.if %29 {
      %c0_22 = arith.constant 0 : index
      %c0_23 = arith.constant 0 : index
      %30 = vector.load %arg7[%c0_22, %c0_23] : memref<64x1xf32, #tpu.memory_space<vmem>>, vector<64x1xf32>
      %c0_24 = arith.constant 0 : index
      %c0_25 = arith.constant 0 : index
      %31 = vector.load %arg8[%c0_24, %c0_25] : memref<64x1xf32, #tpu.memory_space<vmem>>, vector<64x1xf32>
      %32 = math.log %31 : vector<64x1xf32>
      %33 = arith.addf %30, %32 : vector<64x1xf32>
      %c0_26 = arith.constant 0 : index
      %c0_27 = arith.constant 0 : index
      %34 = vector.load %arg6[%c0_26, %c0_27] : memref<64x1xf32, #tpu.memory_space<vmem>>, vector<64x1xf32>
      tpu.vector_store %arg6[%c0_26, %c0_27], %33 {strides = array<i32>} : memref<64x1xf32, #tpu.memory_space<vmem>>, vector<64x1xf32>,
    } else {
    }
    return
  }
  func.func @transform_0(%arg0: i32, %arg1: i32) -> (i32, i32) {
    %c0_i32 = arith.constant 0 : i32
    %c0_i32_0 = arith.constant 0 : i32
    return %arg0, %c0_i32 : i32, i32
  }
  func.func @transform_1(%arg0: i32, %arg1: i32) -> (i32, i32) {
    %c0_i32 = arith.constant 0 : i32
    %c0_i32_0 = arith.constant 0 : i32
    return %c0_i32, %arg1 : i32, i32
  }
  func.func @transform_2(%arg0: i32, %arg1: i32) -> (i32, i32) {
    %c0_i32 = arith.constant 0 : i32
    %c0_i32_0 = arith.constant 0 : i32
    return %c0_i32, %arg1 : i32, i32
  }
  func.func @transform_3(%arg0: i32, %arg1: i32) -> (i32, i32) {
    %c0_i32 = arith.constant 0 : i32
    return %arg0, %arg1 : i32, i32
  }
  func.func @transform_4(%arg0: i32, %arg1: i32) -> (i32, i32) {
    %c0_i32 = arith.constant 0 : i32
    %c0_i32_0 = arith.constant 0 : i32
    return %arg0, %c0_i32 : i32, i32
  }
}

module attributes {stable_mosaic.version = 11 : i64} {
  func.func @_lstm_layer_kernel(%arg0: i32, %arg1: memref<8x8x128xbf16, #tpu.memory_space<vmem>>, %arg2: memref<128x512xbf16, #tpu.memory_space<vmem>>, %arg3: memref<128x512xbf16, #tpu.memory_space<vmem>>, %arg4: memref<1x512xf32, #tpu.memory_space<vmem>>, %arg5: memref<8x128xf32, #tpu.memory_space<vmem>>, %arg6: memref<8x128xf32, #tpu.memory_space<vmem>>, %arg7: memref<8x8x128xbf16, #tpu.memory_space<vmem>>, %arg8: memref<8x128xf32, #tpu.memory_space<vmem>>, %arg9: memref<8x128xf32, #tpu.memory_space<vmem>>, %arg10: memref<64x512xf32, #tpu.memory_space<vmem>>, %arg11: memref<8x128xf32, #tpu.memory_space<vmem>>, %arg12: memref<8x128xf32, #tpu.memory_space<vmem>>) attributes {dimension_semantics = [#tpu.dimension_semantics<arbitrary>], iteration_bounds = array<i64: 1>, scalar_prefetch = 0 : i64, scratch_operands = 3 : i64, tpu.core_type = #tpu.core_type<tc>, window_params = [{transform_indices = @transform_0, window_bounds = array<i64: 8, 8, 128>}, {pipeline_mode = #tpu.pipeline_mode<synchronous>, transform_indices = @transform_1, window_bounds = array<i64: 128, 512>}, {pipeline_mode = #tpu.pipeline_mode<synchronous>, transform_indices = @transform_2, window_bounds = array<i64: 128, 512>}, {pipeline_mode = #tpu.pipeline_mode<synchronous>, transform_indices = @transform_3, window_bounds = array<i64: 1, 512>}, {pipeline_mode = #tpu.pipeline_mode<synchronous>, transform_indices = @transform_4, window_bounds = array<i64: 8, 128>}, {pipeline_mode = #tpu.pipeline_mode<synchronous>, transform_indices = @transform_5, window_bounds = array<i64: 8, 128>}, {transform_indices = @transform_6, window_bounds = array<i64: 8, 8, 128>}, {pipeline_mode = #tpu.pipeline_mode<synchronous>, transform_indices = @transform_7, window_bounds = array<i64: 8, 128>}, {pipeline_mode = #tpu.pipeline_mode<synchronous>, transform_indices = @transform_8, window_bounds = array<i64: 8, 128>}]} {
    %c0_i32 = arith.constant 0 : i32
    %0 = arith.cmpi eq, %arg0, %c0_i32 : i32
    %1 = arith.extui %0 : i1 to i32
    %c0_i32_0 = arith.constant 0 : i32
    %2 = arith.cmpi ne, %1, %c0_i32_0 : i32
    scf.if %2 {
      %c0_156 = arith.constant 0 : index
      %c0_157 = arith.constant 0 : index
      %350 = vector.load %arg5[%c0_156, %c0_157] : memref<8x128xf32, #tpu.memory_space<vmem>>, vector<8x128xf32>
      %c0_158 = arith.constant 0 : index
      %c0_159 = arith.constant 0 : index
      %351 = vector.load %arg11[%c0_158, %c0_159] : memref<8x128xf32, #tpu.memory_space<vmem>>, vector<8x128xf32>
      tpu.vector_store %arg11[%c0_158, %c0_159], %350 {strides = array<i32>} : memref<8x128xf32, #tpu.memory_space<vmem>>, vector<8x128xf32>,
      %c0_160 = arith.constant 0 : index
      %c0_161 = arith.constant 0 : index
      %352 = vector.load %arg6[%c0_160, %c0_161] : memref<8x128xf32, #tpu.memory_space<vmem>>, vector<8x128xf32>
      %c0_162 = arith.constant 0 : index
      %c0_163 = arith.constant 0 : index
      %353 = vector.load %arg12[%c0_162, %c0_163] : memref<8x128xf32, #tpu.memory_space<vmem>>, vector<8x128xf32>
      tpu.vector_store %arg12[%c0_162, %c0_163], %352 {strides = array<i32>} : memref<8x128xf32, #tpu.memory_space<vmem>>, vector<8x128xf32>,
    } else {
    }
    %c0 = arith.constant 0 : index
    %c0_1 = arith.constant 0 : index
    %c0_2 = arith.constant 0 : index
    %3 = vector.load %arg1[%c0, %c0_1, %c0_2] : memref<8x8x128xbf16, #tpu.memory_space<vmem>>, vector<8x8x128xbf16>
    %4 = vector.shape_cast %3 : vector<8x8x128xbf16> to vector<64x128xbf16>
    %c0_3 = arith.constant 0 : index
    %c0_4 = arith.constant 0 : index
    %5 = vector.load %arg2[%c0_3, %c0_4] : memref<128x512xbf16, #tpu.memory_space<vmem>>, vector<128x512xbf16>
    %cst = arith.constant dense<0.000000e+00> : vector<64x512xf32>
    %6 = tpu.matmul %4, %5, %cst {dimension_numbers = #tpu.dot_dimension_numbers<[1], [0], [0], [1], [0, 0, 1, 1], [], []>} : vector<64x128xbf16>, vector<128x512xbf16>, vector<64x512xf32> -> vector<64x512xf32>
    %c0_5 = arith.constant 0 : index
    %c0_6 = arith.constant 0 : index
    %7 = vector.load %arg4[%c0_5, %c0_6] : memref<1x512xf32, #tpu.memory_space<vmem>>, vector<1x512xf32>
    %8 = vector.broadcast %7 : vector<1x512xf32> to vector<64x512xf32>
    %9 = arith.addf %6, %8 : vector<64x512xf32>
    %c0_7 = arith.constant 0 : index
    %c0_8 = arith.constant 0 : index
    %10 = vector.load %arg10[%c0_7, %c0_8] : memref<64x512xf32, #tpu.memory_space<vmem>>, vector<64x512xf32>
    tpu.vector_store %arg10[%c0_7, %c0_8], %9 {strides = array<i32>} : memref<64x512xf32, #tpu.memory_space<vmem>>, vector<64x512xf32>,
    %c0_i32_9 = arith.constant 0 : i32
    %c8_i32 = arith.constant 8 : i32
    %11 = arith.muli %c0_i32_9, %c8_i32 : i32
    %12 = tpu.assume_multiple %11, 8 : i32
    %13 = arith.index_cast %12 : i32 to index
    %c0_10 = arith.constant 0 : index
    %14 = vector.load %arg10[%13, %c0_10] : memref<64x512xf32, #tpu.memory_space<vmem>>, vector<8x512xf32>
    %c0_11 = arith.constant 0 : index
    %c0_12 = arith.constant 0 : index
    %15 = vector.load %arg11[%c0_11, %c0_12] : memref<8x128xf32, #tpu.memory_space<vmem>>, vector<8x128xf32>
    %16 = arith.truncf %15 : vector<8x128xf32> to vector<8x128xbf16>
    %c0_13 = arith.constant 0 : index
    %c0_14 = arith.constant 0 : index
    %17 = vector.load %arg3[%c0_13, %c0_14] : memref<128x512xbf16, #tpu.memory_space<vmem>>, vector<128x512xbf16>
    %cst_15 = arith.constant dense<0.000000e+00> : vector<8x512xf32>
    %18 = tpu.matmul %16, %17, %cst_15 {dimension_numbers = #tpu.dot_dimension_numbers<[1], [0], [0], [1], [0, 0, 1, 1], [], []>} : vector<8x128xbf16>, vector<128x512xbf16>, vector<8x512xf32> -> vector<8x512xf32>
    %19 = arith.addf %14, %18 : vector<8x512xf32>
    %20 = vector.extract_strided_slice %19 {offsets = [0, 0], sizes = [8, 128], strides = [1, 1]} : vector<8x512xf32> to vector<8x128xf32>
    %21 = arith.negf %20 : vector<8x128xf32>
    %22 = math.exp %21 : vector<8x128xf32>
    %cst_16 = arith.constant 1.000000e+00 : f32
    %23 = vector.broadcast %cst_16 : f32 to vector<8x128xf32>
    %24 = arith.addf %23, %22 : vector<8x128xf32>
    %25 = arith.divf %23, %24 : vector<8x128xf32>
    %26 = vector.extract_strided_slice %19 {offsets = [0, 128], sizes = [8, 128], strides = [1, 1]} : vector<8x512xf32> to vector<8x128xf32>
    %27 = arith.negf %26 : vector<8x128xf32>
    %28 = math.exp %27 : vector<8x128xf32>
    %cst_17 = arith.constant 1.000000e+00 : f32
    %29 = vector.broadcast %cst_17 : f32 to vector<8x128xf32>
    %30 = arith.addf %29, %28 : vector<8x128xf32>
    %31 = arith.divf %29, %30 : vector<8x128xf32>
    %32 = vector.extract_strided_slice %19 {offsets = [0, 256], sizes = [8, 128], strides = [1, 1]} : vector<8x512xf32> to vector<8x128xf32>
    %33 = math.tanh %32 : vector<8x128xf32>
    %34 = vector.extract_strided_slice %19 {offsets = [0, 384], sizes = [8, 128], strides = [1, 1]} : vector<8x512xf32> to vector<8x128xf32>
    %35 = arith.negf %34 : vector<8x128xf32>
    %36 = math.exp %35 : vector<8x128xf32>
    %cst_18 = arith.constant 1.000000e+00 : f32
    %37 = vector.broadcast %cst_18 : f32 to vector<8x128xf32>
    %38 = arith.addf %37, %36 : vector<8x128xf32>
    %39 = arith.divf %37, %38 : vector<8x128xf32>
    %c0_19 = arith.constant 0 : index
    %c0_20 = arith.constant 0 : index
    %40 = vector.load %arg12[%c0_19, %c0_20] : memref<8x128xf32, #tpu.memory_space<vmem>>, vector<8x128xf32>
    %41 = arith.mulf %31, %40 : vector<8x128xf32>
    %42 = arith.mulf %25, %33 : vector<8x128xf32>
    %43 = arith.addf %41, %42 : vector<8x128xf32>
    %44 = math.tanh %43 : vector<8x128xf32>
    %45 = arith.mulf %39, %44 : vector<8x128xf32>
    %c0_21 = arith.constant 0 : index
    %c0_22 = arith.constant 0 : index
    %46 = vector.load %arg12[%c0_21, %c0_22] : memref<8x128xf32, #tpu.memory_space<vmem>>, vector<8x128xf32>
    tpu.vector_store %arg12[%c0_21, %c0_22], %43 {strides = array<i32>} : memref<8x128xf32, #tpu.memory_space<vmem>>, vector<8x128xf32>,
    %c0_23 = arith.constant 0 : index
    %c0_24 = arith.constant 0 : index
    %47 = vector.load %arg11[%c0_23, %c0_24] : memref<8x128xf32, #tpu.memory_space<vmem>>, vector<8x128xf32>
    tpu.vector_store %arg11[%c0_23, %c0_24], %45 {strides = array<i32>} : memref<8x128xf32, #tpu.memory_space<vmem>>, vector<8x128xf32>,
    %48 = arith.truncf %45 : vector<8x128xf32> to vector<8x128xbf16>
    %49 = arith.index_cast %c0_i32_9 : i32 to index
    %c0_25 = arith.constant 0 : index
    %c0_26 = arith.constant 0 : index
    %50 = vector.load %arg7[%49, %c0_25, %c0_26] : memref<8x8x128xbf16, #tpu.memory_space<vmem>>, vector<1x8x128xbf16>
    %51 = vector.shape_cast %50 : vector<1x8x128xbf16> to vector<8x128xbf16>
    %52 = vector.shape_cast %48 : vector<8x128xbf16> to vector<1x8x128xbf16>
    tpu.vector_store %arg7[%49, %c0_25, %c0_26], %52 {strides = array<i32>} : memref<8x8x128xbf16, #tpu.memory_space<vmem>>, vector<1x8x128xbf16>,
    %c1_i32 = arith.constant 1 : i32
    %c8_i32_27 = arith.constant 8 : i32
    %53 = arith.muli %c1_i32, %c8_i32_27 : i32
    %54 = tpu.assume_multiple %53, 8 : i32
    %55 = arith.index_cast %54 : i32 to index
    %c0_28 = arith.constant 0 : index
    %56 = vector.load %arg10[%55, %c0_28] : memref<64x512xf32, #tpu.memory_space<vmem>>, vector<8x512xf32>
    %c0_29 = arith.constant 0 : index
    %c0_30 = arith.constant 0 : index
    %57 = vector.load %arg11[%c0_29, %c0_30] : memref<8x128xf32, #tpu.memory_space<vmem>>, vector<8x128xf32>
    %58 = arith.truncf %57 : vector<8x128xf32> to vector<8x128xbf16>
    %c0_31 = arith.constant 0 : index
    %c0_32 = arith.constant 0 : index
    %59 = vector.load %arg3[%c0_31, %c0_32] : memref<128x512xbf16, #tpu.memory_space<vmem>>, vector<128x512xbf16>
    %cst_33 = arith.constant dense<0.000000e+00> : vector<8x512xf32>
    %60 = tpu.matmul %58, %59, %cst_33 {dimension_numbers = #tpu.dot_dimension_numbers<[1], [0], [0], [1], [0, 0, 1, 1], [], []>} : vector<8x128xbf16>, vector<128x512xbf16>, vector<8x512xf32> -> vector<8x512xf32>
    %61 = arith.addf %56, %60 : vector<8x512xf32>
    %62 = vector.extract_strided_slice %61 {offsets = [0, 0], sizes = [8, 128], strides = [1, 1]} : vector<8x512xf32> to vector<8x128xf32>
    %63 = arith.negf %62 : vector<8x128xf32>
    %64 = math.exp %63 : vector<8x128xf32>
    %cst_34 = arith.constant 1.000000e+00 : f32
    %65 = vector.broadcast %cst_34 : f32 to vector<8x128xf32>
    %66 = arith.addf %65, %64 : vector<8x128xf32>
    %67 = arith.divf %65, %66 : vector<8x128xf32>
    %68 = vector.extract_strided_slice %61 {offsets = [0, 128], sizes = [8, 128], strides = [1, 1]} : vector<8x512xf32> to vector<8x128xf32>
    %69 = arith.negf %68 : vector<8x128xf32>
    %70 = math.exp %69 : vector<8x128xf32>
    %cst_35 = arith.constant 1.000000e+00 : f32
    %71 = vector.broadcast %cst_35 : f32 to vector<8x128xf32>
    %72 = arith.addf %71, %70 : vector<8x128xf32>
    %73 = arith.divf %71, %72 : vector<8x128xf32>
    %74 = vector.extract_strided_slice %61 {offsets = [0, 256], sizes = [8, 128], strides = [1, 1]} : vector<8x512xf32> to vector<8x128xf32>
    %75 = math.tanh %74 : vector<8x128xf32>
    %76 = vector.extract_strided_slice %61 {offsets = [0, 384], sizes = [8, 128], strides = [1, 1]} : vector<8x512xf32> to vector<8x128xf32>
    %77 = arith.negf %76 : vector<8x128xf32>
    %78 = math.exp %77 : vector<8x128xf32>
    %cst_36 = arith.constant 1.000000e+00 : f32
    %79 = vector.broadcast %cst_36 : f32 to vector<8x128xf32>
    %80 = arith.addf %79, %78 : vector<8x128xf32>
    %81 = arith.divf %79, %80 : vector<8x128xf32>
    %c0_37 = arith.constant 0 : index
    %c0_38 = arith.constant 0 : index
    %82 = vector.load %arg12[%c0_37, %c0_38] : memref<8x128xf32, #tpu.memory_space<vmem>>, vector<8x128xf32>
    %83 = arith.mulf %73, %82 : vector<8x128xf32>
    %84 = arith.mulf %67, %75 : vector<8x128xf32>
    %85 = arith.addf %83, %84 : vector<8x128xf32>
    %86 = math.tanh %85 : vector<8x128xf32>
    %87 = arith.mulf %81, %86 : vector<8x128xf32>
    %c0_39 = arith.constant 0 : index
    %c0_40 = arith.constant 0 : index
    %88 = vector.load %arg12[%c0_39, %c0_40] : memref<8x128xf32, #tpu.memory_space<vmem>>, vector<8x128xf32>
    tpu.vector_store %arg12[%c0_39, %c0_40], %85 {strides = array<i32>} : memref<8x128xf32, #tpu.memory_space<vmem>>, vector<8x128xf32>,
    %c0_41 = arith.constant 0 : index
    %c0_42 = arith.constant 0 : index
    %89 = vector.load %arg11[%c0_41, %c0_42] : memref<8x128xf32, #tpu.memory_space<vmem>>, vector<8x128xf32>
    tpu.vector_store %arg11[%c0_41, %c0_42], %87 {strides = array<i32>} : memref<8x128xf32, #tpu.memory_space<vmem>>, vector<8x128xf32>,
    %90 = arith.truncf %87 : vector<8x128xf32> to vector<8x128xbf16>
    %91 = arith.index_cast %c1_i32 : i32 to index
    %c0_43 = arith.constant 0 : index
    %c0_44 = arith.constant 0 : index
    %92 = vector.load %arg7[%91, %c0_43, %c0_44] : memref<8x8x128xbf16, #tpu.memory_space<vmem>>, vector<1x8x128xbf16>
    %93 = vector.shape_cast %92 : vector<1x8x128xbf16> to vector<8x128xbf16>
    %94 = vector.shape_cast %90 : vector<8x128xbf16> to vector<1x8x128xbf16>
    tpu.vector_store %arg7[%91, %c0_43, %c0_44], %94 {strides = array<i32>} : memref<8x8x128xbf16, #tpu.memory_space<vmem>>, vector<1x8x128xbf16>,
    %c2_i32 = arith.constant 2 : i32
    %c8_i32_45 = arith.constant 8 : i32
    %95 = arith.muli %c2_i32, %c8_i32_45 : i32
    %96 = tpu.assume_multiple %95, 8 : i32
    %97 = arith.index_cast %96 : i32 to index
    %c0_46 = arith.constant 0 : index
    %98 = vector.load %arg10[%97, %c0_46] : memref<64x512xf32, #tpu.memory_space<vmem>>, vector<8x512xf32>
    %c0_47 = arith.constant 0 : index
    %c0_48 = arith.constant 0 : index
    %99 = vector.load %arg11[%c0_47, %c0_48] : memref<8x128xf32, #tpu.memory_space<vmem>>, vector<8x128xf32>
    %100 = arith.truncf %99 : vector<8x128xf32> to vector<8x128xbf16>
    %c0_49 = arith.constant 0 : index
    %c0_50 = arith.constant 0 : index
    %101 = vector.load %arg3[%c0_49, %c0_50] : memref<128x512xbf16, #tpu.memory_space<vmem>>, vector<128x512xbf16>
    %cst_51 = arith.constant dense<0.000000e+00> : vector<8x512xf32>
    %102 = tpu.matmul %100, %101, %cst_51 {dimension_numbers = #tpu.dot_dimension_numbers<[1], [0], [0], [1], [0, 0, 1, 1], [], []>} : vector<8x128xbf16>, vector<128x512xbf16>, vector<8x512xf32> -> vector<8x512xf32>
    %103 = arith.addf %98, %102 : vector<8x512xf32>
    %104 = vector.extract_strided_slice %103 {offsets = [0, 0], sizes = [8, 128], strides = [1, 1]} : vector<8x512xf32> to vector<8x128xf32>
    %105 = arith.negf %104 : vector<8x128xf32>
    %106 = math.exp %105 : vector<8x128xf32>
    %cst_52 = arith.constant 1.000000e+00 : f32
    %107 = vector.broadcast %cst_52 : f32 to vector<8x128xf32>
    %108 = arith.addf %107, %106 : vector<8x128xf32>
    %109 = arith.divf %107, %108 : vector<8x128xf32>
    %110 = vector.extract_strided_slice %103 {offsets = [0, 128], sizes = [8, 128], strides = [1, 1]} : vector<8x512xf32> to vector<8x128xf32>
    %111 = arith.negf %110 : vector<8x128xf32>
    %112 = math.exp %111 : vector<8x128xf32>
    %cst_53 = arith.constant 1.000000e+00 : f32
    %113 = vector.broadcast %cst_53 : f32 to vector<8x128xf32>
    %114 = arith.addf %113, %112 : vector<8x128xf32>
    %115 = arith.divf %113, %114 : vector<8x128xf32>
    %116 = vector.extract_strided_slice %103 {offsets = [0, 256], sizes = [8, 128], strides = [1, 1]} : vector<8x512xf32> to vector<8x128xf32>
    %117 = math.tanh %116 : vector<8x128xf32>
    %118 = vector.extract_strided_slice %103 {offsets = [0, 384], sizes = [8, 128], strides = [1, 1]} : vector<8x512xf32> to vector<8x128xf32>
    %119 = arith.negf %118 : vector<8x128xf32>
    %120 = math.exp %119 : vector<8x128xf32>
    %cst_54 = arith.constant 1.000000e+00 : f32
    %121 = vector.broadcast %cst_54 : f32 to vector<8x128xf32>
    %122 = arith.addf %121, %120 : vector<8x128xf32>
    %123 = arith.divf %121, %122 : vector<8x128xf32>
    %c0_55 = arith.constant 0 : index
    %c0_56 = arith.constant 0 : index
    %124 = vector.load %arg12[%c0_55, %c0_56] : memref<8x128xf32, #tpu.memory_space<vmem>>, vector<8x128xf32>
    %125 = arith.mulf %115, %124 : vector<8x128xf32>
    %126 = arith.mulf %109, %117 : vector<8x128xf32>
    %127 = arith.addf %125, %126 : vector<8x128xf32>
    %128 = math.tanh %127 : vector<8x128xf32>
    %129 = arith.mulf %123, %128 : vector<8x128xf32>
    %c0_57 = arith.constant 0 : index
    %c0_58 = arith.constant 0 : index
    %130 = vector.load %arg12[%c0_57, %c0_58] : memref<8x128xf32, #tpu.memory_space<vmem>>, vector<8x128xf32>
    tpu.vector_store %arg12[%c0_57, %c0_58], %127 {strides = array<i32>} : memref<8x128xf32, #tpu.memory_space<vmem>>, vector<8x128xf32>,
    %c0_59 = arith.constant 0 : index
    %c0_60 = arith.constant 0 : index
    %131 = vector.load %arg11[%c0_59, %c0_60] : memref<8x128xf32, #tpu.memory_space<vmem>>, vector<8x128xf32>
    tpu.vector_store %arg11[%c0_59, %c0_60], %129 {strides = array<i32>} : memref<8x128xf32, #tpu.memory_space<vmem>>, vector<8x128xf32>,
    %132 = arith.truncf %129 : vector<8x128xf32> to vector<8x128xbf16>
    %133 = arith.index_cast %c2_i32 : i32 to index
    %c0_61 = arith.constant 0 : index
    %c0_62 = arith.constant 0 : index
    %134 = vector.load %arg7[%133, %c0_61, %c0_62] : memref<8x8x128xbf16, #tpu.memory_space<vmem>>, vector<1x8x128xbf16>
    %135 = vector.shape_cast %134 : vector<1x8x128xbf16> to vector<8x128xbf16>
    %136 = vector.shape_cast %132 : vector<8x128xbf16> to vector<1x8x128xbf16>
    tpu.vector_store %arg7[%133, %c0_61, %c0_62], %136 {strides = array<i32>} : memref<8x8x128xbf16, #tpu.memory_space<vmem>>, vector<1x8x128xbf16>,
    %c3_i32 = arith.constant 3 : i32
    %c8_i32_63 = arith.constant 8 : i32
    %137 = arith.muli %c3_i32, %c8_i32_63 : i32
    %138 = tpu.assume_multiple %137, 8 : i32
    %139 = arith.index_cast %138 : i32 to index
    %c0_64 = arith.constant 0 : index
    %140 = vector.load %arg10[%139, %c0_64] : memref<64x512xf32, #tpu.memory_space<vmem>>, vector<8x512xf32>
    %c0_65 = arith.constant 0 : index
    %c0_66 = arith.constant 0 : index
    %141 = vector.load %arg11[%c0_65, %c0_66] : memref<8x128xf32, #tpu.memory_space<vmem>>, vector<8x128xf32>
    %142 = arith.truncf %141 : vector<8x128xf32> to vector<8x128xbf16>
    %c0_67 = arith.constant 0 : index
    %c0_68 = arith.constant 0 : index
    %143 = vector.load %arg3[%c0_67, %c0_68] : memref<128x512xbf16, #tpu.memory_space<vmem>>, vector<128x512xbf16>
    %cst_69 = arith.constant dense<0.000000e+00> : vector<8x512xf32>
    %144 = tpu.matmul %142, %143, %cst_69 {dimension_numbers = #tpu.dot_dimension_numbers<[1], [0], [0], [1], [0, 0, 1, 1], [], []>} : vector<8x128xbf16>, vector<128x512xbf16>, vector<8x512xf32> -> vector<8x512xf32>
    %145 = arith.addf %140, %144 : vector<8x512xf32>
    %146 = vector.extract_strided_slice %145 {offsets = [0, 0], sizes = [8, 128], strides = [1, 1]} : vector<8x512xf32> to vector<8x128xf32>
    %147 = arith.negf %146 : vector<8x128xf32>
    %148 = math.exp %147 : vector<8x128xf32>
    %cst_70 = arith.constant 1.000000e+00 : f32
    %149 = vector.broadcast %cst_70 : f32 to vector<8x128xf32>
    %150 = arith.addf %149, %148 : vector<8x128xf32>
    %151 = arith.divf %149, %150 : vector<8x128xf32>
    %152 = vector.extract_strided_slice %145 {offsets = [0, 128], sizes = [8, 128], strides = [1, 1]} : vector<8x512xf32> to vector<8x128xf32>
    %153 = arith.negf %152 : vector<8x128xf32>
    %154 = math.exp %153 : vector<8x128xf32>
    %cst_71 = arith.constant 1.000000e+00 : f32
    %155 = vector.broadcast %cst_71 : f32 to vector<8x128xf32>
    %156 = arith.addf %155, %154 : vector<8x128xf32>
    %157 = arith.divf %155, %156 : vector<8x128xf32>
    %158 = vector.extract_strided_slice %145 {offsets = [0, 256], sizes = [8, 128], strides = [1, 1]} : vector<8x512xf32> to vector<8x128xf32>
    %159 = math.tanh %158 : vector<8x128xf32>
    %160 = vector.extract_strided_slice %145 {offsets = [0, 384], sizes = [8, 128], strides = [1, 1]} : vector<8x512xf32> to vector<8x128xf32>
    %161 = arith.negf %160 : vector<8x128xf32>
    %162 = math.exp %161 : vector<8x128xf32>
    %cst_72 = arith.constant 1.000000e+00 : f32
    %163 = vector.broadcast %cst_72 : f32 to vector<8x128xf32>
    %164 = arith.addf %163, %162 : vector<8x128xf32>
    %165 = arith.divf %163, %164 : vector<8x128xf32>
    %c0_73 = arith.constant 0 : index
    %c0_74 = arith.constant 0 : index
    %166 = vector.load %arg12[%c0_73, %c0_74] : memref<8x128xf32, #tpu.memory_space<vmem>>, vector<8x128xf32>
    %167 = arith.mulf %157, %166 : vector<8x128xf32>
    %168 = arith.mulf %151, %159 : vector<8x128xf32>
    %169 = arith.addf %167, %168 : vector<8x128xf32>
    %170 = math.tanh %169 : vector<8x128xf32>
    %171 = arith.mulf %165, %170 : vector<8x128xf32>
    %c0_75 = arith.constant 0 : index
    %c0_76 = arith.constant 0 : index
    %172 = vector.load %arg12[%c0_75, %c0_76] : memref<8x128xf32, #tpu.memory_space<vmem>>, vector<8x128xf32>
    tpu.vector_store %arg12[%c0_75, %c0_76], %169 {strides = array<i32>} : memref<8x128xf32, #tpu.memory_space<vmem>>, vector<8x128xf32>,
    %c0_77 = arith.constant 0 : index
    %c0_78 = arith.constant 0 : index
    %173 = vector.load %arg11[%c0_77, %c0_78] : memref<8x128xf32, #tpu.memory_space<vmem>>, vector<8x128xf32>
    tpu.vector_store %arg11[%c0_77, %c0_78], %171 {strides = array<i32>} : memref<8x128xf32, #tpu.memory_space<vmem>>, vector<8x128xf32>,
    %174 = arith.truncf %171 : vector<8x128xf32> to vector<8x128xbf16>
    %175 = arith.index_cast %c3_i32 : i32 to index
    %c0_79 = arith.constant 0 : index
    %c0_80 = arith.constant 0 : index
    %176 = vector.load %arg7[%175, %c0_79, %c0_80] : memref<8x8x128xbf16, #tpu.memory_space<vmem>>, vector<1x8x128xbf16>
    %177 = vector.shape_cast %176 : vector<1x8x128xbf16> to vector<8x128xbf16>
    %178 = vector.shape_cast %174 : vector<8x128xbf16> to vector<1x8x128xbf16>
    tpu.vector_store %arg7[%175, %c0_79, %c0_80], %178 {strides = array<i32>} : memref<8x8x128xbf16, #tpu.memory_space<vmem>>, vector<1x8x128xbf16>,
    %c4_i32 = arith.constant 4 : i32
    %c8_i32_81 = arith.constant 8 : i32
    %179 = arith.muli %c4_i32, %c8_i32_81 : i32
    %180 = tpu.assume_multiple %179, 8 : i32
    %181 = arith.index_cast %180 : i32 to index
    %c0_82 = arith.constant 0 : index
    %182 = vector.load %arg10[%181, %c0_82] : memref<64x512xf32, #tpu.memory_space<vmem>>, vector<8x512xf32>
    %c0_83 = arith.constant 0 : index
    %c0_84 = arith.constant 0 : index
    %183 = vector.load %arg11[%c0_83, %c0_84] : memref<8x128xf32, #tpu.memory_space<vmem>>, vector<8x128xf32>
    %184 = arith.truncf %183 : vector<8x128xf32> to vector<8x128xbf16>
    %c0_85 = arith.constant 0 : index
    %c0_86 = arith.constant 0 : index
    %185 = vector.load %arg3[%c0_85, %c0_86] : memref<128x512xbf16, #tpu.memory_space<vmem>>, vector<128x512xbf16>
    %cst_87 = arith.constant dense<0.000000e+00> : vector<8x512xf32>
    %186 = tpu.matmul %184, %185, %cst_87 {dimension_numbers = #tpu.dot_dimension_numbers<[1], [0], [0], [1], [0, 0, 1, 1], [], []>} : vector<8x128xbf16>, vector<128x512xbf16>, vector<8x512xf32> -> vector<8x512xf32>
    %187 = arith.addf %182, %186 : vector<8x512xf32>
    %188 = vector.extract_strided_slice %187 {offsets = [0, 0], sizes = [8, 128], strides = [1, 1]} : vector<8x512xf32> to vector<8x128xf32>
    %189 = arith.negf %188 : vector<8x128xf32>
    %190 = math.exp %189 : vector<8x128xf32>
    %cst_88 = arith.constant 1.000000e+00 : f32
    %191 = vector.broadcast %cst_88 : f32 to vector<8x128xf32>
    %192 = arith.addf %191, %190 : vector<8x128xf32>
    %193 = arith.divf %191, %192 : vector<8x128xf32>
    %194 = vector.extract_strided_slice %187 {offsets = [0, 128], sizes = [8, 128], strides = [1, 1]} : vector<8x512xf32> to vector<8x128xf32>
    %195 = arith.negf %194 : vector<8x128xf32>
    %196 = math.exp %195 : vector<8x128xf32>
    %cst_89 = arith.constant 1.000000e+00 : f32
    %197 = vector.broadcast %cst_89 : f32 to vector<8x128xf32>
    %198 = arith.addf %197, %196 : vector<8x128xf32>
    %199 = arith.divf %197, %198 : vector<8x128xf32>
    %200 = vector.extract_strided_slice %187 {offsets = [0, 256], sizes = [8, 128], strides = [1, 1]} : vector<8x512xf32> to vector<8x128xf32>
    %201 = math.tanh %200 : vector<8x128xf32>
    %202 = vector.extract_strided_slice %187 {offsets = [0, 384], sizes = [8, 128], strides = [1, 1]} : vector<8x512xf32> to vector<8x128xf32>
    %203 = arith.negf %202 : vector<8x128xf32>
    %204 = math.exp %203 : vector<8x128xf32>
    %cst_90 = arith.constant 1.000000e+00 : f32
    %205 = vector.broadcast %cst_90 : f32 to vector<8x128xf32>
    %206 = arith.addf %205, %204 : vector<8x128xf32>
    %207 = arith.divf %205, %206 : vector<8x128xf32>
    %c0_91 = arith.constant 0 : index
    %c0_92 = arith.constant 0 : index
    %208 = vector.load %arg12[%c0_91, %c0_92] : memref<8x128xf32, #tpu.memory_space<vmem>>, vector<8x128xf32>
    %209 = arith.mulf %199, %208 : vector<8x128xf32>
    %210 = arith.mulf %193, %201 : vector<8x128xf32>
    %211 = arith.addf %209, %210 : vector<8x128xf32>
    %212 = math.tanh %211 : vector<8x128xf32>
    %213 = arith.mulf %207, %212 : vector<8x128xf32>
    %c0_93 = arith.constant 0 : index
    %c0_94 = arith.constant 0 : index
    %214 = vector.load %arg12[%c0_93, %c0_94] : memref<8x128xf32, #tpu.memory_space<vmem>>, vector<8x128xf32>
    tpu.vector_store %arg12[%c0_93, %c0_94], %211 {strides = array<i32>} : memref<8x128xf32, #tpu.memory_space<vmem>>, vector<8x128xf32>,
    %c0_95 = arith.constant 0 : index
    %c0_96 = arith.constant 0 : index
    %215 = vector.load %arg11[%c0_95, %c0_96] : memref<8x128xf32, #tpu.memory_space<vmem>>, vector<8x128xf32>
    tpu.vector_store %arg11[%c0_95, %c0_96], %213 {strides = array<i32>} : memref<8x128xf32, #tpu.memory_space<vmem>>, vector<8x128xf32>,
    %216 = arith.truncf %213 : vector<8x128xf32> to vector<8x128xbf16>
    %217 = arith.index_cast %c4_i32 : i32 to index
    %c0_97 = arith.constant 0 : index
    %c0_98 = arith.constant 0 : index
    %218 = vector.load %arg7[%217, %c0_97, %c0_98] : memref<8x8x128xbf16, #tpu.memory_space<vmem>>, vector<1x8x128xbf16>
    %219 = vector.shape_cast %218 : vector<1x8x128xbf16> to vector<8x128xbf16>
    %220 = vector.shape_cast %216 : vector<8x128xbf16> to vector<1x8x128xbf16>
    tpu.vector_store %arg7[%217, %c0_97, %c0_98], %220 {strides = array<i32>} : memref<8x8x128xbf16, #tpu.memory_space<vmem>>, vector<1x8x128xbf16>,
    %c5_i32 = arith.constant 5 : i32
    %c8_i32_99 = arith.constant 8 : i32
    %221 = arith.muli %c5_i32, %c8_i32_99 : i32
    %222 = tpu.assume_multiple %221, 8 : i32
    %223 = arith.index_cast %222 : i32 to index
    %c0_100 = arith.constant 0 : index
    %224 = vector.load %arg10[%223, %c0_100] : memref<64x512xf32, #tpu.memory_space<vmem>>, vector<8x512xf32>
    %c0_101 = arith.constant 0 : index
    %c0_102 = arith.constant 0 : index
    %225 = vector.load %arg11[%c0_101, %c0_102] : memref<8x128xf32, #tpu.memory_space<vmem>>, vector<8x128xf32>
    %226 = arith.truncf %225 : vector<8x128xf32> to vector<8x128xbf16>
    %c0_103 = arith.constant 0 : index
    %c0_104 = arith.constant 0 : index
    %227 = vector.load %arg3[%c0_103, %c0_104] : memref<128x512xbf16, #tpu.memory_space<vmem>>, vector<128x512xbf16>
    %cst_105 = arith.constant dense<0.000000e+00> : vector<8x512xf32>
    %228 = tpu.matmul %226, %227, %cst_105 {dimension_numbers = #tpu.dot_dimension_numbers<[1], [0], [0], [1], [0, 0, 1, 1], [], []>} : vector<8x128xbf16>, vector<128x512xbf16>, vector<8x512xf32> -> vector<8x512xf32>
    %229 = arith.addf %224, %228 : vector<8x512xf32>
    %230 = vector.extract_strided_slice %229 {offsets = [0, 0], sizes = [8, 128], strides = [1, 1]} : vector<8x512xf32> to vector<8x128xf32>
    %231 = arith.negf %230 : vector<8x128xf32>
    %232 = math.exp %231 : vector<8x128xf32>
    %cst_106 = arith.constant 1.000000e+00 : f32
    %233 = vector.broadcast %cst_106 : f32 to vector<8x128xf32>
    %234 = arith.addf %233, %232 : vector<8x128xf32>
    %235 = arith.divf %233, %234 : vector<8x128xf32>
    %236 = vector.extract_strided_slice %229 {offsets = [0, 128], sizes = [8, 128], strides = [1, 1]} : vector<8x512xf32> to vector<8x128xf32>
    %237 = arith.negf %236 : vector<8x128xf32>
    %238 = math.exp %237 : vector<8x128xf32>
    %cst_107 = arith.constant 1.000000e+00 : f32
    %239 = vector.broadcast %cst_107 : f32 to vector<8x128xf32>
    %240 = arith.addf %239, %238 : vector<8x128xf32>
    %241 = arith.divf %239, %240 : vector<8x128xf32>
    %242 = vector.extract_strided_slice %229 {offsets = [0, 256], sizes = [8, 128], strides = [1, 1]} : vector<8x512xf32> to vector<8x128xf32>
    %243 = math.tanh %242 : vector<8x128xf32>
    %244 = vector.extract_strided_slice %229 {offsets = [0, 384], sizes = [8, 128], strides = [1, 1]} : vector<8x512xf32> to vector<8x128xf32>
    %245 = arith.negf %244 : vector<8x128xf32>
    %246 = math.exp %245 : vector<8x128xf32>
    %cst_108 = arith.constant 1.000000e+00 : f32
    %247 = vector.broadcast %cst_108 : f32 to vector<8x128xf32>
    %248 = arith.addf %247, %246 : vector<8x128xf32>
    %249 = arith.divf %247, %248 : vector<8x128xf32>
    %c0_109 = arith.constant 0 : index
    %c0_110 = arith.constant 0 : index
    %250 = vector.load %arg12[%c0_109, %c0_110] : memref<8x128xf32, #tpu.memory_space<vmem>>, vector<8x128xf32>
    %251 = arith.mulf %241, %250 : vector<8x128xf32>
    %252 = arith.mulf %235, %243 : vector<8x128xf32>
    %253 = arith.addf %251, %252 : vector<8x128xf32>
    %254 = math.tanh %253 : vector<8x128xf32>
    %255 = arith.mulf %249, %254 : vector<8x128xf32>
    %c0_111 = arith.constant 0 : index
    %c0_112 = arith.constant 0 : index
    %256 = vector.load %arg12[%c0_111, %c0_112] : memref<8x128xf32, #tpu.memory_space<vmem>>, vector<8x128xf32>
    tpu.vector_store %arg12[%c0_111, %c0_112], %253 {strides = array<i32>} : memref<8x128xf32, #tpu.memory_space<vmem>>, vector<8x128xf32>,
    %c0_113 = arith.constant 0 : index
    %c0_114 = arith.constant 0 : index
    %257 = vector.load %arg11[%c0_113, %c0_114] : memref<8x128xf32, #tpu.memory_space<vmem>>, vector<8x128xf32>
    tpu.vector_store %arg11[%c0_113, %c0_114], %255 {strides = array<i32>} : memref<8x128xf32, #tpu.memory_space<vmem>>, vector<8x128xf32>,
    %258 = arith.truncf %255 : vector<8x128xf32> to vector<8x128xbf16>
    %259 = arith.index_cast %c5_i32 : i32 to index
    %c0_115 = arith.constant 0 : index
    %c0_116 = arith.constant 0 : index
    %260 = vector.load %arg7[%259, %c0_115, %c0_116] : memref<8x8x128xbf16, #tpu.memory_space<vmem>>, vector<1x8x128xbf16>
    %261 = vector.shape_cast %260 : vector<1x8x128xbf16> to vector<8x128xbf16>
    %262 = vector.shape_cast %258 : vector<8x128xbf16> to vector<1x8x128xbf16>
    tpu.vector_store %arg7[%259, %c0_115, %c0_116], %262 {strides = array<i32>} : memref<8x8x128xbf16, #tpu.memory_space<vmem>>, vector<1x8x128xbf16>,
    %c6_i32 = arith.constant 6 : i32
    %c8_i32_117 = arith.constant 8 : i32
    %263 = arith.muli %c6_i32, %c8_i32_117 : i32
    %264 = tpu.assume_multiple %263, 8 : i32
    %265 = arith.index_cast %264 : i32 to index
    %c0_118 = arith.constant 0 : index
    %266 = vector.load %arg10[%265, %c0_118] : memref<64x512xf32, #tpu.memory_space<vmem>>, vector<8x512xf32>
    %c0_119 = arith.constant 0 : index
    %c0_120 = arith.constant 0 : index
    %267 = vector.load %arg11[%c0_119, %c0_120] : memref<8x128xf32, #tpu.memory_space<vmem>>, vector<8x128xf32>
    %268 = arith.truncf %267 : vector<8x128xf32> to vector<8x128xbf16>
    %c0_121 = arith.constant 0 : index
    %c0_122 = arith.constant 0 : index
    %269 = vector.load %arg3[%c0_121, %c0_122] : memref<128x512xbf16, #tpu.memory_space<vmem>>, vector<128x512xbf16>
    %cst_123 = arith.constant dense<0.000000e+00> : vector<8x512xf32>
    %270 = tpu.matmul %268, %269, %cst_123 {dimension_numbers = #tpu.dot_dimension_numbers<[1], [0], [0], [1], [0, 0, 1, 1], [], []>} : vector<8x128xbf16>, vector<128x512xbf16>, vector<8x512xf32> -> vector<8x512xf32>
    %271 = arith.addf %266, %270 : vector<8x512xf32>
    %272 = vector.extract_strided_slice %271 {offsets = [0, 0], sizes = [8, 128], strides = [1, 1]} : vector<8x512xf32> to vector<8x128xf32>
    %273 = arith.negf %272 : vector<8x128xf32>
    %274 = math.exp %273 : vector<8x128xf32>
    %cst_124 = arith.constant 1.000000e+00 : f32
    %275 = vector.broadcast %cst_124 : f32 to vector<8x128xf32>
    %276 = arith.addf %275, %274 : vector<8x128xf32>
    %277 = arith.divf %275, %276 : vector<8x128xf32>
    %278 = vector.extract_strided_slice %271 {offsets = [0, 128], sizes = [8, 128], strides = [1, 1]} : vector<8x512xf32> to vector<8x128xf32>
    %279 = arith.negf %278 : vector<8x128xf32>
    %280 = math.exp %279 : vector<8x128xf32>
    %cst_125 = arith.constant 1.000000e+00 : f32
    %281 = vector.broadcast %cst_125 : f32 to vector<8x128xf32>
    %282 = arith.addf %281, %280 : vector<8x128xf32>
    %283 = arith.divf %281, %282 : vector<8x128xf32>
    %284 = vector.extract_strided_slice %271 {offsets = [0, 256], sizes = [8, 128], strides = [1, 1]} : vector<8x512xf32> to vector<8x128xf32>
    %285 = math.tanh %284 : vector<8x128xf32>
    %286 = vector.extract_strided_slice %271 {offsets = [0, 384], sizes = [8, 128], strides = [1, 1]} : vector<8x512xf32> to vector<8x128xf32>
    %287 = arith.negf %286 : vector<8x128xf32>
    %288 = math.exp %287 : vector<8x128xf32>
    %cst_126 = arith.constant 1.000000e+00 : f32
    %289 = vector.broadcast %cst_126 : f32 to vector<8x128xf32>
    %290 = arith.addf %289, %288 : vector<8x128xf32>
    %291 = arith.divf %289, %290 : vector<8x128xf32>
    %c0_127 = arith.constant 0 : index
    %c0_128 = arith.constant 0 : index
    %292 = vector.load %arg12[%c0_127, %c0_128] : memref<8x128xf32, #tpu.memory_space<vmem>>, vector<8x128xf32>
    %293 = arith.mulf %283, %292 : vector<8x128xf32>
    %294 = arith.mulf %277, %285 : vector<8x128xf32>
    %295 = arith.addf %293, %294 : vector<8x128xf32>
    %296 = math.tanh %295 : vector<8x128xf32>
    %297 = arith.mulf %291, %296 : vector<8x128xf32>
    %c0_129 = arith.constant 0 : index
    %c0_130 = arith.constant 0 : index
    %298 = vector.load %arg12[%c0_129, %c0_130] : memref<8x128xf32, #tpu.memory_space<vmem>>, vector<8x128xf32>
    tpu.vector_store %arg12[%c0_129, %c0_130], %295 {strides = array<i32>} : memref<8x128xf32, #tpu.memory_space<vmem>>, vector<8x128xf32>,
    %c0_131 = arith.constant 0 : index
    %c0_132 = arith.constant 0 : index
    %299 = vector.load %arg11[%c0_131, %c0_132] : memref<8x128xf32, #tpu.memory_space<vmem>>, vector<8x128xf32>
    tpu.vector_store %arg11[%c0_131, %c0_132], %297 {strides = array<i32>} : memref<8x128xf32, #tpu.memory_space<vmem>>, vector<8x128xf32>,
    %300 = arith.truncf %297 : vector<8x128xf32> to vector<8x128xbf16>
    %301 = arith.index_cast %c6_i32 : i32 to index
    %c0_133 = arith.constant 0 : index
    %c0_134 = arith.constant 0 : index
    %302 = vector.load %arg7[%301, %c0_133, %c0_134] : memref<8x8x128xbf16, #tpu.memory_space<vmem>>, vector<1x8x128xbf16>
    %303 = vector.shape_cast %302 : vector<1x8x128xbf16> to vector<8x128xbf16>
    %304 = vector.shape_cast %300 : vector<8x128xbf16> to vector<1x8x128xbf16>
    tpu.vector_store %arg7[%301, %c0_133, %c0_134], %304 {strides = array<i32>} : memref<8x8x128xbf16, #tpu.memory_space<vmem>>, vector<1x8x128xbf16>,
    %c7_i32 = arith.constant 7 : i32
    %c8_i32_135 = arith.constant 8 : i32
    %305 = arith.muli %c7_i32, %c8_i32_135 : i32
    %306 = tpu.assume_multiple %305, 8 : i32
    %307 = arith.index_cast %306 : i32 to index
    %c0_136 = arith.constant 0 : index
    %308 = vector.load %arg10[%307, %c0_136] : memref<64x512xf32, #tpu.memory_space<vmem>>, vector<8x512xf32>
    %c0_137 = arith.constant 0 : index
    %c0_138 = arith.constant 0 : index
    %309 = vector.load %arg11[%c0_137, %c0_138] : memref<8x128xf32, #tpu.memory_space<vmem>>, vector<8x128xf32>
    %310 = arith.truncf %309 : vector<8x128xf32> to vector<8x128xbf16>
    %c0_139 = arith.constant 0 : index
    %c0_140 = arith.constant 0 : index
    %311 = vector.load %arg3[%c0_139, %c0_140] : memref<128x512xbf16, #tpu.memory_space<vmem>>, vector<128x512xbf16>
    %cst_141 = arith.constant dense<0.000000e+00> : vector<8x512xf32>
    %312 = tpu.matmul %310, %311, %cst_141 {dimension_numbers = #tpu.dot_dimension_numbers<[1], [0], [0], [1], [0, 0, 1, 1], [], []>} : vector<8x128xbf16>, vector<128x512xbf16>, vector<8x512xf32> -> vector<8x512xf32>
    %313 = arith.addf %308, %312 : vector<8x512xf32>
    %314 = vector.extract_strided_slice %313 {offsets = [0, 0], sizes = [8, 128], strides = [1, 1]} : vector<8x512xf32> to vector<8x128xf32>
    %315 = arith.negf %314 : vector<8x128xf32>
    %316 = math.exp %315 : vector<8x128xf32>
    %cst_142 = arith.constant 1.000000e+00 : f32
    %317 = vector.broadcast %cst_142 : f32 to vector<8x128xf32>
    %318 = arith.addf %317, %316 : vector<8x128xf32>
    %319 = arith.divf %317, %318 : vector<8x128xf32>
    %320 = vector.extract_strided_slice %313 {offsets = [0, 128], sizes = [8, 128], strides = [1, 1]} : vector<8x512xf32> to vector<8x128xf32>
    %321 = arith.negf %320 : vector<8x128xf32>
    %322 = math.exp %321 : vector<8x128xf32>
    %cst_143 = arith.constant 1.000000e+00 : f32
    %323 = vector.broadcast %cst_143 : f32 to vector<8x128xf32>
    %324 = arith.addf %323, %322 : vector<8x128xf32>
    %325 = arith.divf %323, %324 : vector<8x128xf32>
    %326 = vector.extract_strided_slice %313 {offsets = [0, 256], sizes = [8, 128], strides = [1, 1]} : vector<8x512xf32> to vector<8x128xf32>
    %327 = math.tanh %326 : vector<8x128xf32>
    %328 = vector.extract_strided_slice %313 {offsets = [0, 384], sizes = [8, 128], strides = [1, 1]} : vector<8x512xf32> to vector<8x128xf32>
    %329 = arith.negf %328 : vector<8x128xf32>
    %330 = math.exp %329 : vector<8x128xf32>
    %cst_144 = arith.constant 1.000000e+00 : f32
    %331 = vector.broadcast %cst_144 : f32 to vector<8x128xf32>
    %332 = arith.addf %331, %330 : vector<8x128xf32>
    %333 = arith.divf %331, %332 : vector<8x128xf32>
    %c0_145 = arith.constant 0 : index
    %c0_146 = arith.constant 0 : index
    %334 = vector.load %arg12[%c0_145, %c0_146] : memref<8x128xf32, #tpu.memory_space<vmem>>, vector<8x128xf32>
    %335 = arith.mulf %325, %334 : vector<8x128xf32>
    %336 = arith.mulf %319, %327 : vector<8x128xf32>
    %337 = arith.addf %335, %336 : vector<8x128xf32>
    %338 = math.tanh %337 : vector<8x128xf32>
    %339 = arith.mulf %333, %338 : vector<8x128xf32>
    %c0_147 = arith.constant 0 : index
    %c0_148 = arith.constant 0 : index
    %340 = vector.load %arg12[%c0_147, %c0_148] : memref<8x128xf32, #tpu.memory_space<vmem>>, vector<8x128xf32>
    tpu.vector_store %arg12[%c0_147, %c0_148], %337 {strides = array<i32>} : memref<8x128xf32, #tpu.memory_space<vmem>>, vector<8x128xf32>,
    %c0_149 = arith.constant 0 : index
    %c0_150 = arith.constant 0 : index
    %341 = vector.load %arg11[%c0_149, %c0_150] : memref<8x128xf32, #tpu.memory_space<vmem>>, vector<8x128xf32>
    tpu.vector_store %arg11[%c0_149, %c0_150], %339 {strides = array<i32>} : memref<8x128xf32, #tpu.memory_space<vmem>>, vector<8x128xf32>,
    %342 = arith.truncf %339 : vector<8x128xf32> to vector<8x128xbf16>
    %343 = arith.index_cast %c7_i32 : i32 to index
    %c0_151 = arith.constant 0 : index
    %c0_152 = arith.constant 0 : index
    %344 = vector.load %arg7[%343, %c0_151, %c0_152] : memref<8x8x128xbf16, #tpu.memory_space<vmem>>, vector<1x8x128xbf16>
    %345 = vector.shape_cast %344 : vector<1x8x128xbf16> to vector<8x128xbf16>
    %346 = vector.shape_cast %342 : vector<8x128xbf16> to vector<1x8x128xbf16>
    tpu.vector_store %arg7[%343, %c0_151, %c0_152], %346 {strides = array<i32>} : memref<8x8x128xbf16, #tpu.memory_space<vmem>>, vector<1x8x128xbf16>,
    %c8_i32_153 = arith.constant 8 : i32
    %c0_i32_154 = arith.constant 0 : i32
    %347 = arith.cmpi eq, %arg0, %c0_i32_154 : i32
    %348 = arith.extui %347 : i1 to i32
    %c0_i32_155 = arith.constant 0 : i32
    %349 = arith.cmpi ne, %348, %c0_i32_155 : i32
    scf.if %349 {
      %c0_156 = arith.constant 0 : index
      %c0_157 = arith.constant 0 : index
      %350 = vector.load %arg11[%c0_156, %c0_157] : memref<8x128xf32, #tpu.memory_space<vmem>>, vector<8x128xf32>
      %c0_158 = arith.constant 0 : index
      %c0_159 = arith.constant 0 : index
      %351 = vector.load %arg8[%c0_158, %c0_159] : memref<8x128xf32, #tpu.memory_space<vmem>>, vector<8x128xf32>
      tpu.vector_store %arg8[%c0_158, %c0_159], %350 {strides = array<i32>} : memref<8x128xf32, #tpu.memory_space<vmem>>, vector<8x128xf32>,
      %c0_160 = arith.constant 0 : index
      %c0_161 = arith.constant 0 : index
      %352 = vector.load %arg12[%c0_160, %c0_161] : memref<8x128xf32, #tpu.memory_space<vmem>>, vector<8x128xf32>
      %c0_162 = arith.constant 0 : index
      %c0_163 = arith.constant 0 : index
      %353 = vector.load %arg9[%c0_162, %c0_163] : memref<8x128xf32, #tpu.memory_space<vmem>>, vector<8x128xf32>
      tpu.vector_store %arg9[%c0_162, %c0_163], %352 {strides = array<i32>} : memref<8x128xf32, #tpu.memory_space<vmem>>, vector<8x128xf32>,
    } else {
    }
    return
  }
  func.func @transform_0(%arg0: i32) -> (i32, i32, i32) {
    %c0_i32 = arith.constant 0 : i32
    %c0_i32_0 = arith.constant 0 : i32
    %c0_i32_1 = arith.constant 0 : i32
    return %arg0, %c0_i32, %c0_i32_0 : i32, i32, i32
  }
  func.func @transform_1(%arg0: i32) -> (i32, i32) {
    %c0_i32 = arith.constant 0 : i32
    %c0_i32_0 = arith.constant 0 : i32
    %c0_i32_1 = arith.constant 0 : i32
    return %c0_i32, %c0_i32_0 : i32, i32
  }
  func.func @transform_2(%arg0: i32) -> (i32, i32) {
    %c0_i32 = arith.constant 0 : i32
    %c0_i32_0 = arith.constant 0 : i32
    %c0_i32_1 = arith.constant 0 : i32
    return %c0_i32, %c0_i32_0 : i32, i32
  }
  func.func @transform_3(%arg0: i32) -> (i32, i32) {
    %c0_i32 = arith.constant 0 : i32
    %c0_i32_0 = arith.constant 0 : i32
    %c0_i32_1 = arith.constant 0 : i32
    return %c0_i32, %c0_i32_0 : i32, i32
  }
  func.func @transform_4(%arg0: i32) -> (i32, i32) {
    %c0_i32 = arith.constant 0 : i32
    %c0_i32_0 = arith.constant 0 : i32
    %c0_i32_1 = arith.constant 0 : i32
    return %c0_i32, %c0_i32_0 : i32, i32
  }
  func.func @transform_5(%arg0: i32) -> (i32, i32) {
    %c0_i32 = arith.constant 0 : i32
    %c0_i32_0 = arith.constant 0 : i32
    %c0_i32_1 = arith.constant 0 : i32
    return %c0_i32, %c0_i32_0 : i32, i32
  }
  func.func @transform_6(%arg0: i32) -> (i32, i32, i32) {
    %c0_i32 = arith.constant 0 : i32
    %c0_i32_0 = arith.constant 0 : i32
    %c0_i32_1 = arith.constant 0 : i32
    return %arg0, %c0_i32, %c0_i32_0 : i32, i32, i32
  }
  func.func @transform_7(%arg0: i32) -> (i32, i32) {
    %c0_i32 = arith.constant 0 : i32
    %c0_i32_0 = arith.constant 0 : i32
    %c0_i32_1 = arith.constant 0 : i32
    return %c0_i32, %c0_i32_0 : i32, i32
  }
  func.func @transform_8(%arg0: i32) -> (i32, i32) {
    %c0_i32 = arith.constant 0 : i32
    %c0_i32_0 = arith.constant 0 : i32
    %c0_i32_1 = arith.constant 0 : i32
    return %c0_i32, %c0_i32_0 : i32, i32
  }
}

module attributes {stable_mosaic.version = 11 : i64} {
  func.func @_lstm_layer_kernel(%arg0: i32, %arg1: memref<8x8x128xbf16, #tpu.memory_space<vmem>>, %arg2: memref<128x512xbf16, #tpu.memory_space<vmem>>, %arg3: memref<128x512xbf16, #tpu.memory_space<vmem>>, %arg4: memref<1x512xf32, #tpu.memory_space<vmem>>, %arg5: memref<8x128xf32, #tpu.memory_space<vmem>>, %arg6: memref<8x128xf32, #tpu.memory_space<vmem>>, %arg7: memref<8x8x128xbf16, #tpu.memory_space<vmem>>, %arg8: memref<8x128xf32, #tpu.memory_space<vmem>>, %arg9: memref<8x128xf32, #tpu.memory_space<vmem>>, %arg10: memref<64x512xf32, #tpu.memory_space<vmem>>, %arg11: memref<8x128xf32, #tpu.memory_space<vmem>>, %arg12: memref<8x128xf32, #tpu.memory_space<vmem>>) attributes {dimension_semantics = [#tpu.dimension_semantics<arbitrary>], iteration_bounds = array<i64: 1>, scalar_prefetch = 0 : i64, scratch_operands = 3 : i64, tpu.core_type = #tpu.core_type<tc>, window_params = [{transform_indices = @transform_0, window_bounds = array<i64: 8, 8, 128>}, {pipeline_mode = #tpu.pipeline_mode<synchronous>, transform_indices = @transform_1, window_bounds = array<i64: 128, 512>}, {pipeline_mode = #tpu.pipeline_mode<synchronous>, transform_indices = @transform_2, window_bounds = array<i64: 128, 512>}, {pipeline_mode = #tpu.pipeline_mode<synchronous>, transform_indices = @transform_3, window_bounds = array<i64: 1, 512>}, {pipeline_mode = #tpu.pipeline_mode<synchronous>, transform_indices = @transform_4, window_bounds = array<i64: 8, 128>}, {pipeline_mode = #tpu.pipeline_mode<synchronous>, transform_indices = @transform_5, window_bounds = array<i64: 8, 128>}, {transform_indices = @transform_6, window_bounds = array<i64: 8, 8, 128>}, {pipeline_mode = #tpu.pipeline_mode<synchronous>, transform_indices = @transform_7, window_bounds = array<i64: 8, 128>}, {pipeline_mode = #tpu.pipeline_mode<synchronous>, transform_indices = @transform_8, window_bounds = array<i64: 8, 128>}]} {
    %c0_i32 = arith.constant 0 : i32
    %0 = arith.cmpi eq, %arg0, %c0_i32 : i32
    %1 = arith.extui %0 : i1 to i32
    %c0_i32_0 = arith.constant 0 : i32
    %2 = arith.cmpi ne, %1, %c0_i32_0 : i32
    scf.if %2 {
      %c0_156 = arith.constant 0 : index
      %c0_157 = arith.constant 0 : index
      %350 = vector.load %arg5[%c0_156, %c0_157] : memref<8x128xf32, #tpu.memory_space<vmem>>, vector<8x128xf32>
      %c0_158 = arith.constant 0 : index
      %c0_159 = arith.constant 0 : index
      %351 = vector.load %arg11[%c0_158, %c0_159] : memref<8x128xf32, #tpu.memory_space<vmem>>, vector<8x128xf32>
      tpu.vector_store %arg11[%c0_158, %c0_159], %350 {strides = array<i32>} : memref<8x128xf32, #tpu.memory_space<vmem>>, vector<8x128xf32>,
      %c0_160 = arith.constant 0 : index
      %c0_161 = arith.constant 0 : index
      %352 = vector.load %arg6[%c0_160, %c0_161] : memref<8x128xf32, #tpu.memory_space<vmem>>, vector<8x128xf32>
      %c0_162 = arith.constant 0 : index
      %c0_163 = arith.constant 0 : index
      %353 = vector.load %arg12[%c0_162, %c0_163] : memref<8x128xf32, #tpu.memory_space<vmem>>, vector<8x128xf32>
      tpu.vector_store %arg12[%c0_162, %c0_163], %352 {strides = array<i32>} : memref<8x128xf32, #tpu.memory_space<vmem>>, vector<8x128xf32>,
    } else {
    }
    %c0 = arith.constant 0 : index
    %c0_1 = arith.constant 0 : index
    %c0_2 = arith.constant 0 : index
    %3 = vector.load %arg1[%c0, %c0_1, %c0_2] : memref<8x8x128xbf16, #tpu.memory_space<vmem>>, vector<8x8x128xbf16>
    %4 = vector.shape_cast %3 : vector<8x8x128xbf16> to vector<64x128xbf16>
    %c0_3 = arith.constant 0 : index
    %c0_4 = arith.constant 0 : index
    %5 = vector.load %arg2[%c0_3, %c0_4] : memref<128x512xbf16, #tpu.memory_space<vmem>>, vector<128x512xbf16>
    %cst = arith.constant dense<0.000000e+00> : vector<64x512xf32>
    %6 = tpu.matmul %4, %5, %cst {dimension_numbers = #tpu.dot_dimension_numbers<[1], [0], [0], [1], [0, 0, 1, 1], [], []>} : vector<64x128xbf16>, vector<128x512xbf16>, vector<64x512xf32> -> vector<64x512xf32>
    %c0_5 = arith.constant 0 : index
    %c0_6 = arith.constant 0 : index
    %7 = vector.load %arg4[%c0_5, %c0_6] : memref<1x512xf32, #tpu.memory_space<vmem>>, vector<1x512xf32>
    %8 = vector.broadcast %7 : vector<1x512xf32> to vector<64x512xf32>
    %9 = arith.addf %6, %8 : vector<64x512xf32>
    %c0_7 = arith.constant 0 : index
    %c0_8 = arith.constant 0 : index
    %10 = vector.load %arg10[%c0_7, %c0_8] : memref<64x512xf32, #tpu.memory_space<vmem>>, vector<64x512xf32>
    tpu.vector_store %arg10[%c0_7, %c0_8], %9 {strides = array<i32>} : memref<64x512xf32, #tpu.memory_space<vmem>>, vector<64x512xf32>,
    %c0_i32_9 = arith.constant 0 : i32
    %c8_i32 = arith.constant 8 : i32
    %11 = arith.muli %c0_i32_9, %c8_i32 : i32
    %12 = tpu.assume_multiple %11, 8 : i32
    %13 = arith.index_cast %12 : i32 to index
    %c0_10 = arith.constant 0 : index
    %14 = vector.load %arg10[%13, %c0_10] : memref<64x512xf32, #tpu.memory_space<vmem>>, vector<8x512xf32>
    %c0_11 = arith.constant 0 : index
    %c0_12 = arith.constant 0 : index
    %15 = vector.load %arg11[%c0_11, %c0_12] : memref<8x128xf32, #tpu.memory_space<vmem>>, vector<8x128xf32>
    %16 = arith.truncf %15 : vector<8x128xf32> to vector<8x128xbf16>
    %c0_13 = arith.constant 0 : index
    %c0_14 = arith.constant 0 : index
    %17 = vector.load %arg3[%c0_13, %c0_14] : memref<128x512xbf16, #tpu.memory_space<vmem>>, vector<128x512xbf16>
    %cst_15 = arith.constant dense<0.000000e+00> : vector<8x512xf32>
    %18 = tpu.matmul %16, %17, %cst_15 {dimension_numbers = #tpu.dot_dimension_numbers<[1], [0], [0], [1], [0, 0, 1, 1], [], []>} : vector<8x128xbf16>, vector<128x512xbf16>, vector<8x512xf32> -> vector<8x512xf32>
    %19 = arith.addf %14, %18 : vector<8x512xf32>
    %20 = vector.extract_strided_slice %19 {offsets = [0, 0], sizes = [8, 128], strides = [1, 1]} : vector<8x512xf32> to vector<8x128xf32>
    %21 = arith.negf %20 : vector<8x128xf32>
    %22 = math.exp %21 : vector<8x128xf32>
    %cst_16 = arith.constant 1.000000e+00 : f32
    %23 = vector.broadcast %cst_16 : f32 to vector<8x128xf32>
    %24 = arith.addf %23, %22 : vector<8x128xf32>
    %25 = arith.divf %23, %24 : vector<8x128xf32>
    %26 = vector.extract_strided_slice %19 {offsets = [0, 128], sizes = [8, 128], strides = [1, 1]} : vector<8x512xf32> to vector<8x128xf32>
    %27 = arith.negf %26 : vector<8x128xf32>
    %28 = math.exp %27 : vector<8x128xf32>
    %cst_17 = arith.constant 1.000000e+00 : f32
    %29 = vector.broadcast %cst_17 : f32 to vector<8x128xf32>
    %30 = arith.addf %29, %28 : vector<8x128xf32>
    %31 = arith.divf %29, %30 : vector<8x128xf32>
    %32 = vector.extract_strided_slice %19 {offsets = [0, 256], sizes = [8, 128], strides = [1, 1]} : vector<8x512xf32> to vector<8x128xf32>
    %33 = math.tanh %32 : vector<8x128xf32>
    %34 = vector.extract_strided_slice %19 {offsets = [0, 384], sizes = [8, 128], strides = [1, 1]} : vector<8x512xf32> to vector<8x128xf32>
    %35 = arith.negf %34 : vector<8x128xf32>
    %36 = math.exp %35 : vector<8x128xf32>
    %cst_18 = arith.constant 1.000000e+00 : f32
    %37 = vector.broadcast %cst_18 : f32 to vector<8x128xf32>
    %38 = arith.addf %37, %36 : vector<8x128xf32>
    %39 = arith.divf %37, %38 : vector<8x128xf32>
    %c0_19 = arith.constant 0 : index
    %c0_20 = arith.constant 0 : index
    %40 = vector.load %arg12[%c0_19, %c0_20] : memref<8x128xf32, #tpu.memory_space<vmem>>, vector<8x128xf32>
    %41 = arith.mulf %31, %40 : vector<8x128xf32>
    %42 = arith.mulf %25, %33 : vector<8x128xf32>
    %43 = arith.addf %41, %42 : vector<8x128xf32>
    %44 = math.tanh %43 : vector<8x128xf32>
    %45 = arith.mulf %39, %44 : vector<8x128xf32>
    %c0_21 = arith.constant 0 : index
    %c0_22 = arith.constant 0 : index
    %46 = vector.load %arg12[%c0_21, %c0_22] : memref<8x128xf32, #tpu.memory_space<vmem>>, vector<8x128xf32>
    tpu.vector_store %arg12[%c0_21, %c0_22], %43 {strides = array<i32>} : memref<8x128xf32, #tpu.memory_space<vmem>>, vector<8x128xf32>,
    %c0_23 = arith.constant 0 : index
    %c0_24 = arith.constant 0 : index
    %47 = vector.load %arg11[%c0_23, %c0_24] : memref<8x128xf32, #tpu.memory_space<vmem>>, vector<8x128xf32>
    tpu.vector_store %arg11[%c0_23, %c0_24], %45 {strides = array<i32>} : memref<8x128xf32, #tpu.memory_space<vmem>>, vector<8x128xf32>,
    %48 = arith.truncf %45 : vector<8x128xf32> to vector<8x128xbf16>
    %49 = arith.index_cast %c0_i32_9 : i32 to index
    %c0_25 = arith.constant 0 : index
    %c0_26 = arith.constant 0 : index
    %50 = vector.load %arg7[%49, %c0_25, %c0_26] : memref<8x8x128xbf16, #tpu.memory_space<vmem>>, vector<1x8x128xbf16>
    %51 = vector.shape_cast %50 : vector<1x8x128xbf16> to vector<8x128xbf16>
    %52 = vector.shape_cast %48 : vector<8x128xbf16> to vector<1x8x128xbf16>
    tpu.vector_store %arg7[%49, %c0_25, %c0_26], %52 {strides = array<i32>} : memref<8x8x128xbf16, #tpu.memory_space<vmem>>, vector<1x8x128xbf16>,
    %c1_i32 = arith.constant 1 : i32
    %c8_i32_27 = arith.constant 8 : i32
    %53 = arith.muli %c1_i32, %c8_i32_27 : i32
    %54 = tpu.assume_multiple %53, 8 : i32
    %55 = arith.index_cast %54 : i32 to index
    %c0_28 = arith.constant 0 : index
    %56 = vector.load %arg10[%55, %c0_28] : memref<64x512xf32, #tpu.memory_space<vmem>>, vector<8x512xf32>
    %c0_29 = arith.constant 0 : index
    %c0_30 = arith.constant 0 : index
    %57 = vector.load %arg11[%c0_29, %c0_30] : memref<8x128xf32, #tpu.memory_space<vmem>>, vector<8x128xf32>
    %58 = arith.truncf %57 : vector<8x128xf32> to vector<8x128xbf16>
    %c0_31 = arith.constant 0 : index
    %c0_32 = arith.constant 0 : index
    %59 = vector.load %arg3[%c0_31, %c0_32] : memref<128x512xbf16, #tpu.memory_space<vmem>>, vector<128x512xbf16>
    %cst_33 = arith.constant dense<0.000000e+00> : vector<8x512xf32>
    %60 = tpu.matmul %58, %59, %cst_33 {dimension_numbers = #tpu.dot_dimension_numbers<[1], [0], [0], [1], [0, 0, 1, 1], [], []>} : vector<8x128xbf16>, vector<128x512xbf16>, vector<8x512xf32> -> vector<8x512xf32>
    %61 = arith.addf %56, %60 : vector<8x512xf32>
    %62 = vector.extract_strided_slice %61 {offsets = [0, 0], sizes = [8, 128], strides = [1, 1]} : vector<8x512xf32> to vector<8x128xf32>
    %63 = arith.negf %62 : vector<8x128xf32>
    %64 = math.exp %63 : vector<8x128xf32>
    %cst_34 = arith.constant 1.000000e+00 : f32
    %65 = vector.broadcast %cst_34 : f32 to vector<8x128xf32>
    %66 = arith.addf %65, %64 : vector<8x128xf32>
    %67 = arith.divf %65, %66 : vector<8x128xf32>
    %68 = vector.extract_strided_slice %61 {offsets = [0, 128], sizes = [8, 128], strides = [1, 1]} : vector<8x512xf32> to vector<8x128xf32>
    %69 = arith.negf %68 : vector<8x128xf32>
    %70 = math.exp %69 : vector<8x128xf32>
    %cst_35 = arith.constant 1.000000e+00 : f32
    %71 = vector.broadcast %cst_35 : f32 to vector<8x128xf32>
    %72 = arith.addf %71, %70 : vector<8x128xf32>
    %73 = arith.divf %71, %72 : vector<8x128xf32>
    %74 = vector.extract_strided_slice %61 {offsets = [0, 256], sizes = [8, 128], strides = [1, 1]} : vector<8x512xf32> to vector<8x128xf32>
    %75 = math.tanh %74 : vector<8x128xf32>
    %76 = vector.extract_strided_slice %61 {offsets = [0, 384], sizes = [8, 128], strides = [1, 1]} : vector<8x512xf32> to vector<8x128xf32>
    %77 = arith.negf %76 : vector<8x128xf32>
    %78 = math.exp %77 : vector<8x128xf32>
    %cst_36 = arith.constant 1.000000e+00 : f32
    %79 = vector.broadcast %cst_36 : f32 to vector<8x128xf32>
    %80 = arith.addf %79, %78 : vector<8x128xf32>
    %81 = arith.divf %79, %80 : vector<8x128xf32>
    %c0_37 = arith.constant 0 : index
    %c0_38 = arith.constant 0 : index
    %82 = vector.load %arg12[%c0_37, %c0_38] : memref<8x128xf32, #tpu.memory_space<vmem>>, vector<8x128xf32>
    %83 = arith.mulf %73, %82 : vector<8x128xf32>
    %84 = arith.mulf %67, %75 : vector<8x128xf32>
    %85 = arith.addf %83, %84 : vector<8x128xf32>
    %86 = math.tanh %85 : vector<8x128xf32>
    %87 = arith.mulf %81, %86 : vector<8x128xf32>
    %c0_39 = arith.constant 0 : index
    %c0_40 = arith.constant 0 : index
    %88 = vector.load %arg12[%c0_39, %c0_40] : memref<8x128xf32, #tpu.memory_space<vmem>>, vector<8x128xf32>
    tpu.vector_store %arg12[%c0_39, %c0_40], %85 {strides = array<i32>} : memref<8x128xf32, #tpu.memory_space<vmem>>, vector<8x128xf32>,
    %c0_41 = arith.constant 0 : index
    %c0_42 = arith.constant 0 : index
    %89 = vector.load %arg11[%c0_41, %c0_42] : memref<8x128xf32, #tpu.memory_space<vmem>>, vector<8x128xf32>
    tpu.vector_store %arg11[%c0_41, %c0_42], %87 {strides = array<i32>} : memref<8x128xf32, #tpu.memory_space<vmem>>, vector<8x128xf32>,
    %90 = arith.truncf %87 : vector<8x128xf32> to vector<8x128xbf16>
    %91 = arith.index_cast %c1_i32 : i32 to index
    %c0_43 = arith.constant 0 : index
    %c0_44 = arith.constant 0 : index
    %92 = vector.load %arg7[%91, %c0_43, %c0_44] : memref<8x8x128xbf16, #tpu.memory_space<vmem>>, vector<1x8x128xbf16>
    %93 = vector.shape_cast %92 : vector<1x8x128xbf16> to vector<8x128xbf16>
    %94 = vector.shape_cast %90 : vector<8x128xbf16> to vector<1x8x128xbf16>
    tpu.vector_store %arg7[%91, %c0_43, %c0_44], %94 {strides = array<i32>} : memref<8x8x128xbf16, #tpu.memory_space<vmem>>, vector<1x8x128xbf16>,
    %c2_i32 = arith.constant 2 : i32
    %c8_i32_45 = arith.constant 8 : i32
    %95 = arith.muli %c2_i32, %c8_i32_45 : i32
    %96 = tpu.assume_multiple %95, 8 : i32
    %97 = arith.index_cast %96 : i32 to index
    %c0_46 = arith.constant 0 : index
    %98 = vector.load %arg10[%97, %c0_46] : memref<64x512xf32, #tpu.memory_space<vmem>>, vector<8x512xf32>
    %c0_47 = arith.constant 0 : index
    %c0_48 = arith.constant 0 : index
    %99 = vector.load %arg11[%c0_47, %c0_48] : memref<8x128xf32, #tpu.memory_space<vmem>>, vector<8x128xf32>
    %100 = arith.truncf %99 : vector<8x128xf32> to vector<8x128xbf16>
    %c0_49 = arith.constant 0 : index
    %c0_50 = arith.constant 0 : index
    %101 = vector.load %arg3[%c0_49, %c0_50] : memref<128x512xbf16, #tpu.memory_space<vmem>>, vector<128x512xbf16>
    %cst_51 = arith.constant dense<0.000000e+00> : vector<8x512xf32>
    %102 = tpu.matmul %100, %101, %cst_51 {dimension_numbers = #tpu.dot_dimension_numbers<[1], [0], [0], [1], [0, 0, 1, 1], [], []>} : vector<8x128xbf16>, vector<128x512xbf16>, vector<8x512xf32> -> vector<8x512xf32>
    %103 = arith.addf %98, %102 : vector<8x512xf32>
    %104 = vector.extract_strided_slice %103 {offsets = [0, 0], sizes = [8, 128], strides = [1, 1]} : vector<8x512xf32> to vector<8x128xf32>
    %105 = arith.negf %104 : vector<8x128xf32>
    %106 = math.exp %105 : vector<8x128xf32>
    %cst_52 = arith.constant 1.000000e+00 : f32
    %107 = vector.broadcast %cst_52 : f32 to vector<8x128xf32>
    %108 = arith.addf %107, %106 : vector<8x128xf32>
    %109 = arith.divf %107, %108 : vector<8x128xf32>
    %110 = vector.extract_strided_slice %103 {offsets = [0, 128], sizes = [8, 128], strides = [1, 1]} : vector<8x512xf32> to vector<8x128xf32>
    %111 = arith.negf %110 : vector<8x128xf32>
    %112 = math.exp %111 : vector<8x128xf32>
    %cst_53 = arith.constant 1.000000e+00 : f32
    %113 = vector.broadcast %cst_53 : f32 to vector<8x128xf32>
    %114 = arith.addf %113, %112 : vector<8x128xf32>
    %115 = arith.divf %113, %114 : vector<8x128xf32>
    %116 = vector.extract_strided_slice %103 {offsets = [0, 256], sizes = [8, 128], strides = [1, 1]} : vector<8x512xf32> to vector<8x128xf32>
    %117 = math.tanh %116 : vector<8x128xf32>
    %118 = vector.extract_strided_slice %103 {offsets = [0, 384], sizes = [8, 128], strides = [1, 1]} : vector<8x512xf32> to vector<8x128xf32>
    %119 = arith.negf %118 : vector<8x128xf32>
    %120 = math.exp %119 : vector<8x128xf32>
    %cst_54 = arith.constant 1.000000e+00 : f32
    %121 = vector.broadcast %cst_54 : f32 to vector<8x128xf32>
    %122 = arith.addf %121, %120 : vector<8x128xf32>
    %123 = arith.divf %121, %122 : vector<8x128xf32>
    %c0_55 = arith.constant 0 : index
    %c0_56 = arith.constant 0 : index
    %124 = vector.load %arg12[%c0_55, %c0_56] : memref<8x128xf32, #tpu.memory_space<vmem>>, vector<8x128xf32>
    %125 = arith.mulf %115, %124 : vector<8x128xf32>
    %126 = arith.mulf %109, %117 : vector<8x128xf32>
    %127 = arith.addf %125, %126 : vector<8x128xf32>
    %128 = math.tanh %127 : vector<8x128xf32>
    %129 = arith.mulf %123, %128 : vector<8x128xf32>
    %c0_57 = arith.constant 0 : index
    %c0_58 = arith.constant 0 : index
    %130 = vector.load %arg12[%c0_57, %c0_58] : memref<8x128xf32, #tpu.memory_space<vmem>>, vector<8x128xf32>
    tpu.vector_store %arg12[%c0_57, %c0_58], %127 {strides = array<i32>} : memref<8x128xf32, #tpu.memory_space<vmem>>, vector<8x128xf32>,
    %c0_59 = arith.constant 0 : index
    %c0_60 = arith.constant 0 : index
    %131 = vector.load %arg11[%c0_59, %c0_60] : memref<8x128xf32, #tpu.memory_space<vmem>>, vector<8x128xf32>
    tpu.vector_store %arg11[%c0_59, %c0_60], %129 {strides = array<i32>} : memref<8x128xf32, #tpu.memory_space<vmem>>, vector<8x128xf32>,
    %132 = arith.truncf %129 : vector<8x128xf32> to vector<8x128xbf16>
    %133 = arith.index_cast %c2_i32 : i32 to index
    %c0_61 = arith.constant 0 : index
    %c0_62 = arith.constant 0 : index
    %134 = vector.load %arg7[%133, %c0_61, %c0_62] : memref<8x8x128xbf16, #tpu.memory_space<vmem>>, vector<1x8x128xbf16>
    %135 = vector.shape_cast %134 : vector<1x8x128xbf16> to vector<8x128xbf16>
    %136 = vector.shape_cast %132 : vector<8x128xbf16> to vector<1x8x128xbf16>
    tpu.vector_store %arg7[%133, %c0_61, %c0_62], %136 {strides = array<i32>} : memref<8x8x128xbf16, #tpu.memory_space<vmem>>, vector<1x8x128xbf16>,
    %c3_i32 = arith.constant 3 : i32
    %c8_i32_63 = arith.constant 8 : i32
    %137 = arith.muli %c3_i32, %c8_i32_63 : i32
    %138 = tpu.assume_multiple %137, 8 : i32
    %139 = arith.index_cast %138 : i32 to index
    %c0_64 = arith.constant 0 : index
    %140 = vector.load %arg10[%139, %c0_64] : memref<64x512xf32, #tpu.memory_space<vmem>>, vector<8x512xf32>
    %c0_65 = arith.constant 0 : index
    %c0_66 = arith.constant 0 : index
    %141 = vector.load %arg11[%c0_65, %c0_66] : memref<8x128xf32, #tpu.memory_space<vmem>>, vector<8x128xf32>
    %142 = arith.truncf %141 : vector<8x128xf32> to vector<8x128xbf16>
    %c0_67 = arith.constant 0 : index
    %c0_68 = arith.constant 0 : index
    %143 = vector.load %arg3[%c0_67, %c0_68] : memref<128x512xbf16, #tpu.memory_space<vmem>>, vector<128x512xbf16>
    %cst_69 = arith.constant dense<0.000000e+00> : vector<8x512xf32>
    %144 = tpu.matmul %142, %143, %cst_69 {dimension_numbers = #tpu.dot_dimension_numbers<[1], [0], [0], [1], [0, 0, 1, 1], [], []>} : vector<8x128xbf16>, vector<128x512xbf16>, vector<8x512xf32> -> vector<8x512xf32>
    %145 = arith.addf %140, %144 : vector<8x512xf32>
    %146 = vector.extract_strided_slice %145 {offsets = [0, 0], sizes = [8, 128], strides = [1, 1]} : vector<8x512xf32> to vector<8x128xf32>
    %147 = arith.negf %146 : vector<8x128xf32>
    %148 = math.exp %147 : vector<8x128xf32>
    %cst_70 = arith.constant 1.000000e+00 : f32
    %149 = vector.broadcast %cst_70 : f32 to vector<8x128xf32>
    %150 = arith.addf %149, %148 : vector<8x128xf32>
    %151 = arith.divf %149, %150 : vector<8x128xf32>
    %152 = vector.extract_strided_slice %145 {offsets = [0, 128], sizes = [8, 128], strides = [1, 1]} : vector<8x512xf32> to vector<8x128xf32>
    %153 = arith.negf %152 : vector<8x128xf32>
    %154 = math.exp %153 : vector<8x128xf32>
    %cst_71 = arith.constant 1.000000e+00 : f32
    %155 = vector.broadcast %cst_71 : f32 to vector<8x128xf32>
    %156 = arith.addf %155, %154 : vector<8x128xf32>
    %157 = arith.divf %155, %156 : vector<8x128xf32>
    %158 = vector.extract_strided_slice %145 {offsets = [0, 256], sizes = [8, 128], strides = [1, 1]} : vector<8x512xf32> to vector<8x128xf32>
    %159 = math.tanh %158 : vector<8x128xf32>
    %160 = vector.extract_strided_slice %145 {offsets = [0, 384], sizes = [8, 128], strides = [1, 1]} : vector<8x512xf32> to vector<8x128xf32>
    %161 = arith.negf %160 : vector<8x128xf32>
    %162 = math.exp %161 : vector<8x128xf32>
    %cst_72 = arith.constant 1.000000e+00 : f32
    %163 = vector.broadcast %cst_72 : f32 to vector<8x128xf32>
    %164 = arith.addf %163, %162 : vector<8x128xf32>
    %165 = arith.divf %163, %164 : vector<8x128xf32>
    %c0_73 = arith.constant 0 : index
    %c0_74 = arith.constant 0 : index
    %166 = vector.load %arg12[%c0_73, %c0_74] : memref<8x128xf32, #tpu.memory_space<vmem>>, vector<8x128xf32>
    %167 = arith.mulf %157, %166 : vector<8x128xf32>
    %168 = arith.mulf %151, %159 : vector<8x128xf32>
    %169 = arith.addf %167, %168 : vector<8x128xf32>
    %170 = math.tanh %169 : vector<8x128xf32>
    %171 = arith.mulf %165, %170 : vector<8x128xf32>
    %c0_75 = arith.constant 0 : index
    %c0_76 = arith.constant 0 : index
    %172 = vector.load %arg12[%c0_75, %c0_76] : memref<8x128xf32, #tpu.memory_space<vmem>>, vector<8x128xf32>
    tpu.vector_store %arg12[%c0_75, %c0_76], %169 {strides = array<i32>} : memref<8x128xf32, #tpu.memory_space<vmem>>, vector<8x128xf32>,
    %c0_77 = arith.constant 0 : index
    %c0_78 = arith.constant 0 : index
    %173 = vector.load %arg11[%c0_77, %c0_78] : memref<8x128xf32, #tpu.memory_space<vmem>>, vector<8x128xf32>
    tpu.vector_store %arg11[%c0_77, %c0_78], %171 {strides = array<i32>} : memref<8x128xf32, #tpu.memory_space<vmem>>, vector<8x128xf32>,
    %174 = arith.truncf %171 : vector<8x128xf32> to vector<8x128xbf16>
    %175 = arith.index_cast %c3_i32 : i32 to index
    %c0_79 = arith.constant 0 : index
    %c0_80 = arith.constant 0 : index
    %176 = vector.load %arg7[%175, %c0_79, %c0_80] : memref<8x8x128xbf16, #tpu.memory_space<vmem>>, vector<1x8x128xbf16>
    %177 = vector.shape_cast %176 : vector<1x8x128xbf16> to vector<8x128xbf16>
    %178 = vector.shape_cast %174 : vector<8x128xbf16> to vector<1x8x128xbf16>
    tpu.vector_store %arg7[%175, %c0_79, %c0_80], %178 {strides = array<i32>} : memref<8x8x128xbf16, #tpu.memory_space<vmem>>, vector<1x8x128xbf16>,
    %c4_i32 = arith.constant 4 : i32
    %c8_i32_81 = arith.constant 8 : i32
    %179 = arith.muli %c4_i32, %c8_i32_81 : i32
    %180 = tpu.assume_multiple %179, 8 : i32
    %181 = arith.index_cast %180 : i32 to index
    %c0_82 = arith.constant 0 : index
    %182 = vector.load %arg10[%181, %c0_82] : memref<64x512xf32, #tpu.memory_space<vmem>>, vector<8x512xf32>
    %c0_83 = arith.constant 0 : index
    %c0_84 = arith.constant 0 : index
    %183 = vector.load %arg11[%c0_83, %c0_84] : memref<8x128xf32, #tpu.memory_space<vmem>>, vector<8x128xf32>
    %184 = arith.truncf %183 : vector<8x128xf32> to vector<8x128xbf16>
    %c0_85 = arith.constant 0 : index
    %c0_86 = arith.constant 0 : index
    %185 = vector.load %arg3[%c0_85, %c0_86] : memref<128x512xbf16, #tpu.memory_space<vmem>>, vector<128x512xbf16>
    %cst_87 = arith.constant dense<0.000000e+00> : vector<8x512xf32>
    %186 = tpu.matmul %184, %185, %cst_87 {dimension_numbers = #tpu.dot_dimension_numbers<[1], [0], [0], [1], [0, 0, 1, 1], [], []>} : vector<8x128xbf16>, vector<128x512xbf16>, vector<8x512xf32> -> vector<8x512xf32>
    %187 = arith.addf %182, %186 : vector<8x512xf32>
    %188 = vector.extract_strided_slice %187 {offsets = [0, 0], sizes = [8, 128], strides = [1, 1]} : vector<8x512xf32> to vector<8x128xf32>
    %189 = arith.negf %188 : vector<8x128xf32>
    %190 = math.exp %189 : vector<8x128xf32>
    %cst_88 = arith.constant 1.000000e+00 : f32
    %191 = vector.broadcast %cst_88 : f32 to vector<8x128xf32>
    %192 = arith.addf %191, %190 : vector<8x128xf32>
    %193 = arith.divf %191, %192 : vector<8x128xf32>
    %194 = vector.extract_strided_slice %187 {offsets = [0, 128], sizes = [8, 128], strides = [1, 1]} : vector<8x512xf32> to vector<8x128xf32>
    %195 = arith.negf %194 : vector<8x128xf32>
    %196 = math.exp %195 : vector<8x128xf32>
    %cst_89 = arith.constant 1.000000e+00 : f32
    %197 = vector.broadcast %cst_89 : f32 to vector<8x128xf32>
    %198 = arith.addf %197, %196 : vector<8x128xf32>
    %199 = arith.divf %197, %198 : vector<8x128xf32>
    %200 = vector.extract_strided_slice %187 {offsets = [0, 256], sizes = [8, 128], strides = [1, 1]} : vector<8x512xf32> to vector<8x128xf32>
    %201 = math.tanh %200 : vector<8x128xf32>
    %202 = vector.extract_strided_slice %187 {offsets = [0, 384], sizes = [8, 128], strides = [1, 1]} : vector<8x512xf32> to vector<8x128xf32>
    %203 = arith.negf %202 : vector<8x128xf32>
    %204 = math.exp %203 : vector<8x128xf32>
    %cst_90 = arith.constant 1.000000e+00 : f32
    %205 = vector.broadcast %cst_90 : f32 to vector<8x128xf32>
    %206 = arith.addf %205, %204 : vector<8x128xf32>
    %207 = arith.divf %205, %206 : vector<8x128xf32>
    %c0_91 = arith.constant 0 : index
    %c0_92 = arith.constant 0 : index
    %208 = vector.load %arg12[%c0_91, %c0_92] : memref<8x128xf32, #tpu.memory_space<vmem>>, vector<8x128xf32>
    %209 = arith.mulf %199, %208 : vector<8x128xf32>
    %210 = arith.mulf %193, %201 : vector<8x128xf32>
    %211 = arith.addf %209, %210 : vector<8x128xf32>
    %212 = math.tanh %211 : vector<8x128xf32>
    %213 = arith.mulf %207, %212 : vector<8x128xf32>
    %c0_93 = arith.constant 0 : index
    %c0_94 = arith.constant 0 : index
    %214 = vector.load %arg12[%c0_93, %c0_94] : memref<8x128xf32, #tpu.memory_space<vmem>>, vector<8x128xf32>
    tpu.vector_store %arg12[%c0_93, %c0_94], %211 {strides = array<i32>} : memref<8x128xf32, #tpu.memory_space<vmem>>, vector<8x128xf32>,
    %c0_95 = arith.constant 0 : index
    %c0_96 = arith.constant 0 : index
    %215 = vector.load %arg11[%c0_95, %c0_96] : memref<8x128xf32, #tpu.memory_space<vmem>>, vector<8x128xf32>
    tpu.vector_store %arg11[%c0_95, %c0_96], %213 {strides = array<i32>} : memref<8x128xf32, #tpu.memory_space<vmem>>, vector<8x128xf32>,
    %216 = arith.truncf %213 : vector<8x128xf32> to vector<8x128xbf16>
    %217 = arith.index_cast %c4_i32 : i32 to index
    %c0_97 = arith.constant 0 : index
    %c0_98 = arith.constant 0 : index
    %218 = vector.load %arg7[%217, %c0_97, %c0_98] : memref<8x8x128xbf16, #tpu.memory_space<vmem>>, vector<1x8x128xbf16>
    %219 = vector.shape_cast %218 : vector<1x8x128xbf16> to vector<8x128xbf16>
    %220 = vector.shape_cast %216 : vector<8x128xbf16> to vector<1x8x128xbf16>
    tpu.vector_store %arg7[%217, %c0_97, %c0_98], %220 {strides = array<i32>} : memref<8x8x128xbf16, #tpu.memory_space<vmem>>, vector<1x8x128xbf16>,
    %c5_i32 = arith.constant 5 : i32
    %c8_i32_99 = arith.constant 8 : i32
    %221 = arith.muli %c5_i32, %c8_i32_99 : i32
    %222 = tpu.assume_multiple %221, 8 : i32
    %223 = arith.index_cast %222 : i32 to index
    %c0_100 = arith.constant 0 : index
    %224 = vector.load %arg10[%223, %c0_100] : memref<64x512xf32, #tpu.memory_space<vmem>>, vector<8x512xf32>
    %c0_101 = arith.constant 0 : index
    %c0_102 = arith.constant 0 : index
    %225 = vector.load %arg11[%c0_101, %c0_102] : memref<8x128xf32, #tpu.memory_space<vmem>>, vector<8x128xf32>
    %226 = arith.truncf %225 : vector<8x128xf32> to vector<8x128xbf16>
    %c0_103 = arith.constant 0 : index
    %c0_104 = arith.constant 0 : index
    %227 = vector.load %arg3[%c0_103, %c0_104] : memref<128x512xbf16, #tpu.memory_space<vmem>>, vector<128x512xbf16>
    %cst_105 = arith.constant dense<0.000000e+00> : vector<8x512xf32>
    %228 = tpu.matmul %226, %227, %cst_105 {dimension_numbers = #tpu.dot_dimension_numbers<[1], [0], [0], [1], [0, 0, 1, 1], [], []>} : vector<8x128xbf16>, vector<128x512xbf16>, vector<8x512xf32> -> vector<8x512xf32>
    %229 = arith.addf %224, %228 : vector<8x512xf32>
    %230 = vector.extract_strided_slice %229 {offsets = [0, 0], sizes = [8, 128], strides = [1, 1]} : vector<8x512xf32> to vector<8x128xf32>
    %231 = arith.negf %230 : vector<8x128xf32>
    %232 = math.exp %231 : vector<8x128xf32>
    %cst_106 = arith.constant 1.000000e+00 : f32
    %233 = vector.broadcast %cst_106 : f32 to vector<8x128xf32>
    %234 = arith.addf %233, %232 : vector<8x128xf32>
    %235 = arith.divf %233, %234 : vector<8x128xf32>
    %236 = vector.extract_strided_slice %229 {offsets = [0, 128], sizes = [8, 128], strides = [1, 1]} : vector<8x512xf32> to vector<8x128xf32>
    %237 = arith.negf %236 : vector<8x128xf32>
    %238 = math.exp %237 : vector<8x128xf32>
    %cst_107 = arith.constant 1.000000e+00 : f32
    %239 = vector.broadcast %cst_107 : f32 to vector<8x128xf32>
    %240 = arith.addf %239, %238 : vector<8x128xf32>
    %241 = arith.divf %239, %240 : vector<8x128xf32>
    %242 = vector.extract_strided_slice %229 {offsets = [0, 256], sizes = [8, 128], strides = [1, 1]} : vector<8x512xf32> to vector<8x128xf32>
    %243 = math.tanh %242 : vector<8x128xf32>
    %244 = vector.extract_strided_slice %229 {offsets = [0, 384], sizes = [8, 128], strides = [1, 1]} : vector<8x512xf32> to vector<8x128xf32>
    %245 = arith.negf %244 : vector<8x128xf32>
    %246 = math.exp %245 : vector<8x128xf32>
    %cst_108 = arith.constant 1.000000e+00 : f32
    %247 = vector.broadcast %cst_108 : f32 to vector<8x128xf32>
    %248 = arith.addf %247, %246 : vector<8x128xf32>
    %249 = arith.divf %247, %248 : vector<8x128xf32>
    %c0_109 = arith.constant 0 : index
    %c0_110 = arith.constant 0 : index
    %250 = vector.load %arg12[%c0_109, %c0_110] : memref<8x128xf32, #tpu.memory_space<vmem>>, vector<8x128xf32>
    %251 = arith.mulf %241, %250 : vector<8x128xf32>
    %252 = arith.mulf %235, %243 : vector<8x128xf32>
    %253 = arith.addf %251, %252 : vector<8x128xf32>
    %254 = math.tanh %253 : vector<8x128xf32>
    %255 = arith.mulf %249, %254 : vector<8x128xf32>
    %c0_111 = arith.constant 0 : index
    %c0_112 = arith.constant 0 : index
    %256 = vector.load %arg12[%c0_111, %c0_112] : memref<8x128xf32, #tpu.memory_space<vmem>>, vector<8x128xf32>
    tpu.vector_store %arg12[%c0_111, %c0_112], %253 {strides = array<i32>} : memref<8x128xf32, #tpu.memory_space<vmem>>, vector<8x128xf32>,
    %c0_113 = arith.constant 0 : index
    %c0_114 = arith.constant 0 : index
    %257 = vector.load %arg11[%c0_113, %c0_114] : memref<8x128xf32, #tpu.memory_space<vmem>>, vector<8x128xf32>
    tpu.vector_store %arg11[%c0_113, %c0_114], %255 {strides = array<i32>} : memref<8x128xf32, #tpu.memory_space<vmem>>, vector<8x128xf32>,
    %258 = arith.truncf %255 : vector<8x128xf32> to vector<8x128xbf16>
    %259 = arith.index_cast %c5_i32 : i32 to index
    %c0_115 = arith.constant 0 : index
    %c0_116 = arith.constant 0 : index
    %260 = vector.load %arg7[%259, %c0_115, %c0_116] : memref<8x8x128xbf16, #tpu.memory_space<vmem>>, vector<1x8x128xbf16>
    %261 = vector.shape_cast %260 : vector<1x8x128xbf16> to vector<8x128xbf16>
    %262 = vector.shape_cast %258 : vector<8x128xbf16> to vector<1x8x128xbf16>
    tpu.vector_store %arg7[%259, %c0_115, %c0_116], %262 {strides = array<i32>} : memref<8x8x128xbf16, #tpu.memory_space<vmem>>, vector<1x8x128xbf16>,
    %c6_i32 = arith.constant 6 : i32
    %c8_i32_117 = arith.constant 8 : i32
    %263 = arith.muli %c6_i32, %c8_i32_117 : i32
    %264 = tpu.assume_multiple %263, 8 : i32
    %265 = arith.index_cast %264 : i32 to index
    %c0_118 = arith.constant 0 : index
    %266 = vector.load %arg10[%265, %c0_118] : memref<64x512xf32, #tpu.memory_space<vmem>>, vector<8x512xf32>
    %c0_119 = arith.constant 0 : index
    %c0_120 = arith.constant 0 : index
    %267 = vector.load %arg11[%c0_119, %c0_120] : memref<8x128xf32, #tpu.memory_space<vmem>>, vector<8x128xf32>
    %268 = arith.truncf %267 : vector<8x128xf32> to vector<8x128xbf16>
    %c0_121 = arith.constant 0 : index
    %c0_122 = arith.constant 0 : index
    %269 = vector.load %arg3[%c0_121, %c0_122] : memref<128x512xbf16, #tpu.memory_space<vmem>>, vector<128x512xbf16>
    %cst_123 = arith.constant dense<0.000000e+00> : vector<8x512xf32>
    %270 = tpu.matmul %268, %269, %cst_123 {dimension_numbers = #tpu.dot_dimension_numbers<[1], [0], [0], [1], [0, 0, 1, 1], [], []>} : vector<8x128xbf16>, vector<128x512xbf16>, vector<8x512xf32> -> vector<8x512xf32>
    %271 = arith.addf %266, %270 : vector<8x512xf32>
    %272 = vector.extract_strided_slice %271 {offsets = [0, 0], sizes = [8, 128], strides = [1, 1]} : vector<8x512xf32> to vector<8x128xf32>
    %273 = arith.negf %272 : vector<8x128xf32>
    %274 = math.exp %273 : vector<8x128xf32>
    %cst_124 = arith.constant 1.000000e+00 : f32
    %275 = vector.broadcast %cst_124 : f32 to vector<8x128xf32>
    %276 = arith.addf %275, %274 : vector<8x128xf32>
    %277 = arith.divf %275, %276 : vector<8x128xf32>
    %278 = vector.extract_strided_slice %271 {offsets = [0, 128], sizes = [8, 128], strides = [1, 1]} : vector<8x512xf32> to vector<8x128xf32>
    %279 = arith.negf %278 : vector<8x128xf32>
    %280 = math.exp %279 : vector<8x128xf32>
    %cst_125 = arith.constant 1.000000e+00 : f32
    %281 = vector.broadcast %cst_125 : f32 to vector<8x128xf32>
    %282 = arith.addf %281, %280 : vector<8x128xf32>
    %283 = arith.divf %281, %282 : vector<8x128xf32>
    %284 = vector.extract_strided_slice %271 {offsets = [0, 256], sizes = [8, 128], strides = [1, 1]} : vector<8x512xf32> to vector<8x128xf32>
    %285 = math.tanh %284 : vector<8x128xf32>
    %286 = vector.extract_strided_slice %271 {offsets = [0, 384], sizes = [8, 128], strides = [1, 1]} : vector<8x512xf32> to vector<8x128xf32>
    %287 = arith.negf %286 : vector<8x128xf32>
    %288 = math.exp %287 : vector<8x128xf32>
    %cst_126 = arith.constant 1.000000e+00 : f32
    %289 = vector.broadcast %cst_126 : f32 to vector<8x128xf32>
    %290 = arith.addf %289, %288 : vector<8x128xf32>
    %291 = arith.divf %289, %290 : vector<8x128xf32>
    %c0_127 = arith.constant 0 : index
    %c0_128 = arith.constant 0 : index
    %292 = vector.load %arg12[%c0_127, %c0_128] : memref<8x128xf32, #tpu.memory_space<vmem>>, vector<8x128xf32>
    %293 = arith.mulf %283, %292 : vector<8x128xf32>
    %294 = arith.mulf %277, %285 : vector<8x128xf32>
    %295 = arith.addf %293, %294 : vector<8x128xf32>
    %296 = math.tanh %295 : vector<8x128xf32>
    %297 = arith.mulf %291, %296 : vector<8x128xf32>
    %c0_129 = arith.constant 0 : index
    %c0_130 = arith.constant 0 : index
    %298 = vector.load %arg12[%c0_129, %c0_130] : memref<8x128xf32, #tpu.memory_space<vmem>>, vector<8x128xf32>
    tpu.vector_store %arg12[%c0_129, %c0_130], %295 {strides = array<i32>} : memref<8x128xf32, #tpu.memory_space<vmem>>, vector<8x128xf32>,
    %c0_131 = arith.constant 0 : index
    %c0_132 = arith.constant 0 : index
    %299 = vector.load %arg11[%c0_131, %c0_132] : memref<8x128xf32, #tpu.memory_space<vmem>>, vector<8x128xf32>
    tpu.vector_store %arg11[%c0_131, %c0_132], %297 {strides = array<i32>} : memref<8x128xf32, #tpu.memory_space<vmem>>, vector<8x128xf32>,
    %300 = arith.truncf %297 : vector<8x128xf32> to vector<8x128xbf16>
    %301 = arith.index_cast %c6_i32 : i32 to index
    %c0_133 = arith.constant 0 : index
    %c0_134 = arith.constant 0 : index
    %302 = vector.load %arg7[%301, %c0_133, %c0_134] : memref<8x8x128xbf16, #tpu.memory_space<vmem>>, vector<1x8x128xbf16>
    %303 = vector.shape_cast %302 : vector<1x8x128xbf16> to vector<8x128xbf16>
    %304 = vector.shape_cast %300 : vector<8x128xbf16> to vector<1x8x128xbf16>
    tpu.vector_store %arg7[%301, %c0_133, %c0_134], %304 {strides = array<i32>} : memref<8x8x128xbf16, #tpu.memory_space<vmem>>, vector<1x8x128xbf16>,
    %c7_i32 = arith.constant 7 : i32
    %c8_i32_135 = arith.constant 8 : i32
    %305 = arith.muli %c7_i32, %c8_i32_135 : i32
    %306 = tpu.assume_multiple %305, 8 : i32
    %307 = arith.index_cast %306 : i32 to index
    %c0_136 = arith.constant 0 : index
    %308 = vector.load %arg10[%307, %c0_136] : memref<64x512xf32, #tpu.memory_space<vmem>>, vector<8x512xf32>
    %c0_137 = arith.constant 0 : index
    %c0_138 = arith.constant 0 : index
    %309 = vector.load %arg11[%c0_137, %c0_138] : memref<8x128xf32, #tpu.memory_space<vmem>>, vector<8x128xf32>
    %310 = arith.truncf %309 : vector<8x128xf32> to vector<8x128xbf16>
    %c0_139 = arith.constant 0 : index
    %c0_140 = arith.constant 0 : index
    %311 = vector.load %arg3[%c0_139, %c0_140] : memref<128x512xbf16, #tpu.memory_space<vmem>>, vector<128x512xbf16>
    %cst_141 = arith.constant dense<0.000000e+00> : vector<8x512xf32>
    %312 = tpu.matmul %310, %311, %cst_141 {dimension_numbers = #tpu.dot_dimension_numbers<[1], [0], [0], [1], [0, 0, 1, 1], [], []>} : vector<8x128xbf16>, vector<128x512xbf16>, vector<8x512xf32> -> vector<8x512xf32>
    %313 = arith.addf %308, %312 : vector<8x512xf32>
    %314 = vector.extract_strided_slice %313 {offsets = [0, 0], sizes = [8, 128], strides = [1, 1]} : vector<8x512xf32> to vector<8x128xf32>
    %315 = arith.negf %314 : vector<8x128xf32>
    %316 = math.exp %315 : vector<8x128xf32>
    %cst_142 = arith.constant 1.000000e+00 : f32
    %317 = vector.broadcast %cst_142 : f32 to vector<8x128xf32>
    %318 = arith.addf %317, %316 : vector<8x128xf32>
    %319 = arith.divf %317, %318 : vector<8x128xf32>
    %320 = vector.extract_strided_slice %313 {offsets = [0, 128], sizes = [8, 128], strides = [1, 1]} : vector<8x512xf32> to vector<8x128xf32>
    %321 = arith.negf %320 : vector<8x128xf32>
    %322 = math.exp %321 : vector<8x128xf32>
    %cst_143 = arith.constant 1.000000e+00 : f32
    %323 = vector.broadcast %cst_143 : f32 to vector<8x128xf32>
    %324 = arith.addf %323, %322 : vector<8x128xf32>
    %325 = arith.divf %323, %324 : vector<8x128xf32>
    %326 = vector.extract_strided_slice %313 {offsets = [0, 256], sizes = [8, 128], strides = [1, 1]} : vector<8x512xf32> to vector<8x128xf32>
    %327 = math.tanh %326 : vector<8x128xf32>
    %328 = vector.extract_strided_slice %313 {offsets = [0, 384], sizes = [8, 128], strides = [1, 1]} : vector<8x512xf32> to vector<8x128xf32>
    %329 = arith.negf %328 : vector<8x128xf32>
    %330 = math.exp %329 : vector<8x128xf32>
    %cst_144 = arith.constant 1.000000e+00 : f32
    %331 = vector.broadcast %cst_144 : f32 to vector<8x128xf32>
    %332 = arith.addf %331, %330 : vector<8x128xf32>
    %333 = arith.divf %331, %332 : vector<8x128xf32>
    %c0_145 = arith.constant 0 : index
    %c0_146 = arith.constant 0 : index
    %334 = vector.load %arg12[%c0_145, %c0_146] : memref<8x128xf32, #tpu.memory_space<vmem>>, vector<8x128xf32>
    %335 = arith.mulf %325, %334 : vector<8x128xf32>
    %336 = arith.mulf %319, %327 : vector<8x128xf32>
    %337 = arith.addf %335, %336 : vector<8x128xf32>
    %338 = math.tanh %337 : vector<8x128xf32>
    %339 = arith.mulf %333, %338 : vector<8x128xf32>
    %c0_147 = arith.constant 0 : index
    %c0_148 = arith.constant 0 : index
    %340 = vector.load %arg12[%c0_147, %c0_148] : memref<8x128xf32, #tpu.memory_space<vmem>>, vector<8x128xf32>
    tpu.vector_store %arg12[%c0_147, %c0_148], %337 {strides = array<i32>} : memref<8x128xf32, #tpu.memory_space<vmem>>, vector<8x128xf32>,
    %c0_149 = arith.constant 0 : index
    %c0_150 = arith.constant 0 : index
    %341 = vector.load %arg11[%c0_149, %c0_150] : memref<8x128xf32, #tpu.memory_space<vmem>>, vector<8x128xf32>
    tpu.vector_store %arg11[%c0_149, %c0_150], %339 {strides = array<i32>} : memref<8x128xf32, #tpu.memory_space<vmem>>, vector<8x128xf32>,
    %342 = arith.truncf %339 : vector<8x128xf32> to vector<8x128xbf16>
    %343 = arith.index_cast %c7_i32 : i32 to index
    %c0_151 = arith.constant 0 : index
    %c0_152 = arith.constant 0 : index
    %344 = vector.load %arg7[%343, %c0_151, %c0_152] : memref<8x8x128xbf16, #tpu.memory_space<vmem>>, vector<1x8x128xbf16>
    %345 = vector.shape_cast %344 : vector<1x8x128xbf16> to vector<8x128xbf16>
    %346 = vector.shape_cast %342 : vector<8x128xbf16> to vector<1x8x128xbf16>
    tpu.vector_store %arg7[%343, %c0_151, %c0_152], %346 {strides = array<i32>} : memref<8x8x128xbf16, #tpu.memory_space<vmem>>, vector<1x8x128xbf16>,
    %c8_i32_153 = arith.constant 8 : i32
    %c0_i32_154 = arith.constant 0 : i32
    %347 = arith.cmpi eq, %arg0, %c0_i32_154 : i32
    %348 = arith.extui %347 : i1 to i32
    %c0_i32_155 = arith.constant 0 : i32
    %349 = arith.cmpi ne, %348, %c0_i32_155 : i32
    scf.if %349 {
      %c0_156 = arith.constant 0 : index
      %c0_157 = arith.constant 0 : index
      %350 = vector.load %arg11[%c0_156, %c0_157] : memref<8x128xf32, #tpu.memory_space<vmem>>, vector<8x128xf32>
      %c0_158 = arith.constant 0 : index
      %c0_159 = arith.constant 0 : index
      %351 = vector.load %arg8[%c0_158, %c0_159] : memref<8x128xf32, #tpu.memory_space<vmem>>, vector<8x128xf32>
      tpu.vector_store %arg8[%c0_158, %c0_159], %350 {strides = array<i32>} : memref<8x128xf32, #tpu.memory_space<vmem>>, vector<8x128xf32>,
      %c0_160 = arith.constant 0 : index
      %c0_161 = arith.constant 0 : index
      %352 = vector.load %arg12[%c0_160, %c0_161] : memref<8x128xf32, #tpu.memory_space<vmem>>, vector<8x128xf32>
      %c0_162 = arith.constant 0 : index
      %c0_163 = arith.constant 0 : index
      %353 = vector.load %arg9[%c0_162, %c0_163] : memref<8x128xf32, #tpu.memory_space<vmem>>, vector<8x128xf32>
      tpu.vector_store %arg9[%c0_162, %c0_163], %352 {strides = array<i32>} : memref<8x128xf32, #tpu.memory_space<vmem>>, vector<8x128xf32>,
    } else {
    }
    return
  }
  func.func @transform_0(%arg0: i32) -> (i32, i32, i32) {
    %c0_i32 = arith.constant 0 : i32
    %c0_i32_0 = arith.constant 0 : i32
    %c0_i32_1 = arith.constant 0 : i32
    return %arg0, %c0_i32, %c0_i32_0 : i32, i32, i32
  }
  func.func @transform_1(%arg0: i32) -> (i32, i32) {
    %c0_i32 = arith.constant 0 : i32
    %c0_i32_0 = arith.constant 0 : i32
    %c0_i32_1 = arith.constant 0 : i32
    return %c0_i32, %c0_i32_0 : i32, i32
  }
  func.func @transform_2(%arg0: i32) -> (i32, i32) {
    %c0_i32 = arith.constant 0 : i32
    %c0_i32_0 = arith.constant 0 : i32
    %c0_i32_1 = arith.constant 0 : i32
    return %c0_i32, %c0_i32_0 : i32, i32
  }
  func.func @transform_3(%arg0: i32) -> (i32, i32) {
    %c0_i32 = arith.constant 0 : i32
    %c0_i32_0 = arith.constant 0 : i32
    %c0_i32_1 = arith.constant 0 : i32
    return %c0_i32, %c0_i32_0 : i32, i32
  }
  func.func @transform_4(%arg0: i32) -> (i32, i32) {
    %c0_i32 = arith.constant 0 : i32
    %c0_i32_0 = arith.constant 0 : i32
    %c0_i32_1 = arith.constant 0 : i32
    return %c0_i32, %c0_i32_0 : i32, i32
  }
  func.func @transform_5(%arg0: i32) -> (i32, i32) {
    %c0_i32 = arith.constant 0 : i32
    %c0_i32_0 = arith.constant 0 : i32
    %c0_i32_1 = arith.constant 0 : i32
    return %c0_i32, %c0_i32_0 : i32, i32
  }
  func.func @transform_6(%arg0: i32) -> (i32, i32, i32) {
    %c0_i32 = arith.constant 0 : i32
    %c0_i32_0 = arith.constant 0 : i32
    %c0_i32_1 = arith.constant 0 : i32
    return %arg0, %c0_i32, %c0_i32_0 : i32, i32, i32
  }
  func.func @transform_7(%arg0: i32) -> (i32, i32) {
    %c0_i32 = arith.constant 0 : i32
    %c0_i32_0 = arith.constant 0 : i32
    %c0_i32_1 = arith.constant 0 : i32
    return %c0_i32, %c0_i32_0 : i32, i32
  }
  func.func @transform_8(%arg0: i32) -> (i32, i32) {
    %c0_i32 = arith.constant 0 : i32
    %c0_i32_0 = arith.constant 0 : i32
    %c0_i32_1 = arith.constant 0 : i32
    return %c0_i32, %c0_i32_0 : i32, i32
  }
}

</mosaic_0001>

<bundles_post_ra>
// kernel: lstm_lm_forward.5
= control target key start
LH: loop header
LB: loop body
LE: loop exit
PB: predicated region body
PF: predicated region fallthrough
CT: control target
= control target key end

     0   :  { %vm21_vm0 = vcmask 7168   ;;  %v580_v12 = vmov -1e+30   ;;  %v581_v30 = vmov 0   ;;  %v582_v31 = vmov 0.0   ;;  %s871_s1 = inlined_call_operand.vmem [shape: bf16[128,128], index: 1, kind: input, shape index: {}]   ;;  %s872_s0 = inlined_call_operand.vmem [shape: bf16[64,128], index: 0, kind: input, shape index: {}]   ;;  %s873_s2 = inlined_call_operand.vmem [shape: f32[1,128], index: 2, kind: input, shape index: {}]   ;;  %s874_s3 = inlined_call_operand.vmem [shape: f32[64,128], index: 3, kind: output, shape index: {0}]   ;;  %s875_s4 = inlined_call_operand.vmem [shape: f32[64,1], index: 4, kind: output, shape index: {1}]  }
   0x1   :  { %v520_v0 = vld [vmem:[%s871_s1 + $0x38] sm:$0xff]   ;;  %v521_v1 = vld [vmem:[%s871_s1 + $0x30] sm:$0xff]   ;;  %v522_v2 = vld [vmem:[%s871_s1 + $0x28] sm:$0xff]   ;;  %24 = vst.msk [vmem:[#allocation2 + $0x10] sm:$0xff] %vm21_vm0, %v580_v12  ;;  %519 = vset.pattern.permute.xlu1 %v581_v30  ;;  %518 = vset.pattern.permute.xlu0 %v581_v30 }
   0x2   :  { %475 = vmatprep.subr.bf16.mxu0 %v520_v0  ;;  %499 = vmatprep.subr.bf16.mxu1 %v520_v0  ;;  %v523_v3 = vld [vmem:[%s871_s1 + $0x20] sm:$0xff]   ;;  %v529_v5 = vld [vmem:[%s872_s0 + $0x10] sm:$0xff]   ;;  %v524_v6 = vld [vmem:[%s871_s1 + $0x18] sm:$0xff]   ;;  %22 = vst.msk [vmem:[#allocation2] sm:$0xff] %vm21_vm0, %v580_v12 }
   0x3   :  { %476 = vmatpush3.bf16.msra.mxu0 %v520_v0  ;;  %507 = vmatpush3.bf16.msra.mxu1 %v520_v0  ;;  %v528_v4 = vld [vmem:[%s872_s0] sm:$0xff]   ;;  %v525_v7 = vld [vmem:[%s871_s1 + $0x10] sm:$0xff]   ;;  %v526_v8 = vld [vmem:[%s871_s1 + $0x8] sm:$0xff]   ;;  %23 = vst.msk [vmem:[#allocation2 + $0x8] sm:$0xff] %vm21_vm0, %v580_v12 }
   0x4   :  { %477 = vmatprep.subr.bf16.mxu0 %v521_v1  ;;  %500 = vmatprep.subr.bf16.mxu1 %v521_v1  ;;  %v527_v9 = vld [vmem:[%s871_s1] sm:$0xff]   ;;  %v530_v10 = vld [vmem:[%s872_s0 + $0x8] sm:$0xff]   ;;  %v531_v11 = vld [vmem:[%s872_s0 + $0x18] sm:$0xff]   ;;  %25 = vst.msk [vmem:[#allocation2 + $0x18] sm:$0xff] %vm21_vm0, %v580_v12 }
   0x5   :  { %491 = vmatprep.mubr.bf16.mxu0 %v528_v4  ;;  %495 = vmatprep.mubr.bf16.mxu1 %v529_v5  ;;  %26 = vst.msk [vmem:[#allocation2 + $0x20] sm:$0xff] %vm21_vm0, %v580_v12  ;;  %27 = vst.msk [vmem:[#allocation2 + $0x28] sm:$0xff] %vm21_vm0, %v580_v12  ;;  %v450_v13 = vld [vmem:[%s873_s2] ss:$0 sm:$0xff] }
   0x6   :  { %28 = vst.msk [vmem:[#allocation2 + $0x30] sm:$0xff] %vm21_vm0, %v580_v12  ;;  %29 = vst.msk [vmem:[#allocation2 + $0x38] sm:$0xff] %vm21_vm0, %v580_v12 }
   0x7   :  { %478 = vmatpush3.bf16.msra.mxu0 %v521_v1  ;;  %508 = vmatpush3.bf16.msra.mxu1 %v521_v1  ;;  %32 = vst.msk [vmem:[#allocation3 + $0x10] sm:$0xff] %vm21_vm0, %v582_v31  ;;  %30 = vst.msk [vmem:[#allocation3] sm:$0xff] %vm21_vm0, %v582_v31 }
   0x8   :  { %479 = vmatprep.subr.bf16.mxu0 %v522_v2  ;;  %501 = vmatprep.subr.bf16.mxu1 %v522_v2  ;;  %31 = vst.msk [vmem:[#allocation3 + $0x8] sm:$0xff] %vm21_vm0, %v582_v31  ;;  %33 = vst.msk [vmem:[#allocation3 + $0x18] sm:$0xff] %vm21_vm0, %v582_v31  ;;  %v719_v32 = vld [vmem:[#allocation2 + $0x10] sm:$0xff] }
   0x9   :  { %34 = vst.msk [vmem:[#allocation3 + $0x20] sm:$0xff] %vm21_vm0, %v582_v31  ;;  %35 = vst.msk [vmem:[#allocation3 + $0x28] sm:$0xff] %vm21_vm0, %v582_v31  ;;  %v721_v34 = vld [vmem:[#allocation2] sm:$0xff] }
   0xa   :  { %36 = vst.msk [vmem:[#allocation3 + $0x30] sm:$0xff] %vm21_vm0, %v582_v31  ;;  %37 = vst.msk [vmem:[#allocation3 + $0x38] sm:$0xff] %vm21_vm0, %v582_v31  ;;  %v755_v49 = vld [vmem:[#allocation2 + $0x8] sm:$0xff] }
   0xb   :  { %480 = vmatpush3.bf16.msra.mxu0 %v522_v2  ;;  %509 = vmatpush3.bf16.msra.mxu1 %v522_v2  ;;  %v726_v37 = vld [vmem:[#allocation2 + $0x18] sm:$0xff] }
   0xc   :  { %481 = vmatprep.subr.bf16.mxu0 %v523_v3  ;;  %502 = vmatprep.subr.bf16.mxu1 %v523_v3  ;;  %v736_v41 = vld [vmem:[#allocation2 + $0x20] sm:$0xff]  ;;  %v746_v45 = vld [vmem:[#allocation2 + $0x28] sm:$0xff] }
   0xd   :  { %v764_v53 = vld [vmem:[#allocation2 + $0x38] sm:$0xff]  ;;  %v773_v57 = vld [vmem:[#allocation2 + $0x30] sm:$0xff] }
   0xf   :  { %482 = vmatpush3.bf16.msra.mxu0 %v523_v3  ;;  %510 = vmatpush3.bf16.msra.mxu1 %v523_v3 }
  0x10   :  { %483 = vmatprep.subr.bf16.mxu0 %v524_v6  ;;  %503 = vmatprep.subr.bf16.mxu1 %v524_v6 }
  0x13   :  { %484 = vmatpush3.bf16.msra.mxu0 %v524_v6  ;;  %511 = vmatpush3.bf16.msra.mxu1 %v524_v6 }
  0x14   :  { %485 = vmatprep.subr.bf16.mxu0 %v525_v7  ;;  %504 = vmatprep.subr.bf16.mxu1 %v525_v7 }
  0x17   :  { %486 = vmatpush3.bf16.msra.mxu0 %v525_v7  ;;  %512 = vmatpush3.bf16.msra.mxu1 %v525_v7 }
  0x18   :  { %487 = vmatprep.subr.bf16.mxu0 %v526_v8  ;;  %505 = vmatprep.subr.bf16.mxu1 %v526_v8 }
  0x1b   :  { %488 = vmatpush3.bf16.msra.mxu0 %v526_v8  ;;  %513 = vmatpush3.bf16.msra.mxu1 %v526_v8 }
  0x1c   :  { %489 = vmatprep.subr.bf16.mxu0 %v527_v9  ;;  %506 = vmatprep.subr.bf16.mxu1 %v527_v9 }
  0x1f   :  { %490 = vmatpush3.bf16.msra.mxu0 %v527_v9  ;;  %514 = vmatpush3.bf16.msra.mxu1 %v527_v9 }
  0x22   :  { %492 = vmatmul.mubr.bf16.vlgmr.msra.gmra.mxu0 %v530_v10  ;;  %496 = vmatmul.mubr.bf16.vlgmr.msra.gmra.mxu1 %v531_v11 }
  0xe2   :  { %v493_v14 = vpop.f32.mrf.mxu0  ;;  %v497_v15 = vpop.f32.mrf.mxu1 }
  0xe3   :  { %v655_v16 = vadd.f32 %v493_v14, %v450_v13  ;;  %v657_v17 = vadd.f32 %v497_v15, %v450_v13 }
  0xe4   :  { %v175_v18 = vpop.f32.mrf.mxu0  ;;  %v191_v19 = vpop.f32.mrf.mxu1 }
  0xe5   :  { %208 = vst [vmem:[%s874_s3 + $0x10] sm:$0xff] %v655_v16  ;;  %212 = vst [vmem:[%s874_s3 + $0x30] sm:$0xff] %v657_v17  ;;  %v667_v20 = vadd.f32 %v450_v13, %v175_v18  ;;  %v669_v21 = vadd.f32 %v450_v13, %v191_v19  ;;  %226 = vmax.xlane.f32.xlu1 %v655_v16 }
  0xe6   :  { %v494_v22 = vpop.f32.mrf.mxu0  ;;  %v498_v23 = vpop.f32.mrf.mxu1 }
  0xe7   :  { %206 = vst [vmem:[%s874_s3] sm:$0xff] %v667_v20  ;;  %210 = vst [vmem:[%s874_s3 + $0x20] sm:$0xff] %v669_v21  ;;  %v680_v24 = vadd.f32 %v494_v22, %v450_v13  ;;  %v682_v25 = vadd.f32 %v498_v23, %v450_v13  ;;  %222 = vmax.xlane.f32.xlu0 %v667_v20 }
  0xe8   :  { %v178_v26 = vpop.f32.mrf.mxu0  ;;  %v194_v27 = vpop.f32.mrf.mxu1 }
  0xe9   :  { %209 = vst [vmem:[%s874_s3 + $0x18] sm:$0xff] %v680_v24  ;;  %213 = vst [vmem:[%s874_s3 + $0x38] sm:$0xff] %v682_v25  ;;  %v693_v28 = vadd.f32 %v450_v13, %v178_v26  ;;  %v695_v29 = vadd.f32 %v450_v13, %v194_v27  ;;  %228 = vmax.xlane.f32.xlu1 %v680_v24 }
  0xeb   :  { %207 = vst [vmem:[%s874_s3 + $0x8] sm:$0xff] %v693_v28  ;;  %211 = vst [vmem:[%s874_s3 + $0x28] sm:$0xff] %v695_v29  ;;  %230 = vmax.xlane.f32.xlu0 %v669_v21 }
  0xed   :  { %232 = vmax.xlane.f32.xlu1 %v695_v29 }
  0xef   :  { %224 = vmax.xlane.f32.xlu0 %v693_v28 }
  0xf1   :  { %236 = vmax.xlane.f32.xlu1 %v682_v25 }
  0xf3   :  { %234 = vmax.xlane.f32.xlu0 %v657_v17 }
 0x16e   :  { %v227_v33 = vpop.xlane.xlu1 %226 }
 0x16f   :  { %v724_v35 = vmax.f32 %v719_v32, %v227_v33 }
 0x170   :  { %v223_v36 = vpop.xlane.xlu0 %222 }
 0x171   :  { %v256_v38 = vsub.f32 %v719_v32, %v724_v35  ;;  %385 = vst.msk [vmem:[#allocation2 + $0x10] sm:$0xff] %vm21_vm0, %v724_v35  ;;  %v733_v39 = vmax.f32 %v721_v34, %v223_v36  ;;  %298 = vperm.xlu1 %519, %v724_v35  }
 0x172   :  { %v229_v40 = vpop.xlane.xlu1 %228 }
 0x173   :  { %v254_v42 = vsub.f32 %v721_v34, %v733_v39  ;;  %383 = vst.msk [vmem:[#allocation2] sm:$0xff] %vm21_vm0, %v733_v39  ;;  %v743_v43 = vmax.f32 %v726_v37, %v229_v40  ;;  %288 = vperm.xlu0 %518, %v733_v39  }
 0x174   :  { %v231_v44 = vpop.xlane.xlu0 %230 }
 0x175   :  { %v257_v46 = vsub.f32 %v726_v37, %v743_v43  ;;  %386 = vst.msk [vmem:[#allocation2 + $0x18] sm:$0xff] %vm21_vm0, %v743_v43  ;;  %v753_v47 = vmax.f32 %v736_v41, %v231_v44  ;;  %v248_v44 = vld [vmem:[#allocation3 + $0x10] sm:$0xff] }
 0x176   :  { %v233_v48 = vpop.xlane.xlu1 %232 }
 0x177   :  { %v258_v50 = vsub.f32 %v736_v41, %v753_v47  ;;  %387 = vst.msk [vmem:[#allocation2 + $0x20] sm:$0xff] %vm21_vm0, %v753_v47  ;;  %v762_v51 = vmax.f32 %v746_v45, %v233_v48  ;;  %v268_v32 = vmul.f32 1.442695, %v257_v46 }
 0x178   :  { %v225_v52 = vpop.xlane.xlu0 %224 }
 0x179   :  { %v259_v54 = vsub.f32 %v746_v45, %v762_v51  ;;  %388 = vst.msk [vmem:[#allocation2 + $0x28] sm:$0xff] %vm21_vm0, %v762_v51  ;;  %v771_v55 = vmax.f32 %v755_v49, %v225_v52  ;;  %v270_v48 = vmul.f32 1.442695, %v258_v50  ;;  %v250_v50 = vld [vmem:[#allocation3 + $0x20] sm:$0xff] }
 0x17a   :  { %v237_v56 = vpop.xlane.xlu1 %236 }
 0x17b   :  { %v255_v58 = vsub.f32 %v755_v49, %v771_v55  ;;  %384 = vst.msk [vmem:[#allocation2 + $0x8] sm:$0xff] %vm21_vm0, %v771_v55  ;;  %v780_v59 = vmax.f32 %v764_v53, %v237_v56  ;;  %v246_v56 = vld [vmem:[#allocation3] sm:$0xff] }
 0x17c   :  { %v235_v60 = vpop.xlane.xlu0 %234 }
 0x17d   :  { %v261_v61 = vsub.f32 %v764_v53, %v780_v59  ;;  %390 = vst.msk [vmem:[#allocation2 + $0x38] sm:$0xff] %vm21_vm0, %v780_v59  ;;  %v787_v62 = vmax.f32 %v773_v57, %v235_v60  ;;  %v264_v41 = vmul.f32 1.442695, %v255_v58 }
 0x17f   :  { %v260_v63 = vsub.f32 %v773_v57, %v787_v62  ;;  %389 = vst.msk [vmem:[#allocation2 + $0x30] sm:$0xff] %vm21_vm0, %v787_v62  ;;  %318 = vperm.xlu1 %519, %v787_v62  }
 0x181   :  { %v274_v37 = vmul.f32 1.442695, %v260_v63 }
 0x183   :  { %308 = vperm.xlu1 %519, %v753_v47   ;;  %v276_v47 = vmul.f32 1.442695, %v261_v61 }
 0x187   :  { %303 = vperm.xlu1 %519, %v743_v43  }
 0x18b   :  { %293 = vperm.xlu1 %519, %v771_v55   ;;  %v249_v55 = vld [vmem:[#allocation3 + $0x18] sm:$0xff] }
 0x18f   :  { %313 = vperm.xlu1 %519, %v762_v51  }
 0x193   :  { %323 = vperm.xlu1 %519, %v780_v59  }
 0x1ec   :  { %v299_v0 = vpop.permute.xlu1 %298 }
 0x1ed   :  { %v328_v1 = vsub.f32 %v655_v16, %v299_v0 }
 0x1ee   :  { %v289_v2 = vpop.permute.xlu0 %288 }
 0x1ef   :  { %v338_v3 = vmul.f32 1.442695, %v328_v1  ;;  %v326_v4 = vsub.f32 %v667_v20, %v289_v2  ;;  %v247_v1 = vld [vmem:[#allocation3 + $0x8] sm:$0xff] }
 0x1f1   :  { %532 = vpow2.f32 %v338_v3  ;;  %v334_v5 = vmul.f32 1.442695, %v326_v4 }
 0x1f3   :  { %534 = vpow2.f32 %v334_v5 }
 0x1fa   :  { %v319_v6 = vpop.permute.xlu1 %318 }
 0x1fb   :  { %v332_v15 = vsub.f32 %v657_v17, %v319_v6  ;;  %v396_v6 = vld [vmem:[#allocation2 + $0x10] sm:$0xff] }
 0x1fd   :  { %v346_v20 = vmul.f32 1.442695, %v332_v15 }
 0x1fe   :  { %v533_v7 = vpop.eup %532  ;;  %v309_v8 = vpop.permute.xlu1 %308 }
 0x1ff   :  { %v330_v9 = vsub.f32 %v669_v21, %v309_v8  ;;  %354 = vadd.xlane.f32.xlu0 %v533_v7  ;;  %v251_v8 = vld [vmem:[#allocation3 + $0x28] sm:$0xff] }
 0x200   :  { %v535_v10 = vpop.eup %534 }
 0x201   :  { %v342_v11 = vmul.f32 1.442695, %v330_v9  ;;  %350 = vadd.xlane.f32.xlu1 %v535_v10  ;;  %v252_v9 = vld [vmem:[#allocation3 + $0x30] sm:$0xff] }
 0x202   :  { %v304_v12 = vpop.permute.xlu1 %303 }
 0x203   :  { %536 = vpow2.f32 %v342_v11  ;;  %v329_v13 = vsub.f32 %v680_v24, %v304_v12 }
 0x205   :  { %v340_v14 = vmul.f32 1.442695, %v329_v13  ;;  %v394_v13 = vld [vmem:[#allocation2] sm:$0xff] }
 0x206   :  { %v294_v16 = vpop.permute.xlu1 %293 }
 0x207   :  { %538 = vpow2.f32 %v340_v14  ;;  %v327_v18 = vsub.f32 %v693_v28, %v294_v16 }
 0x209   :  { %v336_v19 = vmul.f32 1.442695, %v327_v18 }
 0x20a   :  { %v314_v22 = vpop.permute.xlu1 %313 }
 0x20b   :  { %540 = vpow2.f32 %v336_v19  ;;  %v331_v21 = vsub.f32 %v695_v29, %v314_v22  ;;  %v266_v29 = vmul.f32 1.442695, %v256_v38 }
 0x20c   :  { %542 = vpow2.f32 %v346_v20 }
 0x20d   :  { %v344_v23 = vmul.f32 1.442695, %v331_v21  ;;  %v253_v21 = vld [vmem:[#allocation3 + $0x38] sm:$0xff] }
 0x20e   :  { %v324_v26 = vpop.permute.xlu1 %323 }
 0x20f   :  { %544 = vpow2.f32 %v344_v23  ;;  %v333_v27 = vsub.f32 %v682_v25, %v324_v26  ;;  %v262_v25 = vmul.f32 1.442695, %v254_v42  ;;  %v272_v42 = vmul.f32 1.442695, %v259_v54 }
 0x210   :  { %v537_v24 = vpop.eup %536 }
 0x211   :  { %v348_v30 = vmul.f32 1.442695, %v333_v27  ;;  %358 = vadd.xlane.f32.xlu0 %v537_v24 }
 0x213   :  { %546 = vpow2.f32 %v348_v30 }
 0x214   :  { %v539_v17 = vpop.eup %538  ;;  %548 = vpow2.f32 %v266_v29 }
 0x215   :  { %356 = vadd.xlane.f32.xlu1 %v539_v17  ;;  %550 = vpow2.f32 %v262_v25  ;;  %v398_v25 = vld [vmem:[#allocation2 + $0x20] sm:$0xff] }
 0x216   :  { %552 = vpow2.f32 %v270_v48 }
 0x217   :  { %554 = vpow2.f32 %v268_v32 }
 0x218   :  { %v541_v31 = vpop.eup %540  ;;  %556 = vpow2.f32 %v264_v41 }
 0x219   :  { %352 = vadd.xlane.f32.xlu0 %v541_v31  ;;  %v543_v28 = vpop.eup %542  ;;  %558 = vpow2.f32 %v272_v42  ;;  %v399_v42 = vld [vmem:[#allocation2 + $0x28] sm:$0xff] }
 0x21c   :  { %v545_v33 = vpop.eup %544 }
 0x21d   :  { %362 = vadd.xlane.f32.xlu0 %v543_v28  ;;  %360 = vadd.xlane.f32.xlu1 %v545_v33 }
 0x220   :  { %v547_v36 = vpop.eup %546 }
 0x221   :  { %364 = vadd.xlane.f32.xlu1 %v547_v36  ;;  %v549_v40 = vpop.eup %548 }
 0x222   :  { %v551_v52 = vpop.eup %550  ;;  %v280_v60 = vmul.f32 %v549_v40, %v248_v44 }
 0x223   :  { %v278_v34 = vmul.f32 %v551_v52, %v246_v56  ;;  %v553_v49 = vpop.eup %552  ;;  %v397_v56 = vld [vmem:[#allocation2 + $0x18] sm:$0xff] }
 0x224   :  { %v282_v45 = vmul.f32 %v553_v49, %v250_v50  ;;  %v555_v51 = vpop.eup %554 }
 0x225   :  { %v281_v58 = vmul.f32 %v555_v51, %v249_v55  ;;  %v557_v62 = vpop.eup %556 }
 0x226   :  { %v559_v2 = vpop.eup %558  ;;  %v279_v61 = vmul.f32 %v557_v62, %v247_v1 }
 0x227   :  { %v283_v16 = vmul.f32 %v559_v2, %v251_v8 }
 0x288   :  { %v355_v0 = vpop.xlane.xlu0 %354 }
 0x289   :  { %v368_v35 = vadd.f32 %v355_v0, %v280_v60 }
 0x28a   :  { %v351_v38 = vpop.xlane.xlu1 %350 }
 0x28b   :  { %377 = vst.msk [vmem:[#allocation3 + $0x10] sm:$0xff] %vm21_vm0, %v368_v35  ;;  %v366_v39 = vadd.f32 %v351_v38, %v278_v34  ;;  %v395_v35 = vld [vmem:[#allocation2 + $0x8] sm:$0xff] }
 0x28d   :  { %375 = vst.msk [vmem:[#allocation3] sm:$0xff] %vm21_vm0, %v366_v39 }
 0x292   :  { %v404_v43 = vld [vmem:[#allocation3 + $0x10] sm:$0xff] }
 0x293   :  { %560 = vlog2.f32 %v404_v43  ;;  %v400_v43 = vld [vmem:[#allocation2 + $0x30] sm:$0xff] }
 0x294   :  { %562 = vpow2.f32 %v274_v37  ;;  %v402_v46 = vld [vmem:[#allocation3] sm:$0xff] }
 0x295   :  { %564 = vlog2.f32 %v402_v46 }
 0x296   :  { %566 = vpow2.f32 %v276_v47 }
 0x29a   :  { %v359_v54 = vpop.xlane.xlu0 %358 }
 0x29b   :  { %v370_v57 = vadd.f32 %v359_v54, %v282_v45  ;;  %v401_v45 = vld [vmem:[#allocation2 + $0x38] sm:$0xff] }
 0x29d   :  { %379 = vst.msk [vmem:[#allocation3 + $0x20] sm:$0xff] %vm21_vm0, %v370_v57 }
 0x29e   :  { %v357_v63 = vpop.xlane.xlu1 %356 }
 0x29f   :  { %v369_v3 = vadd.f32 %v357_v63, %v281_v58 }
 0x2a0   :  { %v561_v4 = vpop.eup %560 }
 0x2a1   :  { %v563_v53 = vpop.eup %562  ;;  %v415_v59 = vmul.f32 0.6931472, %v561_v4  ;;  %378 = vst.msk [vmem:[#allocation3 + $0x18] sm:$0xff] %vm21_vm0, %v369_v3 }
 0x2a2   :  { %v565_v5 = vpop.eup %564  ;;  %v353_v7 = vpop.xlane.xlu0 %352  ;;  %v284_v18 = vmul.f32 %v563_v53, %v252_v9 }
 0x2a3   :  { %v428_v10 = vadd.f32 %v415_v59, %v396_v6  ;;  %v411_v11 = vmul.f32 0.6931472, %v565_v5  ;;  %v367_v12 = vadd.f32 %v353_v7, %v279_v61  ;;  %v567_v19 = vpop.eup %566 }
 0x2a4   :  { %v406_v14 = vld [vmem:[#allocation3 + $0x20] sm:$0xff]  ;;  %v285_v24 = vmul.f32 %v567_v19, %v253_v21 }
 0x2a5   :  { %436 = vst.msk [vmem:[%s875_s4 + $0x10] sm:$0xff] %vm21_vm0, %v428_v10  ;;  %v426_v15 = vadd.f32 %v411_v11, %v394_v13  ;;  %568 = vlog2.f32 %v406_v14  ;;  %376 = vst.msk [vmem:[#allocation3 + $0x8] sm:$0xff] %vm21_vm0, %v367_v12 }
 0x2a6   :  { %v361_v20 = vpop.xlane.xlu1 %360  ;;  %v363_v22 = vpop.xlane.xlu0 %362 }
 0x2a7   :  { %434 = vst.msk [vmem:[%s875_s4] sm:$0xff] %vm21_vm0, %v426_v15  ;;  %v371_v23 = vadd.f32 %v361_v20, %v283_v16  ;;  %v372_v26 = vadd.f32 %v363_v22, %v284_v18 }
 0x2a8   :  { %v405_v27 = vld [vmem:[#allocation3 + $0x18] sm:$0xff] }
 0x2a9   :  { %570 = vlog2.f32 %v405_v27  ;;  %380 = vst.msk [vmem:[#allocation3 + $0x28] sm:$0xff] %vm21_vm0, %v371_v23  ;;  %381 = vst.msk [vmem:[#allocation3 + $0x30] sm:$0xff] %vm21_vm0, %v372_v26 }
 0x2aa   :  { %v365_v30 = vpop.xlane.xlu1 %364 }
 0x2ab   :  { %v373_v17 = vadd.f32 %v365_v30, %v285_v24 }
 0x2ac   :  { %v403_v31 = vld [vmem:[#allocation3 + $0x8] sm:$0xff] }
 0x2ad   :  { %572 = vlog2.f32 %v403_v31  ;;  %382 = vst.msk [vmem:[#allocation3 + $0x38] sm:$0xff] %vm21_vm0, %v373_v17 }
 0x2b0   :  { %v407_v28 = vld [vmem:[#allocation3 + $0x28] sm:$0xff]  ;;  %v408_v33 = vld [vmem:[#allocation3 + $0x30] sm:$0xff] }
 0x2b1   :  { %574 = vlog2.f32 %v407_v28 }
 0x2b2   :  { %v569_v36 = vpop.eup %568  ;;  %576 = vlog2.f32 %v408_v33 }
 0x2b3   :  { %v419_v29 = vmul.f32 0.6931472, %v569_v36 }
 0x2b4   :  { %v409_v40 = vld [vmem:[#allocation3 + $0x38] sm:$0xff] }
 0x2b5   :  { %v430_v44 = vadd.f32 %v419_v29, %v398_v25  ;;  %578 = vlog2.f32 %v409_v40 }
 0x2b6   :  { %v571_v48 = vpop.eup %570 }
 0x2b7   :  { %438 = vst.msk [vmem:[%s875_s4 + $0x20] sm:$0xff] %vm21_vm0, %v430_v44  ;;  %v417_v52 = vmul.f32 0.6931472, %v571_v48 }
 0x2b9   :  { %v429_v60 = vadd.f32 %v417_v52, %v397_v56 }
 0x2ba   :  { %v573_v0 = vpop.eup %572 }
 0x2bb   :  { %437 = vst.msk [vmem:[%s875_s4 + $0x18] sm:$0xff] %vm21_vm0, %v429_v60  ;;  %v413_v32 = vmul.f32 0.6931472, %v573_v0 }
 0x2bd   :  { %v427_v34 = vadd.f32 %v413_v32, %v395_v35 }
 0x2be   :  { %v575_v38 = vpop.eup %574 }
 0x2bf   :  { %v577_v39 = vpop.eup %576  ;;  %435 = vst.msk [vmem:[%s875_s4 + $0x8] sm:$0xff] %vm21_vm0, %v427_v34  ;;  %v421_v41 = vmul.f32 0.6931472, %v575_v38 }
 0x2c0   :  { %v423_v37 = vmul.f32 0.6931472, %v577_v39 }
 0x2c1   :  { %v431_v46 = vadd.f32 %v421_v41, %v399_v42 }
 0x2c2   :  { %v579_v47 = vpop.eup %578  ;;  %v432_v49 = vadd.f32 %v423_v37, %v400_v43 }
 0x2c3   :  { %439 = vst.msk [vmem:[%s875_s4 + $0x28] sm:$0xff] %vm21_vm0, %v431_v46  ;;  %v425_v50 = vmul.f32 0.6931472, %v579_v47 }
 0x2c4   :  { %440 = vst.msk [vmem:[%s875_s4 + $0x30] sm:$0xff] %vm21_vm0, %v432_v49 }
 0x2c5   :  { %v433_v51 = vadd.f32 %v425_v50, %v401_v45 }
 0x2c7   :  { %441 = vst.msk [vmem:[%s875_s4 + $0x38] sm:$0xff] %vm21_vm0, %v433_v51 }

// kernel: lstm_lm_forward.3
= control target key start
LH: loop header
LB: loop body
LE: loop exit
PB: predicated region body
PF: predicated region fallthrough
CT: control target
= control target key end

     0   :  { %14 = vsyncpa [#allocation6], 0  ;;  %s4353_s0 = inlined_call_operand.vmem [shape: bf16[8,8,128], index: 0, kind: input, shape index: {}]   ;;  %s4354_s1 = inlined_call_operand.hbm [shape: bf16[128,512], index: 1, kind: input, shape index: {}]   ;;  %s4355_s2 = inlined_call_operand.hbm [shape: bf16[128,512], index: 2, kind: input, shape index: {}]   ;;  %s4356_s3 = inlined_call_operand.vmem [shape: f32[1,512], index: 3, kind: input, shape index: {}]   ;;  %s4357_s4 = inlined_call_operand.vmem [shape: f32[8,128], index: 4, kind: input, shape index: {}]   ;;  %s4358_s5 = inlined_call_operand.vmem [shape: f32[8,128], index: 5, kind: input, shape index: {}]   ;;  %s4359_s6 = inlined_call_operand.vmem [shape: bf16[8,8,128], index: 6, kind: output, shape index: {0}]   ;;  %s4360_s7 = inlined_call_operand.vmem [shape: f32[8,128], index: 7, kind: output, shape index: {1}]   ;;  %s4361_s8 = inlined_call_operand.vmem [shape: f32[8,128], index: 8, kind: output, shape index: {2}]  }
   0x1   :  { %15 = vsyncpa [#allocation8], 0  ;;  %s3698_s27 = smov [#allocation5]  }
   0x2   :  { %s23_s28 = sshll.u32 %s3698_s27, 4  ;;  %s24_s28 = int_to_ptr.vmem [resolvable:$true] %s23_s28 }
   0x3   :  { %s3662_s29 = scalar_lea.vmem %s24_s28, 4096  ;;  %p3667_p1 = scmp.lt.s32.totalorder %s24_s28, %s24_s28 }
   0x4   :  { %p3663_p0 = scmp.ne.s32.totalorder %s24_s28, %s3662_s29  ;;  %p3668_p2 = scmp.lt.s32.totalorder %s3662_s29, %s3662_s29 }
   0x6   :  { %p3669_p3 = por %p3668_p2, %p3667_p1 }
   0x8   :  { %p3670_p4 = pnand %p3669_p3, %p3663_p0 }
   0xa   :  { %3673 = shalt.err (!%p3670_p4)
}
   0xb   :  { %s3699_s30 = smov 256   ;;  %s3700_s9 = smov 16  }
   0xc   :  { %29 = dma.hbm_to_vmem [thread:$0]  %s4354_s1, 4096, %s24_s28, [#allocation6], %s3699_s30, %s3699_s30, %s3700_s9  }
   0xd   :  { %s3701_s12 = smov [#allocation7]  }
   0xe   :  { %s35_s13 = sshll.u32 %s3701_s12, 4  ;;  %s36_s13 = int_to_ptr.vmem [resolvable:$true] %s35_s13 }
   0xf   :  { %s3682_s14 = scalar_lea.vmem %s36_s13, 4096  ;;  %p3687_p6 = scmp.lt.s32.totalorder %s36_s13, %s36_s13 }
  0x10   :  { %p3683_p5 = scmp.ne.s32.totalorder %s36_s13, %s3682_s14  ;;  %p3688_p7 = scmp.lt.s32.totalorder %s3682_s14, %s3682_s14 }
  0x12   :  { %p3689_p8 = por %p3688_p7, %p3687_p6 }
  0x14   :  { %p3690_p9 = pnand %p3689_p8, %p3683_p5 }
  0x16   :  { %3693 = shalt.err (!%p3690_p9)
}
  0x17   :  { %41 = dma.hbm_to_vmem [thread:$0]  %s4355_s2, 4096, %s36_s13, [#allocation8], %s3699_s30, %s3699_s30, %s3700_s9  }
  0x18   :  { %3694 = dma.done.wait [#allocation6], 4096  }
  0x19   :  { %3695 = vsyncadd [#allocation6], 4294963200 }
  0x1a   :  { %3696 = dma.done.wait [#allocation8], 4096  }
  0x1b   :  { %3697 = vsyncadd [#allocation8], 4294963200  ;;  %v4362_v0 = vmov 0   ;;  %v3378_v1 = vld [vmem:[#allocation5 + $0xe4] ss:$16 sps:$4 sm:$0xff]   ;;  %v3439_v44 = vld [vmem:[%s4353_s0 + $0x8] sm:$0xff]  }
  0x1c   :  { %341 = vmatprep.mubr.bf16.mxu0 %v4362_v0  ;;  %414 = vmatprep.mubr.bf16.mxu1 %v4362_v0  ;;  %v3380_v2 = vld [vmem:[#allocation5 + $0xec] ss:$16 sps:$4 sm:$0xff]   ;;  %v3382_v3 = vld [vmem:[#allocation5 + $0xe0] ss:$16 sps:$4 sm:$0xff]   ;;  %v3383_v4 = vld [vmem:[#allocation5 + $0xe8] ss:$16 sps:$4 sm:$0xff]  }
  0x1d   :  { %309 = vmatprep.subr.bf16.mxu0 %v3378_v1  ;;  %382 = vmatprep.subr.bf16.mxu1 %v3380_v2  ;;  %v3384_v5 = vld [vmem:[#allocation5 + $0xc4] ss:$16 sps:$4 sm:$0xff]   ;;  %v3386_v6 = vld [vmem:[#allocation5 + $0xcc] ss:$16 sps:$4 sm:$0xff]   ;;  %v3388_v7 = vld [vmem:[#allocation5 + $0xc0] ss:$16 sps:$4 sm:$0xff]  }
  0x1e   :  { %310 = vmatpush1.bf16.msra.mxu0 %v3382_v3  ;;  %383 = vmatpush1.bf16.msra.mxu1 %v3383_v4  ;;  %v3389_v8 = vld [vmem:[#allocation5 + $0xc8] ss:$16 sps:$4 sm:$0xff]   ;;  %v3390_v9 = vld [vmem:[#allocation5 + $0xa4] ss:$16 sps:$4 sm:$0xff]   ;;  %v3392_v10 = vld [vmem:[#allocation5 + $0xac] ss:$16 sps:$4 sm:$0xff]  }
  0x1f   :  { %311 = vmatprep.subr.bf16.mxu0 %v3384_v5  ;;  %384 = vmatprep.subr.bf16.mxu1 %v3386_v6  ;;  %v3394_v11 = vld [vmem:[#allocation5 + $0xa0] ss:$16 sps:$4 sm:$0xff]   ;;  %v3395_v12 = vld [vmem:[#allocation5 + $0xa8] ss:$16 sps:$4 sm:$0xff]   ;;  %v3396_v13 = vld [vmem:[#allocation5 + $0x84] ss:$16 sps:$4 sm:$0xff]  }
  0x20   :  { %v3398_v14 = vld [vmem:[#allocation5 + $0x8c] ss:$16 sps:$4 sm:$0xff]   ;;  %v3400_v15 = vld [vmem:[#allocation5 + $0x80] ss:$16 sps:$4 sm:$0xff]   ;;  %v3401_v16 = vld [vmem:[#allocation5 + $0x88] ss:$16 sps:$4 sm:$0xff]  }
  0x21   :  { %v3402_v17 = vld [vmem:[#allocation5 + $0x64] ss:$16 sps:$4 sm:$0xff]   ;;  %v3404_v18 = vld [vmem:[#allocation5 + $0x6c] ss:$16 sps:$4 sm:$0xff]   ;;  %v3406_v19 = vld [vmem:[#allocation5 + $0x60] ss:$16 sps:$4 sm:$0xff]  }
  0x22   :  { %312 = vmatpush1.bf16.msra.mxu0 %v3388_v7  ;;  %385 = vmatpush1.bf16.msra.mxu1 %v3389_v8  ;;  %v3407_v20 = vld [vmem:[#allocation5 + $0x68] ss:$16 sps:$4 sm:$0xff]   ;;  %v3408_v21 = vld [vmem:[#allocation5 + $0x44] ss:$16 sps:$4 sm:$0xff]   ;;  %v3410_v22 = vld [vmem:[#allocation5 + $0x4c] ss:$16 sps:$4 sm:$0xff]   ;;  %v105_v8 = vlaneseq }
  0x23   :  { %313 = vmatprep.subr.bf16.mxu0 %v3390_v9  ;;  %386 = vmatprep.subr.bf16.mxu1 %v3392_v10  ;;  %v3412_v23 = vld [vmem:[#allocation5 + $0x40] ss:$16 sps:$4 sm:$0xff]   ;;  %v3413_v24 = vld [vmem:[#allocation5 + $0x48] ss:$16 sps:$4 sm:$0xff]   ;;  %v3414_v25 = vld [vmem:[#allocation5 + $0x24] ss:$16 sps:$4 sm:$0xff]  }
  0x24   :  { %v3416_v26 = vld [vmem:[#allocation5 + $0x2c] ss:$16 sps:$4 sm:$0xff]   ;;  %v3418_v27 = vld [vmem:[#allocation5 + $0x20] ss:$16 sps:$4 sm:$0xff]   ;;  %v3419_v28 = vld [vmem:[#allocation5 + $0x28] ss:$16 sps:$4 sm:$0xff]  }
  0x25   :  { %v3420_v29 = vld [vmem:[#allocation5 + $0x4] ss:$16 sps:$4 sm:$0xff]   ;;  %v3422_v30 = vld [vmem:[#allocation5 + $0xc] ss:$16 sps:$4 sm:$0xff]   ;;  %v3424_v31 = vld [vmem:[#allocation5] ss:$16 sps:$4 sm:$0xff]  }
  0x26   :  { %314 = vmatpush1.bf16.msra.mxu0 %v3394_v11  ;;  %387 = vmatpush1.bf16.msra.mxu1 %v3395_v12  ;;  %v3425_v32 = vld [vmem:[#allocation5 + $0x8] ss:$16 sps:$4 sm:$0xff]   ;;  %v3756_v33 = vld [vmem:[#allocation7 + $0xe4] ss:$16 sps:$4 sm:$0xff]   ;;  %v3758_v34 = vld [vmem:[#allocation7 + $0xec] ss:$16 sps:$4 sm:$0xff]  }
  0x27   :  { %315 = vmatprep.subr.bf16.mxu0 %v3396_v13  ;;  %388 = vmatprep.subr.bf16.mxu1 %v3398_v14  ;;  %v3426_v35 = vld [vmem:[%s4353_s0] sm:$0xff]   ;;  %v3765_v37 = vld [vmem:[#allocation7 + $0xe8] ss:$16 sps:$4 sm:$0xff]   ;;  %v3771_v39 = vld [vmem:[#allocation7 + $0xcc] ss:$16 sps:$4 sm:$0xff]   ;;  %v106_v9 = vshrl.u32 %v105_v8, 7 }
  0x28   :  { %v3763_v36 = vld [vmem:[#allocation7 + $0xe0] ss:$16 sps:$4 sm:$0xff]   ;;  %v3769_v38 = vld [vmem:[#allocation7 + $0xc4] ss:$16 sps:$4 sm:$0xff]   ;;  %v3777_v41 = vld [vmem:[#allocation7 + $0xc8] ss:$16 sps:$4 sm:$0xff]  }
  0x29   :  { %v3773_v40 = vld [vmem:[#allocation7 + $0xc0] ss:$16 sps:$4 sm:$0xff]   ;;  %v3781_v42 = vld [vmem:[#allocation7 + $0xa4] ss:$16 sps:$4 sm:$0xff]   ;;  %v3783_v43 = vld [vmem:[#allocation7 + $0xac] ss:$16 sps:$4 sm:$0xff]  }
  0x2a   :  { %316 = vmatpush1.bf16.msra.mxu0 %v3400_v15  ;;  %389 = vmatpush1.bf16.msra.mxu1 %v3401_v16  ;;  %v3790_v45 = vld [vmem:[#allocation7 + $0xa0] ss:$16 sps:$4 sm:$0xff]   ;;  %v3792_v46 = vld [vmem:[#allocation7 + $0xa8] ss:$16 sps:$4 sm:$0xff]   ;;  %v3796_v47 = vld [vmem:[#allocation7 + $0x84] ss:$16 sps:$4 sm:$0xff]  }
  0x2b   :  { %317 = vmatprep.subr.bf16.mxu0 %v3402_v17  ;;  %390 = vmatprep.subr.bf16.mxu1 %v3404_v18  ;;  %v3800_v48 = vld [vmem:[#allocation7 + $0x8c] ss:$16 sps:$4 sm:$0xff]   ;;  %v3802_v49 = vld [vmem:[#allocation7 + $0x80] ss:$16 sps:$4 sm:$0xff]   ;;  %v3804_v50 = vld [vmem:[#allocation7 + $0x88] ss:$16 sps:$4 sm:$0xff]  }
  0x2c   :  { %v3808_v51 = vld [vmem:[#allocation7 + $0x64] ss:$16 sps:$4 sm:$0xff]   ;;  %v3812_v52 = vld [vmem:[#allocation7 + $0x6c] ss:$16 sps:$4 sm:$0xff]   ;;  %v3819_v54 = vld [vmem:[#allocation7 + $0x60] ss:$16 sps:$4 sm:$0xff]  }
  0x2d   :  { %v3452_v53 = vld [vmem:[%s4353_s0 + $0x10] sm:$0xff]   ;;  %v3821_v55 = vld [vmem:[#allocation7 + $0x68] ss:$16 sps:$4 sm:$0xff]   ;;  %v3825_v57 = vld [vmem:[#allocation7 + $0x4c] ss:$16 sps:$4 sm:$0xff]   ;;  %v115_v10 = vsub.s32 2, %v106_v9 }
  0x2e   :  { %318 = vmatpush1.bf16.msra.mxu0 %v3406_v19  ;;  %391 = vmatpush1.bf16.msra.mxu1 %v3407_v20  ;;  %v3823_v56 = vld [vmem:[#allocation7 + $0x44] ss:$16 sps:$4 sm:$0xff]   ;;  %v3831_v58 = vld [vmem:[#allocation7 + $0x40] ss:$16 sps:$4 sm:$0xff]   ;;  %v3833_v59 = vld [vmem:[#allocation7 + $0x48] ss:$16 sps:$4 sm:$0xff]  }
  0x2f   :  { %319 = vmatprep.subr.bf16.mxu0 %v3408_v21  ;;  %392 = vmatprep.subr.bf16.mxu1 %v3410_v22  ;;  %v3835_v60 = vld [vmem:[#allocation7 + $0x24] ss:$16 sps:$4 sm:$0xff]   ;;  %v3837_v61 = vld [vmem:[#allocation7 + $0x2c] ss:$16 sps:$4 sm:$0xff]   ;;  %v3848_v63 = vld [vmem:[#allocation7 + $0x20] ss:$16 sps:$4 sm:$0xff]  }
  0x30   :  { %v3465_v62 = vld [vmem:[%s4353_s0 + $0x18] sm:$0xff]   ;;  %v3852_v2 = vld [vmem:[#allocation7 + $0x4] ss:$16 sps:$4 sm:$0xff]   ;;  %v3862_v4 = vld [vmem:[#allocation7] ss:$16 sps:$4 sm:$0xff]   ;;  %v107_v11 = vsub.s32 0, %v106_v9 }
  0x31   :  { %v3850_v1 = vld [vmem:[#allocation7 + $0x28] ss:$16 sps:$4 sm:$0xff]   ;;  %v3854_v3 = vld [vmem:[#allocation7 + $0xc] ss:$16 sps:$4 sm:$0xff]   ;;  %v59_v6 = vld [vmem:[%s4357_s4] sm:$0xff]  ;;  %v119_v12 = vsub.s32 3, %v106_v9 }
  0x32   :  { %320 = vmatpush1.bf16.msra.mxu0 %v3412_v23  ;;  %393 = vmatpush1.bf16.msra.mxu1 %v3413_v24  ;;  %v3864_v5 = vld [vmem:[#allocation7 + $0x8] ss:$16 sps:$4 sm:$0xff]   ;;  %v495_v7 = vpack.c.bf16 %v59_v6, %v59_v6  ;;  %v103_v13 = vld [vmem:[%s4356_s3] sm:$0xf]  ;;  %v111_v17 = vsub.s32 1, %v106_v9 }
  0x33   :  { %321 = vmatprep.subr.bf16.mxu0 %v3414_v25  ;;  %394 = vmatprep.subr.bf16.mxu1 %v3416_v26  ;;  %v3918_v16 = vrot.slane %v103_v13, %v115_v10  ;;  %v108_v20 = vrot.slane %v103_v13, %v107_v11  ;;  %v3924_v21 = vrot.slane %v103_v13, %v119_v12 }
  0x34   :  { %v112_v24 = vrot.slane %v103_v13, %v111_v17 }
  0x36   :  { %322 = vmatpush1.bf16.msra.mxu0 %v3418_v27  ;;  %395 = vmatpush1.bf16.msra.mxu1 %v3419_v28 }
  0x37   :  { %323 = vmatprep.subr.bf16.mxu0 %v3420_v29  ;;  %396 = vmatprep.subr.bf16.mxu1 %v3422_v30 }
  0x3a   :  { %324 = vmatpush1.bf16.msra.mxu0 %v3424_v31  ;;  %397 = vmatpush1.bf16.msra.mxu1 %v3425_v32 }
  0x3b   :  { %688 = vmatprep.subr.bf16.mxu0 %v3756_v33  ;;  %729 = vmatprep.subr.bf16.mxu1 %v3758_v34 }
  0x3d   :  { %342 = vmatmul.mubr.bf16.vlgmr.msra.gmra.mxu0 %v3426_v35  ;;  %415 = vmatmul.mubr.bf16.vlgmr.msra.gmra.mxu1 %v3426_v35 }
  0x3e   :  { %689 = vmatpush1.bf16.msra.mxu0 %v3763_v36  ;;  %730 = vmatpush1.bf16.msra.mxu1 %v3765_v37 }
  0x3f   :  { %690 = vmatprep.subr.bf16.mxu0 %v3769_v38  ;;  %731 = vmatprep.subr.bf16.mxu1 %v3771_v39 }
  0x40   :  { %351 = vmatprep.mubr.bf16.mxu0 %v4362_v0  ;;  %424 = vmatprep.mubr.bf16.mxu1 %v4362_v0 }
  0x42   :  { %691 = vmatpush1.bf16.msra.mxu0 %v3773_v40  ;;  %732 = vmatpush1.bf16.msra.mxu1 %v3777_v41 }
  0x43   :  { %692 = vmatprep.subr.bf16.mxu0 %v3781_v42  ;;  %733 = vmatprep.subr.bf16.mxu1 %v3783_v43 }
  0x45   :  { %352 = vmatmul.mubr.bf16.gmra.mxu0 %v3439_v44  ;;  %425 = vmatmul.mubr.bf16.gmra.mxu1 %v3439_v44 }
  0x46   :  { %693 = vmatpush1.bf16.msra.mxu0 %v3790_v45  ;;  %734 = vmatpush1.bf16.msra.mxu1 %v3792_v46 }
  0x47   :  { %694 = vmatprep.subr.bf16.mxu0 %v3796_v47  ;;  %735 = vmatprep.subr.bf16.mxu1 %v3800_v48 }
  0x48   :  { %361 = vmatprep.mubr.bf16.mxu0 %v4362_v0  ;;  %434 = vmatprep.mubr.bf16.mxu1 %v4362_v0 }
  0x4a   :  { %695 = vmatpush1.bf16.msra.mxu0 %v3802_v49  ;;  %736 = vmatpush1.bf16.msra.mxu1 %v3804_v50 }
  0x4b   :  { %696 = vmatprep.subr.bf16.mxu0 %v3808_v51  ;;  %737 = vmatprep.subr.bf16.mxu1 %v3812_v52 }
  0x4d   :  { %362 = vmatmul.mubr.bf16.gmra.mxu0 %v3452_v53  ;;  %435 = vmatmul.mubr.bf16.gmra.mxu1 %v3452_v53 }
  0x4e   :  { %697 = vmatpush1.bf16.msra.mxu0 %v3819_v54  ;;  %738 = vmatpush1.bf16.msra.mxu1 %v3821_v55 }
  0x4f   :  { %698 = vmatprep.subr.bf16.mxu0 %v3823_v56  ;;  %739 = vmatprep.subr.bf16.mxu1 %v3825_v57 }
  0x50   :  { %371 = vmatprep.mubr.bf16.mxu0 %v4362_v0  ;;  %444 = vmatprep.mubr.bf16.mxu1 %v4362_v0 }
  0x52   :  { %699 = vmatpush1.bf16.msra.mxu0 %v3831_v58  ;;  %740 = vmatpush1.bf16.msra.mxu1 %v3833_v59 }
  0x53   :  { %700 = vmatprep.subr.bf16.mxu0 %v3835_v60  ;;  %741 = vmatprep.subr.bf16.mxu1 %v3837_v61 }
  0x55   :  { %372 = vmatmul.mubr.bf16.gmra.mxu0 %v3465_v62  ;;  %445 = vmatmul.mubr.bf16.gmra.mxu1 %v3465_v62 }
  0x56   :  { %701 = vmatpush1.bf16.msra.mxu0 %v3848_v63  ;;  %742 = vmatpush1.bf16.msra.mxu1 %v3850_v1 }
  0x57   :  { %702 = vmatprep.subr.bf16.mxu0 %v3852_v2  ;;  %743 = vmatprep.subr.bf16.mxu1 %v3854_v3 }
  0x58   :  { %720 = vmatprep.mubr.bf16.mxu0 %v4362_v0  ;;  %761 = vmatprep.mubr.bf16.mxu1 %v4362_v0 }
  0x5a   :  { %703 = vmatpush1.bf16.msra.mxu0 %v3862_v4  ;;  %744 = vmatpush1.bf16.msra.mxu1 %v3864_v5 }
  0x5b   :  { %1004 = vmatprep.subr.bf16.mxu0 %v3756_v33  ;;  %1045 = vmatprep.subr.bf16.mxu1 %v3758_v34 }
  0x5d   :  { %721 = vmatmul.mubr.bf16.vlgmr.msra.gmra.mxu0 %v495_v7  ;;  %762 = vmatmul.mubr.bf16.vlgmr.msra.gmra.mxu1 %v495_v7 }
  0x5e   :  { %1005 = vmatpush1.bf16.msra.mxu0 %v3763_v36  ;;  %1046 = vmatpush1.bf16.msra.mxu1 %v3765_v37 }
  0x5f   :  { %1006 = vmatprep.subr.bf16.mxu0 %v3769_v38  ;;  %1047 = vmatprep.subr.bf16.mxu1 %v3771_v39 }
  0x60   :  { %1036 = vmatprep.mubr.bf16.mxu0 %v4362_v0  ;;  %1077 = vmatprep.mubr.bf16.mxu1 %v4362_v0 }
  0x62   :  { %1007 = vmatpush1.bf16.msra.mxu0 %v3773_v40  ;;  %1048 = vmatpush1.bf16.msra.mxu1 %v3777_v41 }
  0x63   :  { %1008 = vmatprep.subr.bf16.mxu0 %v3781_v42  ;;  %1049 = vmatprep.subr.bf16.mxu1 %v3783_v43 }
  0x66   :  { %1009 = vmatpush1.bf16.msra.mxu0 %v3790_v45  ;;  %1050 = vmatpush1.bf16.msra.mxu1 %v3792_v46 }
  0x67   :  { %1010 = vmatprep.subr.bf16.mxu0 %v3796_v47  ;;  %1051 = vmatprep.subr.bf16.mxu1 %v3800_v48 }
  0x6a   :  { %1011 = vmatpush1.bf16.msra.mxu0 %v3802_v49  ;;  %1052 = vmatpush1.bf16.msra.mxu1 %v3804_v50 }
  0x6b   :  { %1012 = vmatprep.subr.bf16.mxu0 %v3808_v51  ;;  %1053 = vmatprep.subr.bf16.mxu1 %v3812_v52 }
  0x6e   :  { %1013 = vmatpush1.bf16.msra.mxu0 %v3819_v54  ;;  %1054 = vmatpush1.bf16.msra.mxu1 %v3821_v55 }
  0x6f   :  { %1014 = vmatprep.subr.bf16.mxu0 %v3823_v56  ;;  %1055 = vmatprep.subr.bf16.mxu1 %v3825_v57 }
  0x72   :  { %1015 = vmatpush1.bf16.msra.mxu0 %v3831_v58  ;;  %1056 = vmatpush1.bf16.msra.mxu1 %v3833_v59 }
  0x73   :  { %1016 = vmatprep.subr.bf16.mxu0 %v3835_v60  ;;  %1057 = vmatprep.subr.bf16.mxu1 %v3837_v61 }
  0x76   :  { %1017 = vmatpush1.bf16.msra.mxu0 %v3848_v63  ;;  %1058 = vmatpush1.bf16.msra.mxu1 %v3850_v1 }
  0x77   :  { %1018 = vmatprep.subr.bf16.mxu0 %v3852_v2  ;;  %1059 = vmatprep.subr.bf16.mxu1 %v3854_v3 }
  0x7a   :  { %1019 = vmatpush1.bf16.msra.mxu0 %v3862_v4  ;;  %1060 = vmatpush1.bf16.msra.mxu1 %v3864_v5 }
  0x7b   :  { %1321 = vmatprep.subr.bf16.mxu0 %v3756_v33  ;;  %1362 = vmatprep.subr.bf16.mxu1 %v3758_v34 }
  0xfd   :  { %v3914_v14 = vpop.f32.mrf.mxu0  ;;  %v3916_v15 = vpop.f32.mrf.mxu1 }
  0xff   :  { %v3920_v18 = vpop.f32.mrf.mxu0  ;;  %v3922_v19 = vpop.f32.mrf.mxu1 }
 0x101   :  { %v347_v22 = vpop.f32.mrf.mxu0  ;;  %v420_v23 = vpop.f32.mrf.mxu1 }
 0x102   :  { %v3926_v25 = vadd.f32 %v347_v22, %v108_v20  ;;  %v3929_v26 = vadd.f32 %v420_v23, %v3918_v16 }
 0x103   :  { %v349_v27 = vpop.f32.mrf.mxu0  ;;  %v422_v28 = vpop.f32.mrf.mxu1 }
 0x104   :  { %v3931_v29 = vadd.f32 %v349_v27, %v112_v24  ;;  %v3934_v30 = vadd.f32 %v422_v28, %v3924_v21 }
 0x105   :  { %v353_v31 = vpop.f32.mrf.mxu0  ;;  %v426_v32 = vpop.f32.mrf.mxu1 }
 0x106   :  { %v3936_v35 = vadd.f32 %v353_v31, %v108_v20  ;;  %v3939_v44 = vadd.f32 %v426_v32, %v3918_v16 }
 0x107   :  { %v355_v53 = vpop.f32.mrf.mxu0  ;;  %v428_v62 = vpop.f32.mrf.mxu1 }
 0x108   :  { %4364 = vst [vmem:[#allocation11_spill] sm:$0xff] %v3939_v44  ;;  %v3941_v6 = vadd.f32 %v355_v53, %v112_v24  ;;  %v3944_v7 = vadd.f32 %v428_v62, %v3924_v21 }
 0x109   :  { %v357_v8 = vpop.f32.mrf.mxu0  ;;  %v430_v9 = vpop.f32.mrf.mxu1 }
 0x10a   :  { %v3946_v10 = vadd.f32 %v357_v8, %v108_v20  ;;  %v3949_v11 = vadd.f32 %v430_v9, %v3918_v16 }
 0x10b   :  { %v359_v12 = vpop.f32.mrf.mxu0  ;;  %v432_v13 = vpop.f32.mrf.mxu1 }
 0x10c   :  { %4365 = vst [vmem:[#allocation12_spill] sm:$0xff] %v3946_v10  ;;  %4366 = vst [vmem:[#allocation13_spill] sm:$0xff] %v3949_v11  ;;  %v3951_v17 = vadd.f32 %v359_v12, %v112_v24  ;;  %v3954_v22 = vadd.f32 %v432_v13, %v3924_v21 }
 0x10d   :  { %v363_v23 = vpop.f32.mrf.mxu0  ;;  %v436_v27 = vpop.f32.mrf.mxu1 }
 0x10e   :  { %4367 = vst [vmem:[#allocation14_spill] sm:$0xff] %v3951_v17  ;;  %4368 = vst [vmem:[#allocation15_spill] sm:$0xff] %v3954_v22  ;;  %v3956_v28 = vadd.f32 %v363_v23, %v108_v20  ;;  %v3959_v31 = vadd.f32 %v436_v27, %v3918_v16 }
 0x10f   :  { %v365_v32 = vpop.f32.mrf.mxu0  ;;  %v438_v53 = vpop.f32.mrf.mxu1 }
 0x110   :  { %4369 = vst [vmem:[#allocation16_spill] sm:$0xff] %v3956_v28  ;;  %4370 = vst [vmem:[#allocation17_spill] sm:$0xff] %v3959_v31  ;;  %v3961_v62 = vadd.f32 %v365_v32, %v112_v24  ;;  %v3964_v8 = vadd.f32 %v438_v53, %v3924_v21 }
 0x111   :  { %v367_v9 = vpop.f32.mrf.mxu0  ;;  %v440_v12 = vpop.f32.mrf.mxu1 }
 0x112   :  { %4371 = vst [vmem:[#allocation18_spill] sm:$0xff] %v3961_v62  ;;  %4372 = vst [vmem:[#allocation19_spill] sm:$0xff] %v3964_v8  ;;  %v3966_v0 = vadd.f32 %v367_v9, %v108_v20  ;;  %v3969_v13 = vadd.f32 %v440_v12, %v3918_v16 }
 0x113   :  { %v369_v11 = vpop.f32.mrf.mxu0  ;;  %v442_v23 = vpop.f32.mrf.mxu1 }
 0x114   :  { %4373 = vst [vmem:[#allocation20_spill] sm:$0xff] %v3966_v0  ;;  %4374 = vst [vmem:[#allocation21_spill] sm:$0xff] %v3969_v13  ;;  %v3971_v28 = vadd.f32 %v369_v11, %v112_v24  ;;  %v3974_v27 = vadd.f32 %v442_v23, %v3924_v21 }
 0x115   :  { %v373_v31 = vpop.f32.mrf.mxu0  ;;  %v446_v32 = vpop.f32.mrf.mxu1 }
 0x116   :  { %4375 = vst [vmem:[#allocation22_spill] sm:$0xff] %v3971_v28  ;;  %4376 = vst [vmem:[#allocation23_spill] sm:$0xff] %v3974_v27  ;;  %v3976_v62 = vadd.f32 %v373_v31, %v108_v20  ;;  %v3979_v53 = vadd.f32 %v446_v32, %v3918_v16 }
 0x117   :  { %v375_v8 = vpop.f32.mrf.mxu0  ;;  %v448_v9 = vpop.f32.mrf.mxu1 }
 0x118   :  { %4377 = vst [vmem:[#allocation24_spill] sm:$0xff] %v3976_v62  ;;  %4378 = vst [vmem:[#allocation25_spill] sm:$0xff] %v3979_v53  ;;  %v3981_v0 = vadd.f32 %v375_v8, %v112_v24  ;;  %v3984_v12 = vadd.f32 %v448_v9, %v3924_v21  ;;  %v344_v62 = vadd.f32 %v3914_v14, %v108_v20 }
 0x119   :  { %v377_v13 = vpop.f32.mrf.mxu0  ;;  %v450_v11 = vpop.f32.mrf.mxu1  ;;  %v346_v9 = vadd.f32 %v3920_v18, %v112_v24 }
 0x11a   :  { %4379 = vst [vmem:[#allocation26_spill] sm:$0xff] %v3981_v0  ;;  %4380 = vst [vmem:[#allocation27_spill] sm:$0xff] %v3984_v12  ;;  %v3986_v28 = vadd.f32 %v377_v13, %v108_v20  ;;  %v3989_v23 = vadd.f32 %v450_v11, %v3918_v16  ;;  %v419_v20 = vadd.f32 %v3922_v19, %v3924_v21  ;;  %v61_v19 = vld [vmem:[%s4358_s5] sm:$0xff] }
 0x11b   :  { %v379_v27 = vpop.f32.mrf.mxu0  ;;  %v452_v31 = vpop.f32.mrf.mxu1 }
 0x11c   :  { %4381 = vst [vmem:[#allocation28_spill] sm:$0xff] %v3986_v28  ;;  %4382 = vst [vmem:[#allocation29_spill] sm:$0xff] %v3989_v23  ;;  %v3992_v32 = vadd.f32 %v379_v27, %v112_v24  ;;  %v3995_v53 = vadd.f32 %v452_v31, %v3924_v21  ;;  %v417_v31 = vadd.f32 %v3916_v15, %v3918_v16 }
 0x11d   :  { %v722_v8 = vpop.f32.mrf.mxu0  ;;  %v763_v0 = vpop.f32.mrf.mxu1 }
 0x11e   :  { %v770_v12 = vadd.f32 %v722_v8, %v344_v62  ;;  %v772_v62 = vadd.f32 %v763_v0, %v417_v31 }
 0x11f   :  { %v724_v22 = vpop.f32.mrf.mxu0  ;;  %v765_v13 = vpop.f32.mrf.mxu1 }
 0x120   :  { %v3118_v28 = vmul.f32 -1.442695, %v770_v12  ;;  %v771_v17 = vadd.f32 %v724_v22, %v346_v9  ;;  %v773_v27 = vadd.f32 %v765_v13, %v419_v20 }
 0x121   :  { %v726_v11 = vpop.f32.mrf.mxu0  ;;  %v767_v23 = vpop.f32.mrf.mxu1 }
 0x122   :  { %3526 = vpow2.f32 %v3118_v28  ;;  %v3119_v10 = vmul.f32 -1.442695, %v771_v17  ;;  %v3120_v18 = vmul.f32 -1.442695, %v773_v27 }
 0x123   :  { %v727_v44 = vpop.f32.mrf.mxu0  ;;  %v768_v14 = vpop.f32.mrf.mxu1 }
 0x124   :  { %3528 = vpow2.f32 %v3119_v10  ;;  %v4383_v14 = vmov 0  }
 0x125   :  { %3530 = vpow2.f32 %v3120_v18 }
 0x12f   :  { %v3527_v24 = vpop.eup %3526 }
 0x130   :  { %v777_v8 = vadd.f32 1.0, %v3527_v24 }
 0x131   :  { %v3529_v12 = vpop.eup %3528 }
 0x132   :  { %3532 = vrcp.f32 %v777_v8  ;;  %v783_v22 = vadd.f32 1.0, %v3529_v12  ;;  %v3531_v44 = vpop.eup %3530 }
 0x133   :  { %3534 = vtanh.f32 %v772_v62  ;;  %v790_v28 = vadd.f32 1.0, %v3531_v44 }
 0x134   :  { %3536 = vrcp.f32 %v783_v22 }
 0x135   :  { %3538 = vrcp.f32 %v790_v28 }
 0x13f   :  { %v3533_v17 = vpop.eup %3532 }
 0x140   :  { %v3535_v21 = vpop.eup %3534 }
 0x141   :  { %v3537_v10 = vpop.eup %3536  ;;  %v795_v15 = vmul.f32 %v3535_v21, %v3533_v17 }
 0x142   :  { %v794_v16 = vmul.f32 %v3537_v10, %v61_v19  ;;  %v3539_v0 = vpop.eup %3538 }
 0x144   :  { %v4005_v23 = vadd.f32 %v795_v15, %v794_v16 }
 0x146   :  { %3540 = vtanh.f32 %v4005_v23 }
 0x153   :  { %v3541_v9 = vpop.eup %3540 }
 0x154   :  { %v798_v13 = vmul.f32 %v3541_v9, %v3539_v0 }
 0x156   :  { %v801_v11 = vpack.c.bf16 %v798_v13, %v798_v13 }
 0x158   :  { %802 = vst [vmem:[%s4359_s6] sm:$0xf] %v801_v11  ;;  %1037 = vmatmul.mubr.bf16.vlgmr.msra.gmra.mxu0 %v801_v11  ;;  %1078 = vmatmul.mubr.bf16.vlgmr.msra.gmra.mxu1 %v801_v11 }
 0x159   :  { %1322 = vmatpush1.bf16.msra.mxu0 %v3763_v36  ;;  %1363 = vmatpush1.bf16.msra.mxu1 %v3765_v37 }
 0x15a   :  { %1323 = vmatprep.subr.bf16.mxu0 %v3769_v38  ;;  %1364 = vmatprep.subr.bf16.mxu1 %v3771_v39 }
 0x15b   :  { %1353 = vmatprep.mubr.bf16.mxu0 %v4383_v14  ;;  %1394 = vmatprep.mubr.bf16.mxu1 %v4383_v14 }
 0x15d   :  { %1324 = vmatpush1.bf16.msra.mxu0 %v3773_v40  ;;  %1365 = vmatpush1.bf16.msra.mxu1 %v3777_v41 }
 0x15e   :  { %1325 = vmatprep.subr.bf16.mxu0 %v3781_v42  ;;  %1366 = vmatprep.subr.bf16.mxu1 %v3783_v43 }
 0x161   :  { %1326 = vmatpush1.bf16.msra.mxu0 %v3790_v45  ;;  %1367 = vmatpush1.bf16.msra.mxu1 %v3792_v46 }
 0x162   :  { %1327 = vmatprep.subr.bf16.mxu0 %v3796_v47  ;;  %1368 = vmatprep.subr.bf16.mxu1 %v3800_v48 }
 0x165   :  { %1328 = vmatpush1.bf16.msra.mxu0 %v3802_v49  ;;  %1369 = vmatpush1.bf16.msra.mxu1 %v3804_v50 }
 0x166   :  { %1329 = vmatprep.subr.bf16.mxu0 %v3808_v51  ;;  %1370 = vmatprep.subr.bf16.mxu1 %v3812_v52 }
 0x169   :  { %1330 = vmatpush1.bf16.msra.mxu0 %v3819_v54  ;;  %1371 = vmatpush1.bf16.msra.mxu1 %v3821_v55 }
 0x16a   :  { %1331 = vmatprep.subr.bf16.mxu0 %v3823_v56  ;;  %1372 = vmatprep.subr.bf16.mxu1 %v3825_v57 }
 0x16d   :  { %1332 = vmatpush1.bf16.msra.mxu0 %v3831_v58  ;;  %1373 = vmatpush1.bf16.msra.mxu1 %v3833_v59 }
 0x16e   :  { %1333 = vmatprep.subr.bf16.mxu0 %v3835_v60  ;;  %1374 = vmatprep.subr.bf16.mxu1 %v3837_v61 }
 0x171   :  { %1334 = vmatpush1.bf16.msra.mxu0 %v3848_v63  ;;  %1375 = vmatpush1.bf16.msra.mxu1 %v3850_v1 }
 0x172   :  { %1335 = vmatprep.subr.bf16.mxu0 %v3852_v2  ;;  %1376 = vmatprep.subr.bf16.mxu1 %v3854_v3 }
 0x175   :  { %1336 = vmatpush1.bf16.msra.mxu0 %v3862_v4  ;;  %1377 = vmatpush1.bf16.msra.mxu1 %v3864_v5 }
 0x176   :  { %1638 = vmatprep.subr.bf16.mxu0 %v3756_v33  ;;  %1679 = vmatprep.subr.bf16.mxu1 %v3758_v34 }
 0x218   :  { %v1038_v20 = vpop.f32.mrf.mxu0  ;;  %v1079_v27 = vpop.f32.mrf.mxu1 }
 0x219   :  { %v1086_v31 = vadd.f32 %v1038_v20, %v3926_v25  ;;  %v1088_v34 = vadd.f32 %v1079_v27, %v3929_v26 }
 0x21a   :  { %v1040_v18 = vpop.f32.mrf.mxu0  ;;  %v1081_v24 = vpop.f32.mrf.mxu1 }
 0x21b   :  { %v3153_v62 = vmul.f32 -1.442695, %v1086_v31  ;;  %v1087_v8 = vadd.f32 %v1040_v18, %v3931_v29  ;;  %v1089_v33 = vadd.f32 %v1081_v24, %v3934_v30  ;;  %v4105_v24 = vld [vmem:[#allocation7 + $0xe0] ss:$16 sps:$4 sm:$0xff]  }
 0x21c   :  { %v1042_v12 = vpop.f32.mrf.mxu0  ;;  %v1083_v22 = vpop.f32.mrf.mxu1 }
 0x21d   :  { %3542 = vpow2.f32 %v3153_v62  ;;  %v3154_v44 = vmul.f32 -1.442695, %v1087_v8  ;;  %v3155_v21 = vmul.f32 -1.442695, %v1089_v33  ;;  %v4107_v62 = vld [vmem:[#allocation7 + $0xe8] ss:$16 sps:$4 sm:$0xff]  }
 0x21e   :  { %v1043_v17 = vpop.f32.mrf.mxu0  ;;  %v1084_v19 = vpop.f32.mrf.mxu1  ;;  %v4113_v8 = vld [vmem:[#allocation7 + $0xc4] ss:$16 sps:$4 sm:$0xff]   ;;  %v4115_v12 = vld [vmem:[#allocation7 + $0xcc] ss:$16 sps:$4 sm:$0xff]   ;;  %v4117_v22 = vld [vmem:[#allocation7 + $0xc0] ss:$16 sps:$4 sm:$0xff]  }
 0x21f   :  { %3544 = vpow2.f32 %v3154_v44  ;;  %v4119_v44 = vld [vmem:[#allocation7 + $0xc8] ss:$16 sps:$4 sm:$0xff]   ;;  %v4125_v17 = vld [vmem:[#allocation7 + $0xa4] ss:$16 sps:$4 sm:$0xff]   ;;  %v4127_v19 = vld [vmem:[#allocation7 + $0xac] ss:$16 sps:$4 sm:$0xff]  }
 0x220   :  { %3546 = vtanh.f32 %v1088_v34  ;;  %v4129_v33 = vld [vmem:[#allocation7 + $0xa0] ss:$16 sps:$4 sm:$0xff]   ;;  %v4131_v34 = vld [vmem:[#allocation7 + $0xa8] ss:$16 sps:$4 sm:$0xff]  }
 0x221   :  { %3548 = vpow2.f32 %v3155_v21  ;;  %v4137_v21 = vld [vmem:[#allocation7 + $0x84] ss:$16 sps:$4 sm:$0xff]  }
 0x22a   :  { %v3543_v10 = vpop.eup %3542 }
 0x22b   :  { %v1093_v28 = vadd.f32 1.0, %v3543_v10  ;;  %v4139_v10 = vld [vmem:[#allocation7 + $0x8c] ss:$16 sps:$4 sm:$0xff]  }
 0x22c   :  { %v3545_v25 = vpop.eup %3544 }
 0x22d   :  { %3550 = vrcp.f32 %v1093_v28  ;;  %v1099_v15 = vadd.f32 1.0, %v3545_v25  ;;  %v3547_v29 = vpop.eup %3546  ;;  %v4141_v28 = vld [vmem:[#allocation7 + $0x80] ss:$16 sps:$4 sm:$0xff]   ;;  %v4143_v25 = vld [vmem:[#allocation7 + $0x88] ss:$16 sps:$4 sm:$0xff]  }
 0x22e   :  { %v3549_v16 = vpop.eup %3548 }
 0x22f   :  { %3552 = vrcp.f32 %v1099_v15  ;;  %v1106_v11 = vadd.f32 1.0, %v3549_v16  ;;  %v4147_v15 = vld [vmem:[#allocation7 + $0x64] ss:$16 sps:$4 sm:$0xff]   ;;  %v4153_v16 = vld [vmem:[#allocation7 + $0x60] ss:$16 sps:$4 sm:$0xff]  }
 0x231   :  { %3554 = vrcp.f32 %v1106_v11  ;;  %v4165_v11 = vld [vmem:[#allocation7 + $0x40] ss:$16 sps:$4 sm:$0xff]  }
 0x23a   :  { %v3551_v0 = vpop.eup %3550 }
 0x23b   :  { %v1111_v9 = vmul.f32 %v3551_v0, %v3547_v29  ;;  %v4149_v29 = vld [vmem:[#allocation7 + $0x6c] ss:$16 sps:$4 sm:$0xff]   ;;  %v4155_v0 = vld [vmem:[#allocation7 + $0x68] ss:$16 sps:$4 sm:$0xff]  }
 0x23c   :  { %v3553_v13 = vpop.eup %3552 }
 0x23d   :  { %v1110_v20 = vmul.f32 %v3553_v13, %v4005_v23  ;;  %v4103_v23 = vld [vmem:[#allocation7 + $0xec] ss:$16 sps:$4 sm:$0xff]  }
 0x23e   :  { %v3555_v26 = vpop.eup %3554  ;;  %v4161_v13 = vld [vmem:[#allocation7 + $0x4c] ss:$16 sps:$4 sm:$0xff]  }
 0x23f   :  { %v4050_v30 = vadd.f32 %v1111_v9, %v1110_v20  ;;  %v4159_v9 = vld [vmem:[#allocation7 + $0x44] ss:$16 sps:$4 sm:$0xff]   ;;  %v4167_v20 = vld [vmem:[#allocation7 + $0x48] ss:$16 sps:$4 sm:$0xff]  }
 0x241   :  { %3556 = vtanh.f32 %v4050_v30 }
 0x24e   :  { %v3557_v27 = vpop.eup %3556 }
 0x24f   :  { %v1114_v31 = vmul.f32 %v3557_v27, %v3555_v26  ;;  %v4173_v26 = vld [vmem:[#allocation7 + $0x2c] ss:$16 sps:$4 sm:$0xff]   ;;  %v4177_v27 = vld [vmem:[#allocation7 + $0x20] ss:$16 sps:$4 sm:$0xff]  }
 0x251   :  { %v1117_v18 = vpack.c.bf16 %v1114_v31, %v1114_v31  ;;  %v4179_v31 = vld [vmem:[#allocation7 + $0x28] ss:$16 sps:$4 sm:$0xff]  }
 0x253   :  { %3156 = vst [vmem:[%s4359_s6 + $0x4] sm:$0xf] %v1117_v18  ;;  %1354 = vmatmul.mubr.bf16.vlgmr.msra.gmra.mxu0 %v1117_v18  ;;  %1395 = vmatmul.mubr.bf16.vlgmr.msra.gmra.mxu1 %v1117_v18  ;;  %v4183_v18 = vld [vmem:[#allocation7 + $0x4] ss:$16 sps:$4 sm:$0xff]  }
 0x254   :  { %1639 = vmatpush1.bf16.msra.mxu0 %v3763_v36  ;;  %1680 = vmatpush1.bf16.msra.mxu1 %v3765_v37 }
 0x255   :  { %1640 = vmatprep.subr.bf16.mxu0 %v3769_v38  ;;  %1681 = vmatprep.subr.bf16.mxu1 %v3771_v39 }
 0x256   :  { %1670 = vmatprep.mubr.bf16.mxu0 %v4383_v14  ;;  %1711 = vmatprep.mubr.bf16.mxu1 %v4383_v14 }
 0x258   :  { %1641 = vmatpush1.bf16.msra.mxu0 %v3773_v40  ;;  %1682 = vmatpush1.bf16.msra.mxu1 %v3777_v41 }
 0x259   :  { %1642 = vmatprep.subr.bf16.mxu0 %v3781_v42  ;;  %1683 = vmatprep.subr.bf16.mxu1 %v3783_v43 }
 0x25c   :  { %1643 = vmatpush1.bf16.msra.mxu0 %v3790_v45  ;;  %1684 = vmatpush1.bf16.msra.mxu1 %v3792_v46 }
 0x25d   :  { %1644 = vmatprep.subr.bf16.mxu0 %v3796_v47  ;;  %1685 = vmatprep.subr.bf16.mxu1 %v3800_v48 }
 0x260   :  { %1645 = vmatpush1.bf16.msra.mxu0 %v3802_v49  ;;  %1686 = vmatpush1.bf16.msra.mxu1 %v3804_v50  ;;  %v4384_v50 = vld [vmem:[#allocation11_spill] sm:$0xff] }
 0x261   :  { %1646 = vmatprep.subr.bf16.mxu0 %v3808_v51  ;;  %1687 = vmatprep.subr.bf16.mxu1 %v3812_v52 }
 0x264   :  { %1647 = vmatpush1.bf16.msra.mxu0 %v3819_v54  ;;  %1688 = vmatpush1.bf16.msra.mxu1 %v3821_v55 }
 0x265   :  { %1648 = vmatprep.subr.bf16.mxu0 %v3823_v56  ;;  %1689 = vmatprep.subr.bf16.mxu1 %v3825_v57 }
 0x268   :  { %1649 = vmatpush1.bf16.msra.mxu0 %v3831_v58  ;;  %1690 = vmatpush1.bf16.msra.mxu1 %v3833_v59 }
 0x269   :  { %1650 = vmatprep.subr.bf16.mxu0 %v3835_v60  ;;  %1691 = vmatprep.subr.bf16.mxu1 %v3837_v61 }
 0x26c   :  { %1651 = vmatpush1.bf16.msra.mxu0 %v3848_v63  ;;  %1692 = vmatpush1.bf16.msra.mxu1 %v3850_v1 }
 0x26d   :  { %1652 = vmatprep.subr.bf16.mxu0 %v3852_v2  ;;  %1693 = vmatprep.subr.bf16.mxu1 %v3854_v3 }
 0x270   :  { %1653 = vmatpush1.bf16.msra.mxu0 %v3862_v4  ;;  %1694 = vmatpush1.bf16.msra.mxu1 %v3864_v5 }
 0x271   :  { %1996 = vmatprep.subr.bf16.mxu1 %v4103_v23 }
 0x313   :  { %v1355_v36 = vpop.f32.mrf.mxu0  ;;  %v1396_v37 = vpop.f32.mrf.mxu1 }
 0x314   :  { %v1403_v38 = vadd.f32 %v1355_v36, %v3936_v35  ;;  %v1405_v51 = vadd.f32 %v1396_v37, %v4384_v50  ;;  %v4185_v36 = vld [vmem:[#allocation7 + $0xc] ss:$16 sps:$4 sm:$0xff]   ;;  %v4189_v37 = vld [vmem:[#allocation7] ss:$16 sps:$4 sm:$0xff]  }
 0x315   :  { %v1357_v39 = vpop.f32.mrf.mxu0  ;;  %v1398_v40 = vpop.f32.mrf.mxu1 }
 0x316   :  { %v3189_v41 = vmul.f32 -1.442695, %v1403_v38  ;;  %v1404_v42 = vadd.f32 %v1357_v39, %v3941_v6  ;;  %v1406_v49 = vadd.f32 %v1398_v40, %v3944_v7  ;;  %v4101_v7 = vld [vmem:[#allocation7 + $0xe4] ss:$16 sps:$4 sm:$0xff]   ;;  %v4191_v38 = vld [vmem:[#allocation7 + $0x8] ss:$16 sps:$4 sm:$0xff]  }
 0x317   :  { %v1359_v43 = vpop.f32.mrf.mxu0  ;;  %v1400_v45 = vpop.f32.mrf.mxu1  ;;  %1955 = vmatprep.subr.bf16.mxu0 %v4101_v7 }
 0x318   :  { %3558 = vpow2.f32 %v3189_v41  ;;  %v3190_v46 = vmul.f32 -1.442695, %v1404_v42  ;;  %v3191_v52 = vmul.f32 -1.442695, %v1406_v49  ;;  %v4385_v41 = vld [vmem:[#allocation12_spill] sm:$0xff] }
 0x319   :  { %v1360_v47 = vpop.f32.mrf.mxu0  ;;  %v1401_v48 = vpop.f32.mrf.mxu1 }
 0x31a   :  { %3560 = vpow2.f32 %v3190_v46  ;;  %v4386_v47 = vld [vmem:[#allocation14_spill] sm:$0xff] }
 0x31b   :  { %3562 = vtanh.f32 %v1405_v51 }
 0x31c   :  { %3564 = vpow2.f32 %v3191_v52 }
 0x325   :  { %v3559_v54 = vpop.eup %3558 }
 0x326   :  { %v1410_v55 = vadd.f32 1.0, %v3559_v54 }
 0x327   :  { %v3561_v56 = vpop.eup %3560 }
 0x328   :  { %3566 = vrcp.f32 %v1410_v55  ;;  %v1416_v57 = vadd.f32 1.0, %v3561_v56  ;;  %v3563_v58 = vpop.eup %3562  ;;  %v4387_v55 = vld [vmem:[#allocation15_spill] sm:$0xff] }
 0x329   :  { %v3565_v59 = vpop.eup %3564 }
 0x32a   :  { %3568 = vrcp.f32 %v1416_v57  ;;  %v1423_v1 = vadd.f32 1.0, %v3565_v59  ;;  %v4388_v57 = vld [vmem:[#allocation13_spill] sm:$0xff] }
 0x32c   :  { %3570 = vrcp.f32 %v1423_v1 }
 0x335   :  { %v3567_v60 = vpop.eup %3566 }
 0x336   :  { %v1428_v61 = vmul.f32 %v3567_v60, %v3563_v58 }
 0x337   :  { %v3569_v63 = vpop.eup %3568 }
 0x338   :  { %v1427_v2 = vmul.f32 %v3569_v63, %v4050_v30  ;;  %v4171_v30 = vld [vmem:[#allocation7 + $0x24] ss:$16 sps:$4 sm:$0xff]  }
 0x339   :  { %v3571_v4 = vpop.eup %3570 }
 0x33a   :  { %v4093_v3 = vadd.f32 %v1428_v61, %v1427_v2 }
 0x33c   :  { %3572 = vtanh.f32 %v4093_v3 }
 0x349   :  { %v3573_v5 = vpop.eup %3572 }
 0x34a   :  { %v1431_v35 = vmul.f32 %v3573_v5, %v3571_v4 }
 0x34c   :  { %v1434_v6 = vpack.c.bf16 %v1431_v35, %v1431_v35 }
 0x34e   :  { %3192 = vst [vmem:[%s4359_s6 + $0x8] sm:$0xf] %v1434_v6  ;;  %1671 = vmatmul.mubr.bf16.vlgmr.msra.gmra.mxu0 %v1434_v6  ;;  %1712 = vmatmul.mubr.bf16.vlgmr.msra.gmra.mxu1 %v1434_v6 }
 0x34f   :  { %1987 = vmatprep.mubr.bf16.mxu0 %v4383_v14  ;;  %2028 = vmatprep.mubr.bf16.mxu1 %v4383_v14 }
 0x350   :  { %1956 = vmatpush1.bf16.msra.mxu0 %v4105_v24  ;;  %1997 = vmatpush1.bf16.msra.mxu1 %v4107_v62 }
 0x351   :  { %1957 = vmatprep.subr.bf16.mxu0 %v4113_v8  ;;  %1998 = vmatprep.subr.bf16.mxu1 %v4115_v12 }
 0x354   :  { %1958 = vmatpush1.bf16.msra.mxu0 %v4117_v22  ;;  %1999 = vmatpush1.bf16.msra.mxu1 %v4119_v44 }
 0x355   :  { %1959 = vmatprep.subr.bf16.mxu0 %v4125_v17  ;;  %2000 = vmatprep.subr.bf16.mxu1 %v4127_v19 }
 0x358   :  { %1960 = vmatpush1.bf16.msra.mxu0 %v4129_v33  ;;  %2001 = vmatpush1.bf16.msra.mxu1 %v4131_v34 }
 0x359   :  { %1961 = vmatprep.subr.bf16.mxu0 %v4137_v21  ;;  %2002 = vmatprep.subr.bf16.mxu1 %v4139_v10 }
 0x35c   :  { %1962 = vmatpush1.bf16.msra.mxu0 %v4141_v28  ;;  %2003 = vmatpush1.bf16.msra.mxu1 %v4143_v25 }
 0x35d   :  { %1963 = vmatprep.subr.bf16.mxu0 %v4147_v15  ;;  %2004 = vmatprep.subr.bf16.mxu1 %v4149_v29 }
 0x360   :  { %1964 = vmatpush1.bf16.msra.mxu0 %v4153_v16  ;;  %2005 = vmatpush1.bf16.msra.mxu1 %v4155_v0 }
 0x361   :  { %1965 = vmatprep.subr.bf16.mxu0 %v4159_v9  ;;  %2006 = vmatprep.subr.bf16.mxu1 %v4161_v13 }
 0x364   :  { %1966 = vmatpush1.bf16.msra.mxu0 %v4165_v11  ;;  %2007 = vmatpush1.bf16.msra.mxu1 %v4167_v20 }
 0x365   :  { %1967 = vmatprep.subr.bf16.mxu0 %v4171_v30  ;;  %2008 = vmatprep.subr.bf16.mxu1 %v4173_v26 }
 0x368   :  { %1968 = vmatpush1.bf16.msra.mxu0 %v4177_v27  ;;  %2009 = vmatpush1.bf16.msra.mxu1 %v4179_v31 }
 0x369   :  { %1969 = vmatprep.subr.bf16.mxu0 %v4183_v18  ;;  %2010 = vmatprep.subr.bf16.mxu1 %v4185_v36 }
 0x36c   :  { %1970 = vmatpush1.bf16.msra.mxu0 %v4189_v37  ;;  %2011 = vmatpush1.bf16.msra.mxu1 %v4191_v38 }
 0x36d   :  { %2272 = vmatprep.subr.bf16.mxu0 %v4101_v7  ;;  %2313 = vmatprep.subr.bf16.mxu1 %v4103_v23 }
 0x40e   :  { %v1672_v39 = vpop.f32.mrf.mxu0  ;;  %v1713_v40 = vpop.f32.mrf.mxu1 }
 0x40f   :  { %v1720_v42 = vadd.f32 %v1672_v39, %v4385_v41  ;;  %v1722_v58 = vadd.f32 %v1713_v40, %v4388_v57 }
 0x410   :  { %v1674_v43 = vpop.f32.mrf.mxu0  ;;  %v1715_v45 = vpop.f32.mrf.mxu1 }
 0x411   :  { %v3225_v46 = vmul.f32 -1.442695, %v1720_v42  ;;  %v1721_v48 = vadd.f32 %v1674_v43, %v4386_v47  ;;  %v1723_v56 = vadd.f32 %v1715_v45, %v4387_v55 }
 0x412   :  { %v1676_v49 = vpop.f32.mrf.mxu0  ;;  %v1717_v50 = vpop.f32.mrf.mxu1 }
 0x413   :  { %3574 = vpow2.f32 %v3225_v46  ;;  %v3226_v51 = vmul.f32 -1.442695, %v1721_v48  ;;  %v3227_v59 = vmul.f32 -1.442695, %v1723_v56  ;;  %v4389_v48 = vld [vmem:[#allocation16_spill] sm:$0xff] }
 0x414   :  { %v1677_v52 = vpop.f32.mrf.mxu0  ;;  %v1718_v54 = vpop.f32.mrf.mxu1 }
 0x415   :  { %3576 = vpow2.f32 %v3226_v51  ;;  %v4390_v54 = vld [vmem:[#allocation18_spill] sm:$0xff] }
 0x416   :  { %3578 = vtanh.f32 %v1722_v58 }
 0x417   :  { %3580 = vpow2.f32 %v3227_v59 }
 0x420   :  { %v3575_v60 = vpop.eup %3574 }
 0x421   :  { %v1727_v61 = vadd.f32 1.0, %v3575_v60 }
 0x422   :  { %v3577_v63 = vpop.eup %3576 }
 0x423   :  { %3582 = vrcp.f32 %v1727_v61  ;;  %v1733_v1 = vadd.f32 1.0, %v3577_v63  ;;  %v3579_v2 = vpop.eup %3578  ;;  %v4391_v61 = vld [vmem:[#allocation19_spill] sm:$0xff] }
 0x424   :  { %v3581_v4 = vpop.eup %3580 }
 0x425   :  { %3584 = vrcp.f32 %v1733_v1  ;;  %v1740_v39 = vadd.f32 1.0, %v3581_v4  ;;  %v4392_v1 = vld [vmem:[#allocation17_spill] sm:$0xff] }
 0x427   :  { %3586 = vrcp.f32 %v1740_v39 }
 0x430   :  { %v3583_v5 = vpop.eup %3582 }
 0x431   :  { %v1745_v35 = vmul.f32 %v3583_v5, %v3579_v2 }
 0x432   :  { %v3585_v6 = vpop.eup %3584 }
 0x433   :  { %v1744_v41 = vmul.f32 %v3585_v6, %v4093_v3 }
 0x434   :  { %v3587_v40 = vpop.eup %3586 }
 0x435   :  { %v4204_v42 = vadd.f32 %v1745_v35, %v1744_v41 }
 0x437   :  { %3588 = vtanh.f32 %v4204_v42 }
 0x444   :  { %v3589_v43 = vpop.eup %3588 }
 0x445   :  { %v1748_v45 = vmul.f32 %v3589_v43, %v3587_v40 }
 0x447   :  { %v1751_v46 = vpack.c.bf16 %v1748_v45, %v1748_v45 }
 0x449   :  { %3228 = vst [vmem:[%s4359_s6 + $0xc] sm:$0xf] %v1751_v46  ;;  %1988 = vmatmul.mubr.bf16.vlgmr.msra.gmra.mxu0 %v1751_v46  ;;  %2029 = vmatmul.mubr.bf16.vlgmr.msra.gmra.mxu1 %v1751_v46 }
 0x44a   :  { %2273 = vmatpush1.bf16.msra.mxu0 %v4105_v24  ;;  %2314 = vmatpush1.bf16.msra.mxu1 %v4107_v62 }
 0x44b   :  { %2274 = vmatprep.subr.bf16.mxu0 %v4113_v8  ;;  %2315 = vmatprep.subr.bf16.mxu1 %v4115_v12 }
 0x44c   :  { %2304 = vmatprep.mubr.bf16.mxu0 %v4383_v14  ;;  %2345 = vmatprep.mubr.bf16.mxu1 %v4383_v14 }
 0x44e   :  { %2275 = vmatpush1.bf16.msra.mxu0 %v4117_v22  ;;  %2316 = vmatpush1.bf16.msra.mxu1 %v4119_v44 }
 0x44f   :  { %2276 = vmatprep.subr.bf16.mxu0 %v4125_v17  ;;  %2317 = vmatprep.subr.bf16.mxu1 %v4127_v19 }
 0x452   :  { %2277 = vmatpush1.bf16.msra.mxu0 %v4129_v33  ;;  %2318 = vmatpush1.bf16.msra.mxu1 %v4131_v34 }
 0x453   :  { %2278 = vmatprep.subr.bf16.mxu0 %v4137_v21  ;;  %2319 = vmatprep.subr.bf16.mxu1 %v4139_v10 }
 0x456   :  { %2279 = vmatpush1.bf16.msra.mxu0 %v4141_v28  ;;  %2320 = vmatpush1.bf16.msra.mxu1 %v4143_v25 }
 0x457   :  { %2280 = vmatprep.subr.bf16.mxu0 %v4147_v15  ;;  %2321 = vmatprep.subr.bf16.mxu1 %v4149_v29 }
 0x45a   :  { %2281 = vmatpush1.bf16.msra.mxu0 %v4153_v16  ;;  %2322 = vmatpush1.bf16.msra.mxu1 %v4155_v0 }
 0x45b   :  { %2282 = vmatprep.subr.bf16.mxu0 %v4159_v9  ;;  %2323 = vmatprep.subr.bf16.mxu1 %v4161_v13 }
 0x45e   :  { %2283 = vmatpush1.bf16.msra.mxu0 %v4165_v11  ;;  %2324 = vmatpush1.bf16.msra.mxu1 %v4167_v20 }
 0x45f   :  { %2284 = vmatprep.subr.bf16.mxu0 %v4171_v30  ;;  %2325 = vmatprep.subr.bf16.mxu1 %v4173_v26 }
 0x462   :  { %2285 = vmatpush1.bf16.msra.mxu0 %v4177_v27  ;;  %2326 = vmatpush1.bf16.msra.mxu1 %v4179_v31 }
 0x463   :  { %2286 = vmatprep.subr.bf16.mxu0 %v4183_v18  ;;  %2327 = vmatprep.subr.bf16.mxu1 %v4185_v36 }
 0x466   :  { %2287 = vmatpush1.bf16.msra.mxu0 %v4189_v37  ;;  %2328 = vmatpush1.bf16.msra.mxu1 %v4191_v38 }
 0x467   :  { %2589 = vmatprep.subr.bf16.mxu0 %v4101_v7  ;;  %2630 = vmatprep.subr.bf16.mxu1 %v4103_v23 }
 0x509   :  { %v1989_v3 = vpop.f32.mrf.mxu0  ;;  %v2030_v47 = vpop.f32.mrf.mxu1 }
 0x50a   :  { %v2037_v49 = vadd.f32 %v1989_v3, %v4389_v48  ;;  %v2039_v2 = vadd.f32 %v2030_v47, %v4392_v1 }
 0x50b   :  { %v1991_v50 = vpop.f32.mrf.mxu0  ;;  %v2032_v51 = vpop.f32.mrf.mxu1 }
 0x50c   :  { %v3261_v52 = vmul.f32 -1.442695, %v2037_v49  ;;  %v2038_v55 = vadd.f32 %v1991_v50, %v4390_v54  ;;  %v2040_v63 = vadd.f32 %v2032_v51, %v4391_v61 }
 0x50d   :  { %v1993_v56 = vpop.f32.mrf.mxu0  ;;  %v2034_v57 = vpop.f32.mrf.mxu1 }
 0x50e   :  { %3590 = vpow2.f32 %v3261_v52  ;;  %v3262_v58 = vmul.f32 -1.442695, %v2038_v55  ;;  %v3263_v4 = vmul.f32 -1.442695, %v2040_v63  ;;  %v4393_v55 = vld [vmem:[#allocation20_spill] sm:$0xff] }
 0x50f   :  { %v1994_v59 = vpop.f32.mrf.mxu0  ;;  %v2035_v60 = vpop.f32.mrf.mxu1 }
 0x510   :  { %3592 = vpow2.f32 %v3262_v58  ;;  %v4394_v60 = vld [vmem:[#allocation22_spill] sm:$0xff] }
 0x511   :  { %3594 = vtanh.f32 %v2039_v2 }
 0x512   :  { %3596 = vpow2.f32 %v3263_v4 }
 0x51b   :  { %v3591_v5 = vpop.eup %3590 }
 0x51c   :  { %v2044_v35 = vadd.f32 1.0, %v3591_v5 }
 0x51d   :  { %v3593_v6 = vpop.eup %3592 }
 0x51e   :  { %3598 = vrcp.f32 %v2044_v35  ;;  %v2050_v39 = vadd.f32 1.0, %v3593_v6  ;;  %v3595_v41 = vpop.eup %3594  ;;  %v4395_v35 = vld [vmem:[#allocation23_spill] sm:$0xff]  ;;  %v4396_v6 = vld [vmem:[#allocation21_spill] sm:$0xff] }
 0x51f   :  { %v3597_v40 = vpop.eup %3596 }
 0x520   :  { %3600 = vrcp.f32 %v2050_v39  ;;  %v2057_v3 = vadd.f32 1.0, %v3597_v40 }
 0x522   :  { %3602 = vrcp.f32 %v2057_v3 }
 0x52b   :  { %v3599_v43 = vpop.eup %3598 }
 0x52c   :  { %v2062_v45 = vmul.f32 %v3599_v43, %v3595_v41 }
 0x52d   :  { %v3601_v46 = vpop.eup %3600 }
 0x52e   :  { %v2061_v48 = vmul.f32 %v3601_v46, %v4204_v42 }
 0x52f   :  { %v3603_v47 = vpop.eup %3602 }
 0x530   :  { %v4249_v49 = vadd.f32 %v2062_v45, %v2061_v48 }
 0x532   :  { %3604 = vtanh.f32 %v4249_v49 }
 0x53f   :  { %v3605_v50 = vpop.eup %3604 }
 0x540   :  { %v2065_v51 = vmul.f32 %v3605_v50, %v3603_v47 }
 0x542   :  { %v2068_v52 = vpack.c.bf16 %v2065_v51, %v2065_v51 }
 0x544   :  { %3264 = vst [vmem:[%s4359_s6 + $0x10] sm:$0xf] %v2068_v52  ;;  %2305 = vmatmul.mubr.bf16.vlgmr.msra.gmra.mxu0 %v2068_v52  ;;  %2346 = vmatmul.mubr.bf16.vlgmr.msra.gmra.mxu1 %v2068_v52 }
 0x545   :  { %2590 = vmatpush1.bf16.msra.mxu0 %v4105_v24  ;;  %2631 = vmatpush1.bf16.msra.mxu1 %v4107_v62 }
 0x546   :  { %2591 = vmatprep.subr.bf16.mxu0 %v4113_v8  ;;  %2632 = vmatprep.subr.bf16.mxu1 %v4115_v12 }
 0x547   :  { %2621 = vmatprep.mubr.bf16.mxu0 %v4383_v14  ;;  %2662 = vmatprep.mubr.bf16.mxu1 %v4383_v14 }
 0x549   :  { %2592 = vmatpush1.bf16.msra.mxu0 %v4117_v22  ;;  %2633 = vmatpush1.bf16.msra.mxu1 %v4119_v44 }
 0x54a   :  { %2593 = vmatprep.subr.bf16.mxu0 %v4125_v17  ;;  %2634 = vmatprep.subr.bf16.mxu1 %v4127_v19 }
 0x54d   :  { %2594 = vmatpush1.bf16.msra.mxu0 %v4129_v33  ;;  %2635 = vmatpush1.bf16.msra.mxu1 %v4131_v34 }
 0x54e   :  { %2595 = vmatprep.subr.bf16.mxu0 %v4137_v21  ;;  %2636 = vmatprep.subr.bf16.mxu1 %v4139_v10 }
 0x551   :  { %2596 = vmatpush1.bf16.msra.mxu0 %v4141_v28  ;;  %2637 = vmatpush1.bf16.msra.mxu1 %v4143_v25 }
 0x552   :  { %2597 = vmatprep.subr.bf16.mxu0 %v4147_v15  ;;  %2638 = vmatprep.subr.bf16.mxu1 %v4149_v29 }
 0x555   :  { %2598 = vmatpush1.bf16.msra.mxu0 %v4153_v16  ;;  %2639 = vmatpush1.bf16.msra.mxu1 %v4155_v0 }
 0x556   :  { %2599 = vmatprep.subr.bf16.mxu0 %v4159_v9  ;;  %2640 = vmatprep.subr.bf16.mxu1 %v4161_v13 }
 0x559   :  { %2600 = vmatpush1.bf16.msra.mxu0 %v4165_v11  ;;  %2641 = vmatpush1.bf16.msra.mxu1 %v4167_v20 }
 0x55a   :  { %2601 = vmatprep.subr.bf16.mxu0 %v4171_v30  ;;  %2642 = vmatprep.subr.bf16.mxu1 %v4173_v26 }
 0x55d   :  { %2602 = vmatpush1.bf16.msra.mxu0 %v4177_v27  ;;  %2643 = vmatpush1.bf16.msra.mxu1 %v4179_v31 }
 0x55e   :  { %2603 = vmatprep.subr.bf16.mxu0 %v4183_v18  ;;  %2644 = vmatprep.subr.bf16.mxu1 %v4185_v36 }
 0x561   :  { %2604 = vmatpush1.bf16.msra.mxu0 %v4189_v37  ;;  %2645 = vmatpush1.bf16.msra.mxu1 %v4191_v38 }
 0x562   :  { %2906 = vmatprep.subr.bf16.mxu0 %v4101_v7  ;;  %2947 = vmatprep.subr.bf16.mxu1 %v4103_v23 }
 0x604   :  { %v2306_v42 = vpop.f32.mrf.mxu0  ;;  %v2347_v54 = vpop.f32.mrf.mxu1 }
 0x605   :  { %v2354_v56 = vadd.f32 %v2306_v42, %v4393_v55  ;;  %v2356_v23 = vadd.f32 %v2347_v54, %v4396_v6 }
 0x606   :  { %v2308_v57 = vpop.f32.mrf.mxu0  ;;  %v2349_v58 = vpop.f32.mrf.mxu1 }
 0x607   :  { %v3297_v59 = vmul.f32 -1.442695, %v2354_v56  ;;  %v2355_v61 = vadd.f32 %v2308_v57, %v4394_v60  ;;  %v2357_v7 = vadd.f32 %v2349_v58, %v4395_v35 }
 0x608   :  { %v2310_v63 = vpop.f32.mrf.mxu0  ;;  %v2351_v1 = vpop.f32.mrf.mxu1 }
 0x609   :  { %3606 = vpow2.f32 %v3297_v59  ;;  %v3298_v2 = vmul.f32 -1.442695, %v2355_v61  ;;  %v3299_v39 = vmul.f32 -1.442695, %v2357_v7  ;;  %v4401_v1 = vld [vmem:[#allocation28_spill] sm:$0xff] }
 0x60a   :  { %v2311_v4 = vpop.f32.mrf.mxu0  ;;  %v2352_v5 = vpop.f32.mrf.mxu1 }
 0x60b   :  { %3608 = vpow2.f32 %v3298_v2 }
 0x60c   :  { %3610 = vtanh.f32 %v2356_v23 }
 0x60d   :  { %3612 = vpow2.f32 %v3299_v39 }
 0x616   :  { %v3607_v41 = vpop.eup %3606 }
 0x617   :  { %v2361_v40 = vadd.f32 1.0, %v3607_v41 }
 0x618   :  { %v3609_v43 = vpop.eup %3608 }
 0x619   :  { %3614 = vrcp.f32 %v2361_v40  ;;  %v2367_v45 = vadd.f32 1.0, %v3609_v43  ;;  %v3611_v46 = vpop.eup %3610 }
 0x61a   :  { %v3613_v3 = vpop.eup %3612 }
 0x61b   :  { %3616 = vrcp.f32 %v2367_v45  ;;  %v2374_v51 = vadd.f32 1.0, %v3613_v3  ;;  %v4402_v45 = vld [vmem:[#allocation29_spill] sm:$0xff] }
 0x61d   :  { %3618 = vrcp.f32 %v2374_v51 }
 0x626   :  { %v3615_v48 = vpop.eup %3614 }
 0x627   :  { %v2379_v47 = vmul.f32 %v3615_v48, %v3611_v46 }
 0x628   :  { %v3617_v50 = vpop.eup %3616 }
 0x629   :  { %v2378_v52 = vmul.f32 %v3617_v50, %v4249_v49 }
 0x62a   :  { %v3619_v54 = vpop.eup %3618 }
 0x62b   :  { %v4294_v42 = vadd.f32 %v2379_v47, %v2378_v52 }
 0x62d   :  { %3620 = vtanh.f32 %v4294_v42 }
 0x63a   :  { %v3621_v55 = vpop.eup %3620 }
 0x63b   :  { %v2382_v56 = vmul.f32 %v3621_v55, %v3619_v54 }
 0x63d   :  { %v2385_v57 = vpack.c.bf16 %v2382_v56, %v2382_v56 }
 0x63f   :  { %3300 = vst [vmem:[%s4359_s6 + $0x14] sm:$0xf] %v2385_v57  ;;  %2622 = vmatmul.mubr.bf16.vlgmr.msra.gmra.mxu0 %v2385_v57  ;;  %2663 = vmatmul.mubr.bf16.vlgmr.msra.gmra.mxu1 %v2385_v57 }
 0x640   :  { %2907 = vmatpush1.bf16.msra.mxu0 %v4105_v24  ;;  %2948 = vmatpush1.bf16.msra.mxu1 %v4107_v62  ;;  %v4397_v62 = vld [vmem:[#allocation24_spill] sm:$0xff] }
 0x641   :  { %2908 = vmatprep.subr.bf16.mxu0 %v4113_v8  ;;  %2949 = vmatprep.subr.bf16.mxu1 %v4115_v12 }
 0x642   :  { %2938 = vmatprep.mubr.bf16.mxu0 %v4383_v14  ;;  %2979 = vmatprep.mubr.bf16.mxu1 %v4383_v14 }
 0x644   :  { %2909 = vmatpush1.bf16.msra.mxu0 %v4117_v22  ;;  %2950 = vmatpush1.bf16.msra.mxu1 %v4119_v44 }
 0x645   :  { %2910 = vmatprep.subr.bf16.mxu0 %v4125_v17  ;;  %2951 = vmatprep.subr.bf16.mxu1 %v4127_v19  ;;  %v4398_v17 = vld [vmem:[#allocation26_spill] sm:$0xff] }
 0x648   :  { %2911 = vmatpush1.bf16.msra.mxu0 %v4129_v33  ;;  %2952 = vmatpush1.bf16.msra.mxu1 %v4131_v34 }
 0x649   :  { %2912 = vmatprep.subr.bf16.mxu0 %v4137_v21  ;;  %2953 = vmatprep.subr.bf16.mxu1 %v4139_v10 }
 0x64c   :  { %2913 = vmatpush1.bf16.msra.mxu0 %v4141_v28  ;;  %2954 = vmatpush1.bf16.msra.mxu1 %v4143_v25  ;;  %v4399_v25 = vld [vmem:[#allocation27_spill] sm:$0xff] }
 0x64d   :  { %2914 = vmatprep.subr.bf16.mxu0 %v4147_v15  ;;  %2955 = vmatprep.subr.bf16.mxu1 %v4149_v29  ;;  %v4400_v29 = vld [vmem:[#allocation25_spill] sm:$0xff] }
 0x650   :  { %2915 = vmatpush1.bf16.msra.mxu0 %v4153_v16  ;;  %2956 = vmatpush1.bf16.msra.mxu1 %v4155_v0 }
 0x651   :  { %2916 = vmatprep.subr.bf16.mxu0 %v4159_v9  ;;  %2957 = vmatprep.subr.bf16.mxu1 %v4161_v13 }
 0x654   :  { %2917 = vmatpush1.bf16.msra.mxu0 %v4165_v11  ;;  %2958 = vmatpush1.bf16.msra.mxu1 %v4167_v20 }
 0x655   :  { %2918 = vmatprep.subr.bf16.mxu0 %v4171_v30  ;;  %2959 = vmatprep.subr.bf16.mxu1 %v4173_v26 }
 0x658   :  { %2919 = vmatpush1.bf16.msra.mxu0 %v4177_v27  ;;  %2960 = vmatpush1.bf16.msra.mxu1 %v4179_v31 }
 0x659   :  { %2920 = vmatprep.subr.bf16.mxu0 %v4183_v18  ;;  %2961 = vmatprep.subr.bf16.mxu1 %v4185_v36 }
 0x65c   :  { %2921 = vmatpush1.bf16.msra.mxu0 %v4189_v37  ;;  %2962 = vmatpush1.bf16.msra.mxu1 %v4191_v38 }
 0x6ff   :  { %v2623_v14 = vpop.f32.mrf.mxu0  ;;  %v2664_v24 = vpop.f32.mrf.mxu1 }
 0x700   :  { %v2671_v8 = vadd.f32 %v2623_v14, %v4397_v62  ;;  %v2673_v16 = vadd.f32 %v2664_v24, %v4400_v29 }
 0x701   :  { %v2625_v12 = vpop.f32.mrf.mxu0  ;;  %v2666_v22 = vpop.f32.mrf.mxu1 }
 0x702   :  { %v3333_v44 = vmul.f32 -1.442695, %v2671_v8  ;;  %v2672_v19 = vadd.f32 %v2625_v12, %v4398_v17  ;;  %v2674_v15 = vadd.f32 %v2666_v22, %v4399_v25 }
 0x703   :  { %v2627_v33 = vpop.f32.mrf.mxu0  ;;  %v2668_v34 = vpop.f32.mrf.mxu1 }
 0x704   :  { %3622 = vpow2.f32 %v3333_v44  ;;  %v3334_v21 = vmul.f32 -1.442695, %v2672_v19  ;;  %v3335_v0 = vmul.f32 -1.442695, %v2674_v15 }
 0x705   :  { %v2628_v10 = vpop.f32.mrf.mxu0  ;;  %v2669_v28 = vpop.f32.mrf.mxu1 }
 0x706   :  { %3624 = vpow2.f32 %v3334_v21 }
 0x707   :  { %3626 = vtanh.f32 %v2673_v16 }
 0x708   :  { %3628 = vpow2.f32 %v3335_v0 }
 0x711   :  { %v3623_v9 = vpop.eup %3622 }
 0x712   :  { %v2678_v13 = vadd.f32 1.0, %v3623_v9 }
 0x713   :  { %v3625_v11 = vpop.eup %3624 }
 0x714   :  { %3630 = vrcp.f32 %v2678_v13  ;;  %v2684_v20 = vadd.f32 1.0, %v3625_v11  ;;  %v3627_v30 = vpop.eup %3626 }
 0x715   :  { %v3629_v26 = vpop.eup %3628 }
 0x716   :  { %3632 = vrcp.f32 %v2684_v20  ;;  %v2691_v36 = vadd.f32 1.0, %v3629_v26 }
 0x718   :  { %3634 = vrcp.f32 %v2691_v36 }
 0x721   :  { %v3631_v27 = vpop.eup %3630 }
 0x722   :  { %v2696_v31 = vmul.f32 %v3631_v27, %v3627_v30 }
 0x723   :  { %v3633_v18 = vpop.eup %3632 }
 0x724   :  { %v2695_v37 = vmul.f32 %v3633_v18, %v4294_v42 }
 0x725   :  { %v3635_v49 = vpop.eup %3634 }
 0x726   :  { %v2697_v38 = vadd.f32 %v2696_v31, %v2695_v37 }
 0x728   :  { %3636 = vtanh.f32 %v2697_v38 }
 0x735   :  { %v3637_v58 = vpop.eup %3636 }
 0x736   :  { %v2699_v59 = vmul.f32 %v3637_v58, %v3635_v49 }
 0x738   :  { %v2702_v60 = vpack.c.bf16 %v2699_v59, %v2699_v59 }
 0x73a   :  { %3336 = vst [vmem:[%s4359_s6 + $0x18] sm:$0xf] %v2702_v60  ;;  %2939 = vmatmul.mubr.bf16.vlgmr.msra.gmra.mxu0 %v2702_v60  ;;  %2980 = vmatmul.mubr.bf16.vlgmr.msra.gmra.mxu1 %v2702_v60 }
 0x7fa   :  { %v2940_v61 = vpop.f32.mrf.mxu0  ;;  %v2981_v63 = vpop.f32.mrf.mxu1 }
 0x7fb   :  { %v2988_v2 = vadd.f32 %v2940_v61, %v4401_v1  ;;  %v2990_v46 = vadd.f32 %v2981_v63, %v4402_v45 }
 0x7fc   :  { %v2942_v4 = vpop.f32.mrf.mxu0  ;;  %v2983_v5 = vpop.f32.mrf.mxu1 }
 0x7fd   :  { %v3369_v35 = vmul.f32 -1.442695, %v2988_v2  ;;  %v2989_v7 = vadd.f32 %v2942_v4, %v3992_v32  ;;  %v2991_v43 = vadd.f32 %v2983_v5, %v3995_v53 }
 0x7fe   :  { %v2944_v6 = vpop.f32.mrf.mxu0  ;;  %v2985_v23 = vpop.f32.mrf.mxu1 }
 0x7ff   :  { %3638 = vpow2.f32 %v3369_v35  ;;  %v3370_v39 = vmul.f32 -1.442695, %v2989_v7  ;;  %v3371_v3 = vmul.f32 -1.442695, %v2991_v43 }
 0x800   :  { %v2945_v41 = vpop.f32.mrf.mxu0  ;;  %v2986_v40 = vpop.f32.mrf.mxu1 }
 0x801   :  { %3640 = vpow2.f32 %v3370_v39 }
 0x802   :  { %3642 = vtanh.f32 %v2990_v46 }
 0x803   :  { %3644 = vpow2.f32 %v3371_v3 }
 0x80c   :  { %v3639_v48 = vpop.eup %3638 }
 0x80d   :  { %v2995_v47 = vadd.f32 1.0, %v3639_v48 }
 0x80e   :  { %v3641_v50 = vpop.eup %3640 }
 0x80f   :  { %3646 = vrcp.f32 %v2995_v47  ;;  %v3001_v51 = vadd.f32 1.0, %v3641_v50  ;;  %v3643_v32 = vpop.eup %3642 }
 0x810   :  { %v3645_v52 = vpop.eup %3644 }
 0x811   :  { %3648 = vrcp.f32 %v3001_v51  ;;  %v3008_v56 = vadd.f32 1.0, %v3645_v52 }
 0x813   :  { %3650 = vrcp.f32 %v3008_v56 }
 0x81c   :  { %v3647_v42 = vpop.eup %3646 }
 0x81d   :  { %v3013_v54 = vmul.f32 %v3647_v42, %v3643_v32 }
 0x81e   :  { %v3649_v55 = vpop.eup %3648 }
 0x81f   :  { %v3012_v57 = vmul.f32 %v3649_v55, %v2697_v38 }
 0x820   :  { %v3651_v53 = vpop.eup %3650 }
 0x821   :  { %v3014_v14 = vadd.f32 %v3013_v54, %v3012_v57 }
 0x823   :  { %3652 = vtanh.f32 %v3014_v14  ;;  %3028 = vst [vmem:[%s4361_s8] sm:$0xff] %v3014_v14 }
 0x830   :  { %v3653_v24 = vpop.eup %3652 }
 0x831   :  { %v3016_v62 = vmul.f32 %v3653_v24, %v3651_v53 }
 0x833   :  { %v3019_v8 = vpack.c.bf16 %v3016_v62, %v3016_v62  ;;  %3026 = vst [vmem:[%s4360_s7] sm:$0xff] %v3016_v62 }
 0x835   :  { %3372 = vst [vmem:[%s4359_s6 + $0x1c] sm:$0xf] %v3019_v8 }
 0x836   :  { %3041 = vsyncpa [#allocation6], 1 }
 0x837   :  { %3042 = vsyncpa [#allocation8], 1 }

// kernel: lstm_lm_forward.4
= control target key start
LH: loop header
LB: loop body
LE: loop exit
PB: predicated region body
PF: predicated region fallthrough
CT: control target
= control target key end

     0   :  { %v4562_v1 = vmov 0   ;;  %s4553_s1 = inlined_call_operand.vmem [shape: bf16[128,512], index: 1, kind: input, shape index: {}]   ;;  %s4554_s0 = inlined_call_operand.vmem [shape: bf16[8,8,128], index: 0, kind: input, shape index: {}]   ;;  %s4555_s2 = inlined_call_operand.vmem [shape: bf16[128,512], index: 2, kind: input, shape index: {}]   ;;  %s4556_s4 = inlined_call_operand.vmem [shape: f32[8,128], index: 4, kind: input, shape index: {}]   ;;  %s4557_s3 = inlined_call_operand.vmem [shape: f32[1,512], index: 3, kind: input, shape index: {}]   ;;  %s4558_s5 = inlined_call_operand.vmem [shape: f32[8,128], index: 5, kind: input, shape index: {}]   ;;  %s4559_s6 = inlined_call_operand.vmem [shape: bf16[8,8,128], index: 6, kind: output, shape index: {0}]   ;;  %s4560_s8 = inlined_call_operand.vmem [shape: f32[8,128], index: 8, kind: output, shape index: {2}]   ;;  %s4561_s7 = inlined_call_operand.vmem [shape: f32[8,128], index: 7, kind: output, shape index: {1}]  }
   0x1   :  { %v3344_v0 = vld [vmem:[%s4553_s1 + $0xe4] ss:$16 sps:$4 sm:$0xff]   ;;  %313 = vmatprep.mubr.bf16.mxu0 %v4562_v1  ;;  %386 = vmatprep.mubr.bf16.mxu1 %v4562_v1  ;;  %v3346_v2 = vld [vmem:[%s4553_s1 + $0xec] ss:$16 sps:$4 sm:$0xff]   ;;  %v3348_v3 = vld [vmem:[%s4553_s1 + $0xe0] ss:$16 sps:$4 sm:$0xff]  }
   0x2   :  { %281 = vmatprep.subr.bf16.mxu0 %v3344_v0  ;;  %v3349_v4 = vld [vmem:[%s4553_s1 + $0xe8] ss:$16 sps:$4 sm:$0xff]   ;;  %354 = vmatprep.subr.bf16.mxu1 %v3346_v2  ;;  %v3350_v5 = vld [vmem:[%s4553_s1 + $0xc4] ss:$16 sps:$4 sm:$0xff]   ;;  %v3352_v6 = vld [vmem:[%s4553_s1 + $0xcc] ss:$16 sps:$4 sm:$0xff]  }
   0x3   :  { %282 = vmatpush1.bf16.msra.mxu0 %v3348_v3  ;;  %355 = vmatpush1.bf16.msra.mxu1 %v3349_v4  ;;  %v3354_v7 = vld [vmem:[%s4553_s1 + $0xc0] ss:$16 sps:$4 sm:$0xff]   ;;  %v3355_v8 = vld [vmem:[%s4553_s1 + $0xc8] ss:$16 sps:$4 sm:$0xff]   ;;  %v3356_v9 = vld [vmem:[%s4553_s1 + $0xa4] ss:$16 sps:$4 sm:$0xff]  }
   0x4   :  { %283 = vmatprep.subr.bf16.mxu0 %v3350_v5  ;;  %356 = vmatprep.subr.bf16.mxu1 %v3352_v6  ;;  %v3358_v10 = vld [vmem:[%s4553_s1 + $0xac] ss:$16 sps:$4 sm:$0xff]   ;;  %v3360_v11 = vld [vmem:[%s4553_s1 + $0xa0] ss:$16 sps:$4 sm:$0xff]   ;;  %v3361_v12 = vld [vmem:[%s4553_s1 + $0xa8] ss:$16 sps:$4 sm:$0xff]  }
   0x5   :  { %v3362_v13 = vld [vmem:[%s4553_s1 + $0x84] ss:$16 sps:$4 sm:$0xff]   ;;  %v3364_v14 = vld [vmem:[%s4553_s1 + $0x8c] ss:$16 sps:$4 sm:$0xff]   ;;  %v3366_v15 = vld [vmem:[%s4553_s1 + $0x80] ss:$16 sps:$4 sm:$0xff]  }
   0x6   :  { %v3367_v16 = vld [vmem:[%s4553_s1 + $0x88] ss:$16 sps:$4 sm:$0xff]   ;;  %v3368_v17 = vld [vmem:[%s4553_s1 + $0x64] ss:$16 sps:$4 sm:$0xff]   ;;  %v3370_v18 = vld [vmem:[%s4553_s1 + $0x6c] ss:$16 sps:$4 sm:$0xff]  }
   0x7   :  { %284 = vmatpush1.bf16.msra.mxu0 %v3354_v7  ;;  %357 = vmatpush1.bf16.msra.mxu1 %v3355_v8  ;;  %v3372_v19 = vld [vmem:[%s4553_s1 + $0x60] ss:$16 sps:$4 sm:$0xff]   ;;  %v3373_v20 = vld [vmem:[%s4553_s1 + $0x68] ss:$16 sps:$4 sm:$0xff]   ;;  %v3374_v21 = vld [vmem:[%s4553_s1 + $0x44] ss:$16 sps:$4 sm:$0xff]   ;;  %v77_v8 = vlaneseq }
   0x8   :  { %285 = vmatprep.subr.bf16.mxu0 %v3356_v9  ;;  %358 = vmatprep.subr.bf16.mxu1 %v3358_v10  ;;  %v3376_v22 = vld [vmem:[%s4553_s1 + $0x4c] ss:$16 sps:$4 sm:$0xff]   ;;  %v3378_v23 = vld [vmem:[%s4553_s1 + $0x40] ss:$16 sps:$4 sm:$0xff]   ;;  %v3379_v24 = vld [vmem:[%s4553_s1 + $0x48] ss:$16 sps:$4 sm:$0xff]  }
   0x9   :  { %v3380_v25 = vld [vmem:[%s4553_s1 + $0x24] ss:$16 sps:$4 sm:$0xff]   ;;  %v3382_v26 = vld [vmem:[%s4553_s1 + $0x2c] ss:$16 sps:$4 sm:$0xff]   ;;  %v3384_v27 = vld [vmem:[%s4553_s1 + $0x20] ss:$16 sps:$4 sm:$0xff]  }
   0xa   :  { %v3385_v28 = vld [vmem:[%s4553_s1 + $0x28] ss:$16 sps:$4 sm:$0xff]   ;;  %v3386_v29 = vld [vmem:[%s4553_s1 + $0x4] ss:$16 sps:$4 sm:$0xff]   ;;  %v3388_v30 = vld [vmem:[%s4553_s1 + $0xc] ss:$16 sps:$4 sm:$0xff]  }
   0xb   :  { %286 = vmatpush1.bf16.msra.mxu0 %v3360_v11  ;;  %359 = vmatpush1.bf16.msra.mxu1 %v3361_v12  ;;  %v3390_v31 = vld [vmem:[%s4553_s1] ss:$16 sps:$4 sm:$0xff]   ;;  %v3391_v32 = vld [vmem:[%s4553_s1 + $0x8] ss:$16 sps:$4 sm:$0xff]   ;;  %v3767_v33 = vld [vmem:[%s4555_s2 + $0xe4] ss:$16 sps:$4 sm:$0xff]  }
   0xc   :  { %287 = vmatprep.subr.bf16.mxu0 %v3362_v13  ;;  %360 = vmatprep.subr.bf16.mxu1 %v3364_v14  ;;  %v3772_v34 = vld [vmem:[%s4555_s2 + $0xec] ss:$16 sps:$4 sm:$0xff]   ;;  %v3392_v35 = vld [vmem:[%s4554_s0] sm:$0xff]   ;;  %v3785_v37 = vld [vmem:[%s4555_s2 + $0xe8] ss:$16 sps:$4 sm:$0xff]   ;;  %v78_v9 = vshrl.u32 %v77_v8, 7 }
   0xd   :  { %v3780_v36 = vld [vmem:[%s4555_s2 + $0xe0] ss:$16 sps:$4 sm:$0xff]   ;;  %v3792_v38 = vld [vmem:[%s4555_s2 + $0xc4] ss:$16 sps:$4 sm:$0xff]   ;;  %v3797_v39 = vld [vmem:[%s4555_s2 + $0xcc] ss:$16 sps:$4 sm:$0xff]  }
   0xe   :  { %v3802_v40 = vld [vmem:[%s4555_s2 + $0xc0] ss:$16 sps:$4 sm:$0xff]   ;;  %v3809_v41 = vld [vmem:[%s4555_s2 + $0xc8] ss:$16 sps:$4 sm:$0xff]   ;;  %v3816_v42 = vld [vmem:[%s4555_s2 + $0xa4] ss:$16 sps:$4 sm:$0xff]  }
   0xf   :  { %288 = vmatpush1.bf16.msra.mxu0 %v3366_v15  ;;  %361 = vmatpush1.bf16.msra.mxu1 %v3367_v16  ;;  %v3821_v43 = vld [vmem:[%s4555_s2 + $0xac] ss:$16 sps:$4 sm:$0xff]   ;;  %v3831_v45 = vld [vmem:[%s4555_s2 + $0xa0] ss:$16 sps:$4 sm:$0xff]   ;;  %v3836_v46 = vld [vmem:[%s4555_s2 + $0xa8] ss:$16 sps:$4 sm:$0xff]  }
  0x10   :  { %289 = vmatprep.subr.bf16.mxu0 %v3368_v17  ;;  %362 = vmatprep.subr.bf16.mxu1 %v3370_v18  ;;  %v3405_v44 = vld [vmem:[%s4554_s0 + $0x8] sm:$0xff]   ;;  %v3843_v47 = vld [vmem:[%s4555_s2 + $0x84] ss:$16 sps:$4 sm:$0xff]   ;;  %v3855_v49 = vld [vmem:[%s4555_s2 + $0x80] ss:$16 sps:$4 sm:$0xff]   ;;  %v87_v10 = vsub.s32 2, %v78_v9 }
  0x11   :  { %v3850_v48 = vld [vmem:[%s4555_s2 + $0x8c] ss:$16 sps:$4 sm:$0xff]   ;;  %v3860_v50 = vld [vmem:[%s4555_s2 + $0x88] ss:$16 sps:$4 sm:$0xff]   ;;  %v3867_v51 = vld [vmem:[%s4555_s2 + $0x64] ss:$16 sps:$4 sm:$0xff]  }
  0x12   :  { %v3874_v52 = vld [vmem:[%s4555_s2 + $0x6c] ss:$16 sps:$4 sm:$0xff]   ;;  %v3418_v53 = vld [vmem:[%s4554_s0 + $0x10] sm:$0xff]   ;;  %v3889_v55 = vld [vmem:[%s4555_s2 + $0x68] ss:$16 sps:$4 sm:$0xff]   ;;  %v79_v11 = vsub.s32 0, %v78_v9 }
  0x13   :  { %290 = vmatpush1.bf16.msra.mxu0 %v3372_v19  ;;  %363 = vmatpush1.bf16.msra.mxu1 %v3373_v20  ;;  %v3884_v54 = vld [vmem:[%s4555_s2 + $0x60] ss:$16 sps:$4 sm:$0xff]   ;;  %v3894_v56 = vld [vmem:[%s4555_s2 + $0x44] ss:$16 sps:$4 sm:$0xff]   ;;  %v3899_v57 = vld [vmem:[%s4555_s2 + $0x4c] ss:$16 sps:$4 sm:$0xff]  }
  0x14   :  { %291 = vmatprep.subr.bf16.mxu0 %v3374_v21  ;;  %364 = vmatprep.subr.bf16.mxu1 %v3376_v22  ;;  %v3908_v58 = vld [vmem:[%s4555_s2 + $0x40] ss:$16 sps:$4 sm:$0xff]   ;;  %v3913_v59 = vld [vmem:[%s4555_s2 + $0x48] ss:$16 sps:$4 sm:$0xff]   ;;  %v3918_v60 = vld [vmem:[%s4555_s2 + $0x24] ss:$16 sps:$4 sm:$0xff]  }
  0x15   :  { %v3923_v61 = vld [vmem:[%s4555_s2 + $0x2c] ss:$16 sps:$4 sm:$0xff]   ;;  %v3937_v63 = vld [vmem:[%s4555_s2 + $0x20] ss:$16 sps:$4 sm:$0xff]   ;;  %v3942_v0 = vld [vmem:[%s4555_s2 + $0x28] ss:$16 sps:$4 sm:$0xff]  }
  0x16   :  { %v3431_v62 = vld [vmem:[%s4554_s0 + $0x18] sm:$0xff]   ;;  %v3947_v2 = vld [vmem:[%s4555_s2 + $0x4] ss:$16 sps:$4 sm:$0xff]   ;;  %v3963_v4 = vld [vmem:[%s4555_s2] ss:$16 sps:$4 sm:$0xff]   ;;  %v91_v12 = vsub.s32 3, %v78_v9 }
  0x17   :  { %292 = vmatpush1.bf16.msra.mxu0 %v3378_v23  ;;  %365 = vmatpush1.bf16.msra.mxu1 %v3379_v24  ;;  %v3952_v3 = vld [vmem:[%s4555_s2 + $0xc] ss:$16 sps:$4 sm:$0xff]   ;;  %v3968_v5 = vld [vmem:[%s4555_s2 + $0x8] ss:$16 sps:$4 sm:$0xff]   ;;  %v31_v6 = vld [vmem:[%s4556_s4] sm:$0xff]  ;;  %v83_v17 = vsub.s32 1, %v78_v9 }
  0x18   :  { %293 = vmatprep.subr.bf16.mxu0 %v3380_v25  ;;  %366 = vmatprep.subr.bf16.mxu1 %v3382_v26  ;;  %v467_v7 = vpack.c.bf16 %v31_v6, %v31_v6  ;;  %v75_v13 = vld [vmem:[%s4557_s3] sm:$0xf] }
  0x19   :  { %v4022_v16 = vrot.slane %v75_v13, %v87_v10  ;;  %v80_v20 = vrot.slane %v75_v13, %v79_v11  ;;  %v4028_v21 = vrot.slane %v75_v13, %v91_v12  ;;  %v84_v24 = vrot.slane %v75_v13, %v83_v17 }
  0x1b   :  { %294 = vmatpush1.bf16.msra.mxu0 %v3384_v27  ;;  %367 = vmatpush1.bf16.msra.mxu1 %v3385_v28 }
  0x1c   :  { %295 = vmatprep.subr.bf16.mxu0 %v3386_v29  ;;  %368 = vmatprep.subr.bf16.mxu1 %v3388_v30 }
  0x1f   :  { %296 = vmatpush1.bf16.msra.mxu0 %v3390_v31  ;;  %369 = vmatpush1.bf16.msra.mxu1 %v3391_v32 }
  0x20   :  { %660 = vmatprep.subr.bf16.mxu0 %v3767_v33  ;;  %701 = vmatprep.subr.bf16.mxu1 %v3772_v34 }
  0x22   :  { %314 = vmatmul.mubr.bf16.vlgmr.msra.gmra.mxu0 %v3392_v35  ;;  %387 = vmatmul.mubr.bf16.vlgmr.msra.gmra.mxu1 %v3392_v35 }
  0x23   :  { %661 = vmatpush1.bf16.msra.mxu0 %v3780_v36  ;;  %702 = vmatpush1.bf16.msra.mxu1 %v3785_v37 }
  0x24   :  { %662 = vmatprep.subr.bf16.mxu0 %v3792_v38  ;;  %703 = vmatprep.subr.bf16.mxu1 %v3797_v39 }
  0x25   :  { %323 = vmatprep.mubr.bf16.mxu0 %v4562_v1  ;;  %396 = vmatprep.mubr.bf16.mxu1 %v4562_v1 }
  0x27   :  { %663 = vmatpush1.bf16.msra.mxu0 %v3802_v40  ;;  %704 = vmatpush1.bf16.msra.mxu1 %v3809_v41 }
  0x28   :  { %664 = vmatprep.subr.bf16.mxu0 %v3816_v42  ;;  %705 = vmatprep.subr.bf16.mxu1 %v3821_v43 }
  0x2a   :  { %324 = vmatmul.mubr.bf16.gmra.mxu0 %v3405_v44  ;;  %397 = vmatmul.mubr.bf16.gmra.mxu1 %v3405_v44 }
  0x2b   :  { %665 = vmatpush1.bf16.msra.mxu0 %v3831_v45  ;;  %706 = vmatpush1.bf16.msra.mxu1 %v3836_v46 }
  0x2c   :  { %666 = vmatprep.subr.bf16.mxu0 %v3843_v47  ;;  %707 = vmatprep.subr.bf16.mxu1 %v3850_v48 }
  0x2d   :  { %333 = vmatprep.mubr.bf16.mxu0 %v4562_v1  ;;  %406 = vmatprep.mubr.bf16.mxu1 %v4562_v1 }
  0x2f   :  { %667 = vmatpush1.bf16.msra.mxu0 %v3855_v49  ;;  %708 = vmatpush1.bf16.msra.mxu1 %v3860_v50 }
  0x30   :  { %668 = vmatprep.subr.bf16.mxu0 %v3867_v51  ;;  %709 = vmatprep.subr.bf16.mxu1 %v3874_v52 }
  0x32   :  { %334 = vmatmul.mubr.bf16.gmra.mxu0 %v3418_v53  ;;  %407 = vmatmul.mubr.bf16.gmra.mxu1 %v3418_v53 }
  0x33   :  { %669 = vmatpush1.bf16.msra.mxu0 %v3884_v54  ;;  %710 = vmatpush1.bf16.msra.mxu1 %v3889_v55 }
  0x34   :  { %670 = vmatprep.subr.bf16.mxu0 %v3894_v56  ;;  %711 = vmatprep.subr.bf16.mxu1 %v3899_v57 }
  0x35   :  { %343 = vmatprep.mubr.bf16.mxu0 %v4562_v1  ;;  %416 = vmatprep.mubr.bf16.mxu1 %v4562_v1 }
  0x37   :  { %671 = vmatpush1.bf16.msra.mxu0 %v3908_v58  ;;  %712 = vmatpush1.bf16.msra.mxu1 %v3913_v59 }
  0x38   :  { %672 = vmatprep.subr.bf16.mxu0 %v3918_v60  ;;  %713 = vmatprep.subr.bf16.mxu1 %v3923_v61 }
  0x3a   :  { %344 = vmatmul.mubr.bf16.gmra.mxu0 %v3431_v62  ;;  %417 = vmatmul.mubr.bf16.gmra.mxu1 %v3431_v62 }
  0x3b   :  { %673 = vmatpush1.bf16.msra.mxu0 %v3937_v63  ;;  %714 = vmatpush1.bf16.msra.mxu1 %v3942_v0 }
  0x3c   :  { %674 = vmatprep.subr.bf16.mxu0 %v3947_v2  ;;  %715 = vmatprep.subr.bf16.mxu1 %v3952_v3 }
  0x3d   :  { %692 = vmatprep.mubr.bf16.mxu0 %v4562_v1  ;;  %733 = vmatprep.mubr.bf16.mxu1 %v4562_v1 }
  0x3f   :  { %675 = vmatpush1.bf16.msra.mxu0 %v3963_v4  ;;  %716 = vmatpush1.bf16.msra.mxu1 %v3968_v5 }
  0x40   :  { %976 = vmatprep.subr.bf16.mxu0 %v3767_v33  ;;  %1017 = vmatprep.subr.bf16.mxu1 %v3772_v34 }
  0x42   :  { %693 = vmatmul.mubr.bf16.vlgmr.msra.gmra.mxu0 %v467_v7  ;;  %734 = vmatmul.mubr.bf16.vlgmr.msra.gmra.mxu1 %v467_v7 }
  0x43   :  { %977 = vmatpush1.bf16.msra.mxu0 %v3780_v36  ;;  %1018 = vmatpush1.bf16.msra.mxu1 %v3785_v37 }
  0x44   :  { %978 = vmatprep.subr.bf16.mxu0 %v3792_v38  ;;  %1019 = vmatprep.subr.bf16.mxu1 %v3797_v39 }
  0x45   :  { %1008 = vmatprep.mubr.bf16.mxu0 %v4562_v1  ;;  %1049 = vmatprep.mubr.bf16.mxu1 %v4562_v1 }
  0x47   :  { %979 = vmatpush1.bf16.msra.mxu0 %v3802_v40  ;;  %1020 = vmatpush1.bf16.msra.mxu1 %v3809_v41 }
  0x48   :  { %980 = vmatprep.subr.bf16.mxu0 %v3816_v42  ;;  %1021 = vmatprep.subr.bf16.mxu1 %v3821_v43 }
  0x4b   :  { %981 = vmatpush1.bf16.msra.mxu0 %v3831_v45  ;;  %1022 = vmatpush1.bf16.msra.mxu1 %v3836_v46 }
  0x4c   :  { %982 = vmatprep.subr.bf16.mxu0 %v3843_v47  ;;  %1023 = vmatprep.subr.bf16.mxu1 %v3850_v48 }
  0x4f   :  { %983 = vmatpush1.bf16.msra.mxu0 %v3855_v49  ;;  %1024 = vmatpush1.bf16.msra.mxu1 %v3860_v50 }
  0x50   :  { %984 = vmatprep.subr.bf16.mxu0 %v3867_v51  ;;  %1025 = vmatprep.subr.bf16.mxu1 %v3874_v52 }
  0x53   :  { %985 = vmatpush1.bf16.msra.mxu0 %v3884_v54  ;;  %1026 = vmatpush1.bf16.msra.mxu1 %v3889_v55 }
  0x54   :  { %986 = vmatprep.subr.bf16.mxu0 %v3894_v56  ;;  %1027 = vmatprep.subr.bf16.mxu1 %v3899_v57 }
  0x57   :  { %987 = vmatpush1.bf16.msra.mxu0 %v3908_v58  ;;  %1028 = vmatpush1.bf16.msra.mxu1 %v3913_v59 }
  0x58   :  { %988 = vmatprep.subr.bf16.mxu0 %v3918_v60  ;;  %1029 = vmatprep.subr.bf16.mxu1 %v3923_v61 }
  0x5b   :  { %989 = vmatpush1.bf16.msra.mxu0 %v3937_v63  ;;  %1030 = vmatpush1.bf16.msra.mxu1 %v3942_v0 }
  0x5c   :  { %990 = vmatprep.subr.bf16.mxu0 %v3947_v2  ;;  %1031 = vmatprep.subr.bf16.mxu1 %v3952_v3 }
  0x5f   :  { %991 = vmatpush1.bf16.msra.mxu0 %v3963_v4  ;;  %1032 = vmatpush1.bf16.msra.mxu1 %v3968_v5 }
  0x60   :  { %1293 = vmatprep.subr.bf16.mxu0 %v3767_v33  ;;  %1334 = vmatprep.subr.bf16.mxu1 %v3772_v34 }
  0xe2   :  { %v4018_v14 = vpop.f32.mrf.mxu0  ;;  %v4020_v15 = vpop.f32.mrf.mxu1 }
  0xe4   :  { %v4024_v18 = vpop.f32.mrf.mxu0  ;;  %v4026_v19 = vpop.f32.mrf.mxu1 }
  0xe6   :  { %v319_v22 = vpop.f32.mrf.mxu0  ;;  %v392_v23 = vpop.f32.mrf.mxu1 }
  0xe7   :  { %v4030_v25 = vadd.f32 %v319_v22, %v80_v20  ;;  %v4033_v26 = vadd.f32 %v392_v23, %v4022_v16 }
  0xe8   :  { %v321_v27 = vpop.f32.mrf.mxu0  ;;  %v394_v28 = vpop.f32.mrf.mxu1 }
  0xe9   :  { %v4035_v29 = vadd.f32 %v321_v27, %v84_v24  ;;  %v4038_v30 = vadd.f32 %v394_v28, %v4028_v21 }
  0xea   :  { %v325_v31 = vpop.f32.mrf.mxu0  ;;  %v398_v32 = vpop.f32.mrf.mxu1 }
  0xeb   :  { %v4040_v35 = vadd.f32 %v325_v31, %v80_v20  ;;  %v4043_v44 = vadd.f32 %v398_v32, %v4022_v16 }
  0xec   :  { %v327_v53 = vpop.f32.mrf.mxu0  ;;  %v400_v62 = vpop.f32.mrf.mxu1 }
  0xed   :  { %4564 = vst [vmem:[#allocation5_spill] sm:$0xff] %v4043_v44  ;;  %v4045_v6 = vadd.f32 %v327_v53, %v84_v24  ;;  %v4048_v7 = vadd.f32 %v400_v62, %v4028_v21 }
  0xee   :  { %v329_v8 = vpop.f32.mrf.mxu0  ;;  %v402_v9 = vpop.f32.mrf.mxu1 }
  0xef   :  { %v4050_v10 = vadd.f32 %v329_v8, %v80_v20  ;;  %v4053_v11 = vadd.f32 %v402_v9, %v4022_v16 }
  0xf0   :  { %v331_v12 = vpop.f32.mrf.mxu0  ;;  %v404_v13 = vpop.f32.mrf.mxu1 }
  0xf1   :  { %4565 = vst [vmem:[#allocation6_spill] sm:$0xff] %v4050_v10  ;;  %4566 = vst [vmem:[#allocation7_spill] sm:$0xff] %v4053_v11  ;;  %v4055_v17 = vadd.f32 %v331_v12, %v84_v24  ;;  %v4058_v22 = vadd.f32 %v404_v13, %v4028_v21 }
  0xf2   :  { %v335_v23 = vpop.f32.mrf.mxu0  ;;  %v408_v27 = vpop.f32.mrf.mxu1 }
  0xf3   :  { %4567 = vst [vmem:[#allocation8_spill] sm:$0xff] %v4055_v17  ;;  %4568 = vst [vmem:[#allocation9_spill] sm:$0xff] %v4058_v22  ;;  %v4060_v28 = vadd.f32 %v335_v23, %v80_v20  ;;  %v4063_v31 = vadd.f32 %v408_v27, %v4022_v16 }
  0xf4   :  { %v337_v32 = vpop.f32.mrf.mxu0  ;;  %v410_v53 = vpop.f32.mrf.mxu1 }
  0xf5   :  { %4569 = vst [vmem:[#allocation10_spill] sm:$0xff] %v4060_v28  ;;  %4570 = vst [vmem:[#allocation11_spill] sm:$0xff] %v4063_v31  ;;  %v4065_v62 = vadd.f32 %v337_v32, %v84_v24  ;;  %v4068_v8 = vadd.f32 %v410_v53, %v4028_v21 }
  0xf6   :  { %v339_v9 = vpop.f32.mrf.mxu0  ;;  %v412_v12 = vpop.f32.mrf.mxu1 }
  0xf7   :  { %4571 = vst [vmem:[#allocation12_spill] sm:$0xff] %v4065_v62  ;;  %4572 = vst [vmem:[#allocation13_spill] sm:$0xff] %v4068_v8  ;;  %v4070_v1 = vadd.f32 %v339_v9, %v80_v20  ;;  %v4073_v13 = vadd.f32 %v412_v12, %v4022_v16 }
  0xf8   :  { %v341_v11 = vpop.f32.mrf.mxu0  ;;  %v414_v23 = vpop.f32.mrf.mxu1 }
  0xf9   :  { %4573 = vst [vmem:[#allocation14_spill] sm:$0xff] %v4070_v1  ;;  %4574 = vst [vmem:[#allocation15_spill] sm:$0xff] %v4073_v13  ;;  %v4075_v28 = vadd.f32 %v341_v11, %v84_v24  ;;  %v4078_v27 = vadd.f32 %v414_v23, %v4028_v21 }
  0xfa   :  { %v345_v31 = vpop.f32.mrf.mxu0  ;;  %v418_v32 = vpop.f32.mrf.mxu1 }
  0xfb   :  { %4575 = vst [vmem:[#allocation16_spill] sm:$0xff] %v4075_v28  ;;  %4576 = vst [vmem:[#allocation17_spill] sm:$0xff] %v4078_v27  ;;  %v4080_v62 = vadd.f32 %v345_v31, %v80_v20  ;;  %v4083_v53 = vadd.f32 %v418_v32, %v4022_v16 }
  0xfc   :  { %v347_v8 = vpop.f32.mrf.mxu0  ;;  %v420_v9 = vpop.f32.mrf.mxu1 }
  0xfd   :  { %4577 = vst [vmem:[#allocation18_spill] sm:$0xff] %v4080_v62  ;;  %4578 = vst [vmem:[#allocation19_spill] sm:$0xff] %v4083_v53  ;;  %v4085_v1 = vadd.f32 %v347_v8, %v84_v24  ;;  %v4088_v12 = vadd.f32 %v420_v9, %v4028_v21  ;;  %v316_v62 = vadd.f32 %v4018_v14, %v80_v20 }
  0xfe   :  { %v349_v13 = vpop.f32.mrf.mxu0  ;;  %v422_v11 = vpop.f32.mrf.mxu1  ;;  %v318_v9 = vadd.f32 %v4024_v18, %v84_v24 }
  0xff   :  { %4579 = vst [vmem:[#allocation20_spill] sm:$0xff] %v4085_v1  ;;  %4580 = vst [vmem:[#allocation21_spill] sm:$0xff] %v4088_v12  ;;  %v4090_v28 = vadd.f32 %v349_v13, %v80_v20  ;;  %v4093_v23 = vadd.f32 %v422_v11, %v4022_v16  ;;  %v391_v20 = vadd.f32 %v4026_v19, %v4028_v21  ;;  %v33_v19 = vld [vmem:[%s4558_s5] sm:$0xff] }
 0x100   :  { %v351_v27 = vpop.f32.mrf.mxu0  ;;  %v424_v31 = vpop.f32.mrf.mxu1 }
 0x101   :  { %4581 = vst [vmem:[#allocation22_spill] sm:$0xff] %v4090_v28  ;;  %4582 = vst [vmem:[#allocation23_spill] sm:$0xff] %v4093_v23  ;;  %v4096_v32 = vadd.f32 %v351_v27, %v84_v24  ;;  %v4099_v53 = vadd.f32 %v424_v31, %v4028_v21  ;;  %v389_v31 = vadd.f32 %v4020_v15, %v4022_v16 }
 0x102   :  { %v694_v8 = vpop.f32.mrf.mxu0  ;;  %v735_v1 = vpop.f32.mrf.mxu1 }
 0x103   :  { %v742_v12 = vadd.f32 %v694_v8, %v316_v62  ;;  %v744_v62 = vadd.f32 %v735_v1, %v389_v31 }
 0x104   :  { %v696_v22 = vpop.f32.mrf.mxu0  ;;  %v737_v13 = vpop.f32.mrf.mxu1 }
 0x105   :  { %v3088_v28 = vmul.f32 -1.442695, %v742_v12  ;;  %v743_v17 = vadd.f32 %v696_v22, %v318_v9  ;;  %v745_v27 = vadd.f32 %v737_v13, %v391_v20 }
 0x106   :  { %v698_v11 = vpop.f32.mrf.mxu0  ;;  %v739_v23 = vpop.f32.mrf.mxu1 }
 0x107   :  { %3492 = vpow2.f32 %v3088_v28  ;;  %v3089_v10 = vmul.f32 -1.442695, %v743_v17  ;;  %v3090_v18 = vmul.f32 -1.442695, %v745_v27 }
 0x108   :  { %v699_v44 = vpop.f32.mrf.mxu0  ;;  %v740_v14 = vpop.f32.mrf.mxu1 }
 0x109   :  { %3494 = vpow2.f32 %v3089_v10  ;;  %v4583_v14 = vmov 0  }
 0x10a   :  { %3496 = vpow2.f32 %v3090_v18 }
 0x114   :  { %v3493_v24 = vpop.eup %3492 }
 0x115   :  { %v749_v8 = vadd.f32 1.0, %v3493_v24 }
 0x116   :  { %v3495_v12 = vpop.eup %3494 }
 0x117   :  { %3498 = vrcp.f32 %v749_v8  ;;  %v755_v22 = vadd.f32 1.0, %v3495_v12  ;;  %v3497_v44 = vpop.eup %3496 }
 0x118   :  { %3500 = vtanh.f32 %v744_v62  ;;  %v762_v28 = vadd.f32 1.0, %v3497_v44 }
 0x119   :  { %3502 = vrcp.f32 %v755_v22 }
 0x11a   :  { %3504 = vrcp.f32 %v762_v28 }
 0x124   :  { %v3499_v17 = vpop.eup %3498 }
 0x125   :  { %v3501_v21 = vpop.eup %3500 }
 0x126   :  { %v3503_v10 = vpop.eup %3502  ;;  %v767_v15 = vmul.f32 %v3501_v21, %v3499_v17 }
 0x127   :  { %v766_v16 = vmul.f32 %v3503_v10, %v33_v19  ;;  %v3505_v1 = vpop.eup %3504 }
 0x129   :  { %v4109_v23 = vadd.f32 %v767_v15, %v766_v16 }
 0x12b   :  { %3506 = vtanh.f32 %v4109_v23 }
 0x138   :  { %v3507_v9 = vpop.eup %3506 }
 0x139   :  { %v770_v13 = vmul.f32 %v3507_v9, %v3505_v1 }
 0x13b   :  { %v773_v11 = vpack.c.bf16 %v770_v13, %v770_v13 }
 0x13d   :  { %774 = vst [vmem:[%s4559_s6] sm:$0xf] %v773_v11  ;;  %1009 = vmatmul.mubr.bf16.vlgmr.msra.gmra.mxu0 %v773_v11  ;;  %1050 = vmatmul.mubr.bf16.vlgmr.msra.gmra.mxu1 %v773_v11 }
 0x13e   :  { %1294 = vmatpush1.bf16.msra.mxu0 %v3780_v36  ;;  %1335 = vmatpush1.bf16.msra.mxu1 %v3785_v37 }
 0x13f   :  { %1295 = vmatprep.subr.bf16.mxu0 %v3792_v38  ;;  %1336 = vmatprep.subr.bf16.mxu1 %v3797_v39 }
 0x140   :  { %1325 = vmatprep.mubr.bf16.mxu0 %v4583_v14  ;;  %1366 = vmatprep.mubr.bf16.mxu1 %v4583_v14 }
 0x142   :  { %1296 = vmatpush1.bf16.msra.mxu0 %v3802_v40  ;;  %1337 = vmatpush1.bf16.msra.mxu1 %v3809_v41 }
 0x143   :  { %1297 = vmatprep.subr.bf16.mxu0 %v3816_v42  ;;  %1338 = vmatprep.subr.bf16.mxu1 %v3821_v43 }
 0x146   :  { %1298 = vmatpush1.bf16.msra.mxu0 %v3831_v45  ;;  %1339 = vmatpush1.bf16.msra.mxu1 %v3836_v46 }
 0x147   :  { %1299 = vmatprep.subr.bf16.mxu0 %v3843_v47  ;;  %1340 = vmatprep.subr.bf16.mxu1 %v3850_v48 }
 0x14a   :  { %1300 = vmatpush1.bf16.msra.mxu0 %v3855_v49  ;;  %1341 = vmatpush1.bf16.msra.mxu1 %v3860_v50 }
 0x14b   :  { %1301 = vmatprep.subr.bf16.mxu0 %v3867_v51  ;;  %1342 = vmatprep.subr.bf16.mxu1 %v3874_v52 }
 0x14e   :  { %1302 = vmatpush1.bf16.msra.mxu0 %v3884_v54  ;;  %1343 = vmatpush1.bf16.msra.mxu1 %v3889_v55 }
 0x14f   :  { %1303 = vmatprep.subr.bf16.mxu0 %v3894_v56  ;;  %1344 = vmatprep.subr.bf16.mxu1 %v3899_v57 }
 0x152   :  { %1304 = vmatpush1.bf16.msra.mxu0 %v3908_v58  ;;  %1345 = vmatpush1.bf16.msra.mxu1 %v3913_v59 }
 0x153   :  { %1305 = vmatprep.subr.bf16.mxu0 %v3918_v60  ;;  %1346 = vmatprep.subr.bf16.mxu1 %v3923_v61 }
 0x156   :  { %1306 = vmatpush1.bf16.msra.mxu0 %v3937_v63  ;;  %1347 = vmatpush1.bf16.msra.mxu1 %v3942_v0 }
 0x157   :  { %1307 = vmatprep.subr.bf16.mxu0 %v3947_v2  ;;  %1348 = vmatprep.subr.bf16.mxu1 %v3952_v3 }
 0x15a   :  { %1308 = vmatpush1.bf16.msra.mxu0 %v3963_v4  ;;  %1349 = vmatpush1.bf16.msra.mxu1 %v3968_v5 }
 0x15b   :  { %1610 = vmatprep.subr.bf16.mxu0 %v3767_v33  ;;  %1651 = vmatprep.subr.bf16.mxu1 %v3772_v34 }
 0x1fd   :  { %v1010_v20 = vpop.f32.mrf.mxu0  ;;  %v1051_v27 = vpop.f32.mrf.mxu1 }
 0x1fe   :  { %v1058_v31 = vadd.f32 %v1010_v20, %v4030_v25  ;;  %v1060_v34 = vadd.f32 %v1051_v27, %v4033_v26 }
 0x1ff   :  { %v1012_v18 = vpop.f32.mrf.mxu0  ;;  %v1053_v24 = vpop.f32.mrf.mxu1 }
 0x200   :  { %v3123_v62 = vmul.f32 -1.442695, %v1058_v31  ;;  %v1059_v8 = vadd.f32 %v1012_v18, %v4035_v29  ;;  %v1061_v33 = vadd.f32 %v1053_v24, %v4038_v30  ;;  %v4218_v24 = vld [vmem:[%s4555_s2 + $0xe0] ss:$16 sps:$4 sm:$0xff]  }
 0x201   :  { %v1014_v12 = vpop.f32.mrf.mxu0  ;;  %v1055_v22 = vpop.f32.mrf.mxu1 }
 0x202   :  { %3508 = vpow2.f32 %v3123_v62  ;;  %v3124_v44 = vmul.f32 -1.442695, %v1059_v8  ;;  %v3125_v21 = vmul.f32 -1.442695, %v1061_v33  ;;  %v4223_v62 = vld [vmem:[%s4555_s2 + $0xe8] ss:$16 sps:$4 sm:$0xff]  }
 0x203   :  { %v1015_v17 = vpop.f32.mrf.mxu0  ;;  %v1056_v19 = vpop.f32.mrf.mxu1  ;;  %v4232_v8 = vld [vmem:[%s4555_s2 + $0xc4] ss:$16 sps:$4 sm:$0xff]   ;;  %v4237_v12 = vld [vmem:[%s4555_s2 + $0xcc] ss:$16 sps:$4 sm:$0xff]   ;;  %v4242_v22 = vld [vmem:[%s4555_s2 + $0xc0] ss:$16 sps:$4 sm:$0xff]  }
 0x204   :  { %3510 = vpow2.f32 %v3124_v44  ;;  %v4247_v44 = vld [vmem:[%s4555_s2 + $0xc8] ss:$16 sps:$4 sm:$0xff]   ;;  %v4256_v17 = vld [vmem:[%s4555_s2 + $0xa4] ss:$16 sps:$4 sm:$0xff]   ;;  %v4261_v19 = vld [vmem:[%s4555_s2 + $0xac] ss:$16 sps:$4 sm:$0xff]  }
 0x205   :  { %3512 = vtanh.f32 %v1060_v34  ;;  %v4266_v33 = vld [vmem:[%s4555_s2 + $0xa0] ss:$16 sps:$4 sm:$0xff]   ;;  %v4271_v34 = vld [vmem:[%s4555_s2 + $0xa8] ss:$16 sps:$4 sm:$0xff]  }
 0x206   :  { %3514 = vpow2.f32 %v3125_v21  ;;  %v4280_v21 = vld [vmem:[%s4555_s2 + $0x84] ss:$16 sps:$4 sm:$0xff]  }
 0x20f   :  { %v3509_v10 = vpop.eup %3508 }
 0x210   :  { %v1065_v28 = vadd.f32 1.0, %v3509_v10  ;;  %v4285_v10 = vld [vmem:[%s4555_s2 + $0x8c] ss:$16 sps:$4 sm:$0xff]  }
 0x211   :  { %v3511_v25 = vpop.eup %3510 }
 0x212   :  { %3516 = vrcp.f32 %v1065_v28  ;;  %v1071_v15 = vadd.f32 1.0, %v3511_v25  ;;  %v3513_v29 = vpop.eup %3512  ;;  %v4290_v28 = vld [vmem:[%s4555_s2 + $0x80] ss:$16 sps:$4 sm:$0xff]   ;;  %v4295_v25 = vld [vmem:[%s4555_s2 + $0x88] ss:$16 sps:$4 sm:$0xff]  }
 0x213   :  { %v3515_v16 = vpop.eup %3514 }
 0x214   :  { %3518 = vrcp.f32 %v1071_v15  ;;  %v1078_v11 = vadd.f32 1.0, %v3515_v16  ;;  %v4302_v15 = vld [vmem:[%s4555_s2 + $0x64] ss:$16 sps:$4 sm:$0xff]   ;;  %v4314_v16 = vld [vmem:[%s4555_s2 + $0x60] ss:$16 sps:$4 sm:$0xff]  }
 0x216   :  { %3520 = vrcp.f32 %v1078_v11  ;;  %v4338_v11 = vld [vmem:[%s4555_s2 + $0x40] ss:$16 sps:$4 sm:$0xff]  }
 0x21f   :  { %v3517_v1 = vpop.eup %3516 }
 0x220   :  { %v1083_v9 = vmul.f32 %v3517_v1, %v3513_v29  ;;  %v4307_v29 = vld [vmem:[%s4555_s2 + $0x6c] ss:$16 sps:$4 sm:$0xff]   ;;  %v4319_v1 = vld [vmem:[%s4555_s2 + $0x68] ss:$16 sps:$4 sm:$0xff]  }
 0x221   :  { %v3519_v13 = vpop.eup %3518 }
 0x222   :  { %v1082_v20 = vmul.f32 %v3519_v13, %v4109_v23  ;;  %v4213_v23 = vld [vmem:[%s4555_s2 + $0xec] ss:$16 sps:$4 sm:$0xff]  }
 0x223   :  { %v3521_v26 = vpop.eup %3520  ;;  %v4331_v13 = vld [vmem:[%s4555_s2 + $0x4c] ss:$16 sps:$4 sm:$0xff]  }
 0x224   :  { %v4154_v30 = vadd.f32 %v1083_v9, %v1082_v20  ;;  %v4326_v9 = vld [vmem:[%s4555_s2 + $0x44] ss:$16 sps:$4 sm:$0xff]   ;;  %v4343_v20 = vld [vmem:[%s4555_s2 + $0x48] ss:$16 sps:$4 sm:$0xff]  }
 0x226   :  { %3522 = vtanh.f32 %v4154_v30 }
 0x233   :  { %v3523_v27 = vpop.eup %3522 }
 0x234   :  { %v1086_v31 = vmul.f32 %v3523_v27, %v3521_v26  ;;  %v4355_v26 = vld [vmem:[%s4555_s2 + $0x2c] ss:$16 sps:$4 sm:$0xff]   ;;  %v4362_v27 = vld [vmem:[%s4555_s2 + $0x20] ss:$16 sps:$4 sm:$0xff]  }
 0x236   :  { %v1089_v18 = vpack.c.bf16 %v1086_v31, %v1086_v31  ;;  %v4367_v31 = vld [vmem:[%s4555_s2 + $0x28] ss:$16 sps:$4 sm:$0xff]  }
 0x238   :  { %3126 = vst [vmem:[%s4559_s6 + $0x4] sm:$0xf] %v1089_v18  ;;  %1326 = vmatmul.mubr.bf16.vlgmr.msra.gmra.mxu0 %v1089_v18  ;;  %1367 = vmatmul.mubr.bf16.vlgmr.msra.gmra.mxu1 %v1089_v18  ;;  %v4374_v18 = vld [vmem:[%s4555_s2 + $0x4] ss:$16 sps:$4 sm:$0xff]  }
 0x239   :  { %1611 = vmatpush1.bf16.msra.mxu0 %v3780_v36  ;;  %1652 = vmatpush1.bf16.msra.mxu1 %v3785_v37 }
 0x23a   :  { %1612 = vmatprep.subr.bf16.mxu0 %v3792_v38  ;;  %1653 = vmatprep.subr.bf16.mxu1 %v3797_v39 }
 0x23b   :  { %1642 = vmatprep.mubr.bf16.mxu0 %v4583_v14  ;;  %1683 = vmatprep.mubr.bf16.mxu1 %v4583_v14 }
 0x23d   :  { %1613 = vmatpush1.bf16.msra.mxu0 %v3802_v40  ;;  %1654 = vmatpush1.bf16.msra.mxu1 %v3809_v41 }
 0x23e   :  { %1614 = vmatprep.subr.bf16.mxu0 %v3816_v42  ;;  %1655 = vmatprep.subr.bf16.mxu1 %v3821_v43 }
 0x241   :  { %1615 = vmatpush1.bf16.msra.mxu0 %v3831_v45  ;;  %1656 = vmatpush1.bf16.msra.mxu1 %v3836_v46 }
 0x242   :  { %1616 = vmatprep.subr.bf16.mxu0 %v3843_v47  ;;  %1657 = vmatprep.subr.bf16.mxu1 %v3850_v48 }
 0x245   :  { %1617 = vmatpush1.bf16.msra.mxu0 %v3855_v49  ;;  %1658 = vmatpush1.bf16.msra.mxu1 %v3860_v50  ;;  %v4584_v50 = vld [vmem:[#allocation5_spill] sm:$0xff] }
 0x246   :  { %1618 = vmatprep.subr.bf16.mxu0 %v3867_v51  ;;  %1659 = vmatprep.subr.bf16.mxu1 %v3874_v52 }
 0x249   :  { %1619 = vmatpush1.bf16.msra.mxu0 %v3884_v54  ;;  %1660 = vmatpush1.bf16.msra.mxu1 %v3889_v55 }
 0x24a   :  { %1620 = vmatprep.subr.bf16.mxu0 %v3894_v56  ;;  %1661 = vmatprep.subr.bf16.mxu1 %v3899_v57 }
 0x24d   :  { %1621 = vmatpush1.bf16.msra.mxu0 %v3908_v58  ;;  %1662 = vmatpush1.bf16.msra.mxu1 %v3913_v59 }
 0x24e   :  { %1622 = vmatprep.subr.bf16.mxu0 %v3918_v60  ;;  %1663 = vmatprep.subr.bf16.mxu1 %v3923_v61 }
 0x251   :  { %1623 = vmatpush1.bf16.msra.mxu0 %v3937_v63  ;;  %1664 = vmatpush1.bf16.msra.mxu1 %v3942_v0 }
 0x252   :  { %1624 = vmatprep.subr.bf16.mxu0 %v3947_v2  ;;  %1665 = vmatprep.subr.bf16.mxu1 %v3952_v3 }
 0x255   :  { %1625 = vmatpush1.bf16.msra.mxu0 %v3963_v4  ;;  %1666 = vmatpush1.bf16.msra.mxu1 %v3968_v5 }
 0x256   :  { %1968 = vmatprep.subr.bf16.mxu1 %v4213_v23 }
 0x2f8   :  { %v1327_v36 = vpop.f32.mrf.mxu0  ;;  %v1368_v37 = vpop.f32.mrf.mxu1 }
 0x2f9   :  { %v1375_v38 = vadd.f32 %v1327_v36, %v4040_v35  ;;  %v1377_v51 = vadd.f32 %v1368_v37, %v4584_v50  ;;  %v4379_v36 = vld [vmem:[%s4555_s2 + $0xc] ss:$16 sps:$4 sm:$0xff]   ;;  %v4386_v37 = vld [vmem:[%s4555_s2] ss:$16 sps:$4 sm:$0xff]  }
 0x2fa   :  { %v1329_v39 = vpop.f32.mrf.mxu0  ;;  %v1370_v40 = vpop.f32.mrf.mxu1 }
 0x2fb   :  { %v3159_v41 = vmul.f32 -1.442695, %v1375_v38  ;;  %v1376_v42 = vadd.f32 %v1329_v39, %v4045_v6  ;;  %v1378_v49 = vadd.f32 %v1370_v40, %v4048_v7  ;;  %v4208_v7 = vld [vmem:[%s4555_s2 + $0xe4] ss:$16 sps:$4 sm:$0xff]   ;;  %v4391_v38 = vld [vmem:[%s4555_s2 + $0x8] ss:$16 sps:$4 sm:$0xff]  }
 0x2fc   :  { %v1331_v43 = vpop.f32.mrf.mxu0  ;;  %v1372_v45 = vpop.f32.mrf.mxu1  ;;  %1927 = vmatprep.subr.bf16.mxu0 %v4208_v7 }
 0x2fd   :  { %3524 = vpow2.f32 %v3159_v41  ;;  %v3160_v46 = vmul.f32 -1.442695, %v1376_v42  ;;  %v3161_v52 = vmul.f32 -1.442695, %v1378_v49  ;;  %v4585_v41 = vld [vmem:[#allocation6_spill] sm:$0xff] }
 0x2fe   :  { %v1332_v47 = vpop.f32.mrf.mxu0  ;;  %v1373_v48 = vpop.f32.mrf.mxu1 }
 0x2ff   :  { %3526 = vpow2.f32 %v3160_v46  ;;  %v4586_v47 = vld [vmem:[#allocation8_spill] sm:$0xff] }
 0x300   :  { %3528 = vtanh.f32 %v1377_v51 }
 0x301   :  { %3530 = vpow2.f32 %v3161_v52 }
 0x30a   :  { %v3525_v54 = vpop.eup %3524 }
 0x30b   :  { %v1382_v55 = vadd.f32 1.0, %v3525_v54 }
 0x30c   :  { %v3527_v56 = vpop.eup %3526 }
 0x30d   :  { %3532 = vrcp.f32 %v1382_v55  ;;  %v1388_v57 = vadd.f32 1.0, %v3527_v56  ;;  %v3529_v58 = vpop.eup %3528  ;;  %v4587_v55 = vld [vmem:[#allocation9_spill] sm:$0xff] }
 0x30e   :  { %v3531_v59 = vpop.eup %3530 }
 0x30f   :  { %3534 = vrcp.f32 %v1388_v57  ;;  %v1395_v0 = vadd.f32 1.0, %v3531_v59  ;;  %v4588_v57 = vld [vmem:[#allocation7_spill] sm:$0xff] }
 0x311   :  { %3536 = vrcp.f32 %v1395_v0 }
 0x31a   :  { %v3533_v60 = vpop.eup %3532 }
 0x31b   :  { %v1400_v61 = vmul.f32 %v3533_v60, %v3529_v58 }
 0x31c   :  { %v3535_v63 = vpop.eup %3534 }
 0x31d   :  { %v1399_v2 = vmul.f32 %v3535_v63, %v4154_v30  ;;  %v4350_v30 = vld [vmem:[%s4555_s2 + $0x24] ss:$16 sps:$4 sm:$0xff]  }
 0x31e   :  { %v3537_v4 = vpop.eup %3536 }
 0x31f   :  { %v4197_v3 = vadd.f32 %v1400_v61, %v1399_v2 }
 0x321   :  { %3538 = vtanh.f32 %v4197_v3 }
 0x32e   :  { %v3539_v5 = vpop.eup %3538 }
 0x32f   :  { %v1403_v35 = vmul.f32 %v3539_v5, %v3537_v4 }
 0x331   :  { %v1406_v6 = vpack.c.bf16 %v1403_v35, %v1403_v35 }
 0x333   :  { %3162 = vst [vmem:[%s4559_s6 + $0x8] sm:$0xf] %v1406_v6  ;;  %1643 = vmatmul.mubr.bf16.vlgmr.msra.gmra.mxu0 %v1406_v6  ;;  %1684 = vmatmul.mubr.bf16.vlgmr.msra.gmra.mxu1 %v1406_v6 }
 0x334   :  { %1959 = vmatprep.mubr.bf16.mxu0 %v4583_v14  ;;  %2000 = vmatprep.mubr.bf16.mxu1 %v4583_v14 }
 0x335   :  { %1928 = vmatpush1.bf16.msra.mxu0 %v4218_v24  ;;  %1969 = vmatpush1.bf16.msra.mxu1 %v4223_v62 }
 0x336   :  { %1929 = vmatprep.subr.bf16.mxu0 %v4232_v8  ;;  %1970 = vmatprep.subr.bf16.mxu1 %v4237_v12 }
 0x339   :  { %1930 = vmatpush1.bf16.msra.mxu0 %v4242_v22  ;;  %1971 = vmatpush1.bf16.msra.mxu1 %v4247_v44 }
 0x33a   :  { %1931 = vmatprep.subr.bf16.mxu0 %v4256_v17  ;;  %1972 = vmatprep.subr.bf16.mxu1 %v4261_v19 }
 0x33d   :  { %1932 = vmatpush1.bf16.msra.mxu0 %v4266_v33  ;;  %1973 = vmatpush1.bf16.msra.mxu1 %v4271_v34 }
 0x33e   :  { %1933 = vmatprep.subr.bf16.mxu0 %v4280_v21  ;;  %1974 = vmatprep.subr.bf16.mxu1 %v4285_v10 }
 0x341   :  { %1934 = vmatpush1.bf16.msra.mxu0 %v4290_v28  ;;  %1975 = vmatpush1.bf16.msra.mxu1 %v4295_v25 }
 0x342   :  { %1935 = vmatprep.subr.bf16.mxu0 %v4302_v15  ;;  %1976 = vmatprep.subr.bf16.mxu1 %v4307_v29 }
 0x345   :  { %1936 = vmatpush1.bf16.msra.mxu0 %v4314_v16  ;;  %1977 = vmatpush1.bf16.msra.mxu1 %v4319_v1 }
 0x346   :  { %1937 = vmatprep.subr.bf16.mxu0 %v4326_v9  ;;  %1978 = vmatprep.subr.bf16.mxu1 %v4331_v13 }
 0x349   :  { %1938 = vmatpush1.bf16.msra.mxu0 %v4338_v11  ;;  %1979 = vmatpush1.bf16.msra.mxu1 %v4343_v20 }
 0x34a   :  { %1939 = vmatprep.subr.bf16.mxu0 %v4350_v30  ;;  %1980 = vmatprep.subr.bf16.mxu1 %v4355_v26 }
 0x34d   :  { %1940 = vmatpush1.bf16.msra.mxu0 %v4362_v27  ;;  %1981 = vmatpush1.bf16.msra.mxu1 %v4367_v31 }
 0x34e   :  { %1941 = vmatprep.subr.bf16.mxu0 %v4374_v18  ;;  %1982 = vmatprep.subr.bf16.mxu1 %v4379_v36 }
 0x351   :  { %1942 = vmatpush1.bf16.msra.mxu0 %v4386_v37  ;;  %1983 = vmatpush1.bf16.msra.mxu1 %v4391_v38 }
 0x352   :  { %2244 = vmatprep.subr.bf16.mxu0 %v4208_v7  ;;  %2285 = vmatprep.subr.bf16.mxu1 %v4213_v23 }
 0x3f3   :  { %v1644_v39 = vpop.f32.mrf.mxu0  ;;  %v1685_v40 = vpop.f32.mrf.mxu1 }
 0x3f4   :  { %v1692_v42 = vadd.f32 %v1644_v39, %v4585_v41  ;;  %v1694_v58 = vadd.f32 %v1685_v40, %v4588_v57 }
 0x3f5   :  { %v1646_v43 = vpop.f32.mrf.mxu0  ;;  %v1687_v45 = vpop.f32.mrf.mxu1 }
 0x3f6   :  { %v3195_v46 = vmul.f32 -1.442695, %v1692_v42  ;;  %v1693_v48 = vadd.f32 %v1646_v43, %v4586_v47  ;;  %v1695_v56 = vadd.f32 %v1687_v45, %v4587_v55 }
 0x3f7   :  { %v1648_v49 = vpop.f32.mrf.mxu0  ;;  %v1689_v50 = vpop.f32.mrf.mxu1 }
 0x3f8   :  { %3540 = vpow2.f32 %v3195_v46  ;;  %v3196_v51 = vmul.f32 -1.442695, %v1693_v48  ;;  %v3197_v59 = vmul.f32 -1.442695, %v1695_v56  ;;  %v4589_v48 = vld [vmem:[#allocation10_spill] sm:$0xff] }
 0x3f9   :  { %v1649_v52 = vpop.f32.mrf.mxu0  ;;  %v1690_v54 = vpop.f32.mrf.mxu1 }
 0x3fa   :  { %3542 = vpow2.f32 %v3196_v51  ;;  %v4590_v54 = vld [vmem:[#allocation12_spill] sm:$0xff] }
 0x3fb   :  { %3544 = vtanh.f32 %v1694_v58 }
 0x3fc   :  { %3546 = vpow2.f32 %v3197_v59 }
 0x405   :  { %v3541_v60 = vpop.eup %3540 }
 0x406   :  { %v1699_v61 = vadd.f32 1.0, %v3541_v60 }
 0x407   :  { %v3543_v63 = vpop.eup %3542 }
 0x408   :  { %3548 = vrcp.f32 %v1699_v61  ;;  %v1705_v0 = vadd.f32 1.0, %v3543_v63  ;;  %v3545_v2 = vpop.eup %3544  ;;  %v4591_v61 = vld [vmem:[#allocation13_spill] sm:$0xff] }
 0x409   :  { %v3547_v4 = vpop.eup %3546 }
 0x40a   :  { %3550 = vrcp.f32 %v1705_v0  ;;  %v1712_v39 = vadd.f32 1.0, %v3547_v4  ;;  %v4592_v0 = vld [vmem:[#allocation11_spill] sm:$0xff] }
 0x40c   :  { %3552 = vrcp.f32 %v1712_v39 }
 0x415   :  { %v3549_v5 = vpop.eup %3548 }
 0x416   :  { %v1717_v35 = vmul.f32 %v3549_v5, %v3545_v2 }
 0x417   :  { %v3551_v6 = vpop.eup %3550 }
 0x418   :  { %v1716_v41 = vmul.f32 %v3551_v6, %v4197_v3 }
 0x419   :  { %v3553_v40 = vpop.eup %3552 }
 0x41a   :  { %v4404_v42 = vadd.f32 %v1717_v35, %v1716_v41 }
 0x41c   :  { %3554 = vtanh.f32 %v4404_v42 }
 0x429   :  { %v3555_v43 = vpop.eup %3554 }
 0x42a   :  { %v1720_v45 = vmul.f32 %v3555_v43, %v3553_v40 }
 0x42c   :  { %v1723_v46 = vpack.c.bf16 %v1720_v45, %v1720_v45 }
 0x42e   :  { %3198 = vst [vmem:[%s4559_s6 + $0xc] sm:$0xf] %v1723_v46  ;;  %1960 = vmatmul.mubr.bf16.vlgmr.msra.gmra.mxu0 %v1723_v46  ;;  %2001 = vmatmul.mubr.bf16.vlgmr.msra.gmra.mxu1 %v1723_v46 }
 0x42f   :  { %2245 = vmatpush1.bf16.msra.mxu0 %v4218_v24  ;;  %2286 = vmatpush1.bf16.msra.mxu1 %v4223_v62 }
 0x430   :  { %2246 = vmatprep.subr.bf16.mxu0 %v4232_v8  ;;  %2287 = vmatprep.subr.bf16.mxu1 %v4237_v12 }
 0x431   :  { %2276 = vmatprep.mubr.bf16.mxu0 %v4583_v14  ;;  %2317 = vmatprep.mubr.bf16.mxu1 %v4583_v14 }
 0x433   :  { %2247 = vmatpush1.bf16.msra.mxu0 %v4242_v22  ;;  %2288 = vmatpush1.bf16.msra.mxu1 %v4247_v44 }
 0x434   :  { %2248 = vmatprep.subr.bf16.mxu0 %v4256_v17  ;;  %2289 = vmatprep.subr.bf16.mxu1 %v4261_v19 }
 0x437   :  { %2249 = vmatpush1.bf16.msra.mxu0 %v4266_v33  ;;  %2290 = vmatpush1.bf16.msra.mxu1 %v4271_v34 }
 0x438   :  { %2250 = vmatprep.subr.bf16.mxu0 %v4280_v21  ;;  %2291 = vmatprep.subr.bf16.mxu1 %v4285_v10 }
 0x43b   :  { %2251 = vmatpush1.bf16.msra.mxu0 %v4290_v28  ;;  %2292 = vmatpush1.bf16.msra.mxu1 %v4295_v25 }
 0x43c   :  { %2252 = vmatprep.subr.bf16.mxu0 %v4302_v15  ;;  %2293 = vmatprep.subr.bf16.mxu1 %v4307_v29 }
 0x43f   :  { %2253 = vmatpush1.bf16.msra.mxu0 %v4314_v16  ;;  %2294 = vmatpush1.bf16.msra.mxu1 %v4319_v1 }
 0x440   :  { %2254 = vmatprep.subr.bf16.mxu0 %v4326_v9  ;;  %2295 = vmatprep.subr.bf16.mxu1 %v4331_v13 }
 0x443   :  { %2255 = vmatpush1.bf16.msra.mxu0 %v4338_v11  ;;  %2296 = vmatpush1.bf16.msra.mxu1 %v4343_v20 }
 0x444   :  { %2256 = vmatprep.subr.bf16.mxu0 %v4350_v30  ;;  %2297 = vmatprep.subr.bf16.mxu1 %v4355_v26 }
 0x447   :  { %2257 = vmatpush1.bf16.msra.mxu0 %v4362_v27  ;;  %2298 = vmatpush1.bf16.msra.mxu1 %v4367_v31 }
 0x448   :  { %2258 = vmatprep.subr.bf16.mxu0 %v4374_v18  ;;  %2299 = vmatprep.subr.bf16.mxu1 %v4379_v36 }
 0x44b   :  { %2259 = vmatpush1.bf16.msra.mxu0 %v4386_v37  ;;  %2300 = vmatpush1.bf16.msra.mxu1 %v4391_v38 }
 0x44c   :  { %2561 = vmatprep.subr.bf16.mxu0 %v4208_v7  ;;  %2602 = vmatprep.subr.bf16.mxu1 %v4213_v23 }
 0x4ee   :  { %v1961_v3 = vpop.f32.mrf.mxu0  ;;  %v2002_v47 = vpop.f32.mrf.mxu1 }
 0x4ef   :  { %v2009_v49 = vadd.f32 %v1961_v3, %v4589_v48  ;;  %v2011_v2 = vadd.f32 %v2002_v47, %v4592_v0 }
 0x4f0   :  { %v1963_v50 = vpop.f32.mrf.mxu0  ;;  %v2004_v51 = vpop.f32.mrf.mxu1 }
 0x4f1   :  { %v3231_v52 = vmul.f32 -1.442695, %v2009_v49  ;;  %v2010_v55 = vadd.f32 %v1963_v50, %v4590_v54  ;;  %v2012_v63 = vadd.f32 %v2004_v51, %v4591_v61 }
 0x4f2   :  { %v1965_v56 = vpop.f32.mrf.mxu0  ;;  %v2006_v57 = vpop.f32.mrf.mxu1 }
 0x4f3   :  { %3556 = vpow2.f32 %v3231_v52  ;;  %v3232_v58 = vmul.f32 -1.442695, %v2010_v55  ;;  %v3233_v4 = vmul.f32 -1.442695, %v2012_v63  ;;  %v4593_v55 = vld [vmem:[#allocation14_spill] sm:$0xff] }
 0x4f4   :  { %v1966_v59 = vpop.f32.mrf.mxu0  ;;  %v2007_v60 = vpop.f32.mrf.mxu1 }
 0x4f5   :  { %3558 = vpow2.f32 %v3232_v58  ;;  %v4594_v60 = vld [vmem:[#allocation16_spill] sm:$0xff] }
 0x4f6   :  { %3560 = vtanh.f32 %v2011_v2 }
 0x4f7   :  { %3562 = vpow2.f32 %v3233_v4 }
 0x500   :  { %v3557_v5 = vpop.eup %3556 }
 0x501   :  { %v2016_v35 = vadd.f32 1.0, %v3557_v5 }
 0x502   :  { %v3559_v6 = vpop.eup %3558 }
 0x503   :  { %3564 = vrcp.f32 %v2016_v35  ;;  %v2022_v39 = vadd.f32 1.0, %v3559_v6  ;;  %v3561_v41 = vpop.eup %3560  ;;  %v4595_v35 = vld [vmem:[#allocation17_spill] sm:$0xff]  ;;  %v4596_v6 = vld [vmem:[#allocation15_spill] sm:$0xff] }
 0x504   :  { %v3563_v40 = vpop.eup %3562 }
 0x505   :  { %3566 = vrcp.f32 %v2022_v39  ;;  %v2029_v3 = vadd.f32 1.0, %v3563_v40 }
 0x507   :  { %3568 = vrcp.f32 %v2029_v3 }
 0x510   :  { %v3565_v43 = vpop.eup %3564 }
 0x511   :  { %v2034_v45 = vmul.f32 %v3565_v43, %v3561_v41 }
 0x512   :  { %v3567_v46 = vpop.eup %3566 }
 0x513   :  { %v2033_v48 = vmul.f32 %v3567_v46, %v4404_v42 }
 0x514   :  { %v3569_v47 = vpop.eup %3568 }
 0x515   :  { %v4449_v49 = vadd.f32 %v2034_v45, %v2033_v48 }
 0x517   :  { %3570 = vtanh.f32 %v4449_v49 }
 0x524   :  { %v3571_v50 = vpop.eup %3570 }
 0x525   :  { %v2037_v51 = vmul.f32 %v3571_v50, %v3569_v47 }
 0x527   :  { %v2040_v52 = vpack.c.bf16 %v2037_v51, %v2037_v51 }
 0x529   :  { %3234 = vst [vmem:[%s4559_s6 + $0x10] sm:$0xf] %v2040_v52  ;;  %2277 = vmatmul.mubr.bf16.vlgmr.msra.gmra.mxu0 %v2040_v52  ;;  %2318 = vmatmul.mubr.bf16.vlgmr.msra.gmra.mxu1 %v2040_v52 }
 0x52a   :  { %2562 = vmatpush1.bf16.msra.mxu0 %v4218_v24  ;;  %2603 = vmatpush1.bf16.msra.mxu1 %v4223_v62 }
 0x52b   :  { %2563 = vmatprep.subr.bf16.mxu0 %v4232_v8  ;;  %2604 = vmatprep.subr.bf16.mxu1 %v4237_v12 }
 0x52c   :  { %2593 = vmatprep.mubr.bf16.mxu0 %v4583_v14  ;;  %2634 = vmatprep.mubr.bf16.mxu1 %v4583_v14 }
 0x52e   :  { %2564 = vmatpush1.bf16.msra.mxu0 %v4242_v22  ;;  %2605 = vmatpush1.bf16.msra.mxu1 %v4247_v44 }
 0x52f   :  { %2565 = vmatprep.subr.bf16.mxu0 %v4256_v17  ;;  %2606 = vmatprep.subr.bf16.mxu1 %v4261_v19 }
 0x532   :  { %2566 = vmatpush1.bf16.msra.mxu0 %v4266_v33  ;;  %2607 = vmatpush1.bf16.msra.mxu1 %v4271_v34 }
 0x533   :  { %2567 = vmatprep.subr.bf16.mxu0 %v4280_v21  ;;  %2608 = vmatprep.subr.bf16.mxu1 %v4285_v10 }
 0x536   :  { %2568 = vmatpush1.bf16.msra.mxu0 %v4290_v28  ;;  %2609 = vmatpush1.bf16.msra.mxu1 %v4295_v25 }
 0x537   :  { %2569 = vmatprep.subr.bf16.mxu0 %v4302_v15  ;;  %2610 = vmatprep.subr.bf16.mxu1 %v4307_v29 }
 0x53a   :  { %2570 = vmatpush1.bf16.msra.mxu0 %v4314_v16  ;;  %2611 = vmatpush1.bf16.msra.mxu1 %v4319_v1 }
 0x53b   :  { %2571 = vmatprep.subr.bf16.mxu0 %v4326_v9  ;;  %2612 = vmatprep.subr.bf16.mxu1 %v4331_v13 }
 0x53e   :  { %2572 = vmatpush1.bf16.msra.mxu0 %v4338_v11  ;;  %2613 = vmatpush1.bf16.msra.mxu1 %v4343_v20 }
 0x53f   :  { %2573 = vmatprep.subr.bf16.mxu0 %v4350_v30  ;;  %2614 = vmatprep.subr.bf16.mxu1 %v4355_v26 }
 0x542   :  { %2574 = vmatpush1.bf16.msra.mxu0 %v4362_v27  ;;  %2615 = vmatpush1.bf16.msra.mxu1 %v4367_v31 }
 0x543   :  { %2575 = vmatprep.subr.bf16.mxu0 %v4374_v18  ;;  %2616 = vmatprep.subr.bf16.mxu1 %v4379_v36 }
 0x546   :  { %2576 = vmatpush1.bf16.msra.mxu0 %v4386_v37  ;;  %2617 = vmatpush1.bf16.msra.mxu1 %v4391_v38 }
 0x547   :  { %2878 = vmatprep.subr.bf16.mxu0 %v4208_v7  ;;  %2919 = vmatprep.subr.bf16.mxu1 %v4213_v23 }
 0x5e9   :  { %v2278_v42 = vpop.f32.mrf.mxu0  ;;  %v2319_v54 = vpop.f32.mrf.mxu1 }
 0x5ea   :  { %v2326_v56 = vadd.f32 %v2278_v42, %v4593_v55  ;;  %v2328_v23 = vadd.f32 %v2319_v54, %v4596_v6 }
 0x5eb   :  { %v2280_v57 = vpop.f32.mrf.mxu0  ;;  %v2321_v58 = vpop.f32.mrf.mxu1 }
 0x5ec   :  { %v3267_v59 = vmul.f32 -1.442695, %v2326_v56  ;;  %v2327_v61 = vadd.f32 %v2280_v57, %v4594_v60  ;;  %v2329_v7 = vadd.f32 %v2321_v58, %v4595_v35 }
 0x5ed   :  { %v2282_v63 = vpop.f32.mrf.mxu0  ;;  %v2323_v0 = vpop.f32.mrf.mxu1 }
 0x5ee   :  { %3572 = vpow2.f32 %v3267_v59  ;;  %v3268_v2 = vmul.f32 -1.442695, %v2327_v61  ;;  %v3269_v39 = vmul.f32 -1.442695, %v2329_v7  ;;  %v4601_v0 = vld [vmem:[#allocation22_spill] sm:$0xff] }
 0x5ef   :  { %v2283_v4 = vpop.f32.mrf.mxu0  ;;  %v2324_v5 = vpop.f32.mrf.mxu1 }
 0x5f0   :  { %3574 = vpow2.f32 %v3268_v2 }
 0x5f1   :  { %3576 = vtanh.f32 %v2328_v23 }
 0x5f2   :  { %3578 = vpow2.f32 %v3269_v39 }
 0x5fb   :  { %v3573_v41 = vpop.eup %3572 }
 0x5fc   :  { %v2333_v40 = vadd.f32 1.0, %v3573_v41 }
 0x5fd   :  { %v3575_v43 = vpop.eup %3574 }
 0x5fe   :  { %3580 = vrcp.f32 %v2333_v40  ;;  %v2339_v45 = vadd.f32 1.0, %v3575_v43  ;;  %v3577_v46 = vpop.eup %3576 }
 0x5ff   :  { %v3579_v3 = vpop.eup %3578 }
 0x600   :  { %3582 = vrcp.f32 %v2339_v45  ;;  %v2346_v51 = vadd.f32 1.0, %v3579_v3  ;;  %v4602_v45 = vld [vmem:[#allocation23_spill] sm:$0xff] }
 0x602   :  { %3584 = vrcp.f32 %v2346_v51 }
 0x60b   :  { %v3581_v48 = vpop.eup %3580 }
 0x60c   :  { %v2351_v47 = vmul.f32 %v3581_v48, %v3577_v46 }
 0x60d   :  { %v3583_v50 = vpop.eup %3582 }
 0x60e   :  { %v2350_v52 = vmul.f32 %v3583_v50, %v4449_v49 }
 0x60f   :  { %v3585_v54 = vpop.eup %3584 }
 0x610   :  { %v4494_v42 = vadd.f32 %v2351_v47, %v2350_v52 }
 0x612   :  { %3586 = vtanh.f32 %v4494_v42 }
 0x61f   :  { %v3587_v55 = vpop.eup %3586 }
 0x620   :  { %v2354_v56 = vmul.f32 %v3587_v55, %v3585_v54 }
 0x622   :  { %v2357_v57 = vpack.c.bf16 %v2354_v56, %v2354_v56 }
 0x624   :  { %3270 = vst [vmem:[%s4559_s6 + $0x14] sm:$0xf] %v2357_v57  ;;  %2594 = vmatmul.mubr.bf16.vlgmr.msra.gmra.mxu0 %v2357_v57  ;;  %2635 = vmatmul.mubr.bf16.vlgmr.msra.gmra.mxu1 %v2357_v57 }
 0x625   :  { %2879 = vmatpush1.bf16.msra.mxu0 %v4218_v24  ;;  %2920 = vmatpush1.bf16.msra.mxu1 %v4223_v62  ;;  %v4597_v62 = vld [vmem:[#allocation18_spill] sm:$0xff] }
 0x626   :  { %2880 = vmatprep.subr.bf16.mxu0 %v4232_v8  ;;  %2921 = vmatprep.subr.bf16.mxu1 %v4237_v12 }
 0x627   :  { %2910 = vmatprep.mubr.bf16.mxu0 %v4583_v14  ;;  %2951 = vmatprep.mubr.bf16.mxu1 %v4583_v14 }
 0x629   :  { %2881 = vmatpush1.bf16.msra.mxu0 %v4242_v22  ;;  %2922 = vmatpush1.bf16.msra.mxu1 %v4247_v44 }
 0x62a   :  { %2882 = vmatprep.subr.bf16.mxu0 %v4256_v17  ;;  %2923 = vmatprep.subr.bf16.mxu1 %v4261_v19  ;;  %v4598_v17 = vld [vmem:[#allocation20_spill] sm:$0xff] }
 0x62d   :  { %2883 = vmatpush1.bf16.msra.mxu0 %v4266_v33  ;;  %2924 = vmatpush1.bf16.msra.mxu1 %v4271_v34 }
 0x62e   :  { %2884 = vmatprep.subr.bf16.mxu0 %v4280_v21  ;;  %2925 = vmatprep.subr.bf16.mxu1 %v4285_v10 }
 0x631   :  { %2885 = vmatpush1.bf16.msra.mxu0 %v4290_v28  ;;  %2926 = vmatpush1.bf16.msra.mxu1 %v4295_v25  ;;  %v4599_v25 = vld [vmem:[#allocation21_spill] sm:$0xff] }
 0x632   :  { %2886 = vmatprep.subr.bf16.mxu0 %v4302_v15  ;;  %2927 = vmatprep.subr.bf16.mxu1 %v4307_v29  ;;  %v4600_v29 = vld [vmem:[#allocation19_spill] sm:$0xff] }
 0x635   :  { %2887 = vmatpush1.bf16.msra.mxu0 %v4314_v16  ;;  %2928 = vmatpush1.bf16.msra.mxu1 %v4319_v1 }
 0x636   :  { %2888 = vmatprep.subr.bf16.mxu0 %v4326_v9  ;;  %2929 = vmatprep.subr.bf16.mxu1 %v4331_v13 }
 0x639   :  { %2889 = vmatpush1.bf16.msra.mxu0 %v4338_v11  ;;  %2930 = vmatpush1.bf16.msra.mxu1 %v4343_v20 }
 0x63a   :  { %2890 = vmatprep.subr.bf16.mxu0 %v4350_v30  ;;  %2931 = vmatprep.subr.bf16.mxu1 %v4355_v26 }
 0x63d   :  { %2891 = vmatpush1.bf16.msra.mxu0 %v4362_v27  ;;  %2932 = vmatpush1.bf16.msra.mxu1 %v4367_v31 }
 0x63e   :  { %2892 = vmatprep.subr.bf16.mxu0 %v4374_v18  ;;  %2933 = vmatprep.subr.bf16.mxu1 %v4379_v36 }
 0x641   :  { %2893 = vmatpush1.bf16.msra.mxu0 %v4386_v37  ;;  %2934 = vmatpush1.bf16.msra.mxu1 %v4391_v38 }
 0x6e4   :  { %v2595_v14 = vpop.f32.mrf.mxu0  ;;  %v2636_v24 = vpop.f32.mrf.mxu1 }
 0x6e5   :  { %v2643_v8 = vadd.f32 %v2595_v14, %v4597_v62  ;;  %v2645_v16 = vadd.f32 %v2636_v24, %v4600_v29 }
 0x6e6   :  { %v2597_v12 = vpop.f32.mrf.mxu0  ;;  %v2638_v22 = vpop.f32.mrf.mxu1 }
 0x6e7   :  { %v3303_v44 = vmul.f32 -1.442695, %v2643_v8  ;;  %v2644_v19 = vadd.f32 %v2597_v12, %v4598_v17  ;;  %v2646_v15 = vadd.f32 %v2638_v22, %v4599_v25 }
 0x6e8   :  { %v2599_v33 = vpop.f32.mrf.mxu0  ;;  %v2640_v34 = vpop.f32.mrf.mxu1 }
 0x6e9   :  { %3588 = vpow2.f32 %v3303_v44  ;;  %v3304_v21 = vmul.f32 -1.442695, %v2644_v19  ;;  %v3305_v1 = vmul.f32 -1.442695, %v2646_v15 }
 0x6ea   :  { %v2600_v10 = vpop.f32.mrf.mxu0  ;;  %v2641_v28 = vpop.f32.mrf.mxu1 }
 0x6eb   :  { %3590 = vpow2.f32 %v3304_v21 }
 0x6ec   :  { %3592 = vtanh.f32 %v2645_v16 }
 0x6ed   :  { %3594 = vpow2.f32 %v3305_v1 }
 0x6f6   :  { %v3589_v9 = vpop.eup %3588 }
 0x6f7   :  { %v2650_v13 = vadd.f32 1.0, %v3589_v9 }
 0x6f8   :  { %v3591_v11 = vpop.eup %3590 }
 0x6f9   :  { %3596 = vrcp.f32 %v2650_v13  ;;  %v2656_v20 = vadd.f32 1.0, %v3591_v11  ;;  %v3593_v30 = vpop.eup %3592 }
 0x6fa   :  { %v3595_v26 = vpop.eup %3594 }
 0x6fb   :  { %3598 = vrcp.f32 %v2656_v20  ;;  %v2663_v36 = vadd.f32 1.0, %v3595_v26 }
 0x6fd   :  { %3600 = vrcp.f32 %v2663_v36 }
 0x706   :  { %v3597_v27 = vpop.eup %3596 }
 0x707   :  { %v2668_v31 = vmul.f32 %v3597_v27, %v3593_v30 }
 0x708   :  { %v3599_v18 = vpop.eup %3598 }
 0x709   :  { %v2667_v37 = vmul.f32 %v3599_v18, %v4494_v42 }
 0x70a   :  { %v3601_v49 = vpop.eup %3600 }
 0x70b   :  { %v2669_v38 = vadd.f32 %v2668_v31, %v2667_v37 }
 0x70d   :  { %3602 = vtanh.f32 %v2669_v38 }
 0x71a   :  { %v3603_v58 = vpop.eup %3602 }
 0x71b   :  { %v2671_v59 = vmul.f32 %v3603_v58, %v3601_v49 }
 0x71d   :  { %v2674_v60 = vpack.c.bf16 %v2671_v59, %v2671_v59 }
 0x71f   :  { %3306 = vst [vmem:[%s4559_s6 + $0x18] sm:$0xf] %v2674_v60  ;;  %2911 = vmatmul.mubr.bf16.vlgmr.msra.gmra.mxu0 %v2674_v60  ;;  %2952 = vmatmul.mubr.bf16.vlgmr.msra.gmra.mxu1 %v2674_v60 }
 0x7df   :  { %v2912_v61 = vpop.f32.mrf.mxu0  ;;  %v2953_v63 = vpop.f32.mrf.mxu1 }
 0x7e0   :  { %v2960_v2 = vadd.f32 %v2912_v61, %v4601_v0  ;;  %v2962_v46 = vadd.f32 %v2953_v63, %v4602_v45 }
 0x7e1   :  { %v2914_v4 = vpop.f32.mrf.mxu0  ;;  %v2955_v5 = vpop.f32.mrf.mxu1 }
 0x7e2   :  { %v3339_v35 = vmul.f32 -1.442695, %v2960_v2  ;;  %v2961_v7 = vadd.f32 %v2914_v4, %v4096_v32  ;;  %v2963_v43 = vadd.f32 %v2955_v5, %v4099_v53 }
 0x7e3   :  { %v2916_v6 = vpop.f32.mrf.mxu0  ;;  %v2957_v23 = vpop.f32.mrf.mxu1 }
 0x7e4   :  { %3604 = vpow2.f32 %v3339_v35  ;;  %v3340_v39 = vmul.f32 -1.442695, %v2961_v7  ;;  %v3341_v3 = vmul.f32 -1.442695, %v2963_v43 }
 0x7e5   :  { %v2917_v41 = vpop.f32.mrf.mxu0  ;;  %v2958_v40 = vpop.f32.mrf.mxu1 }
 0x7e6   :  { %3606 = vpow2.f32 %v3340_v39 }
 0x7e7   :  { %3608 = vtanh.f32 %v2962_v46 }
 0x7e8   :  { %3610 = vpow2.f32 %v3341_v3 }
 0x7f1   :  { %v3605_v48 = vpop.eup %3604 }
 0x7f2   :  { %v2967_v47 = vadd.f32 1.0, %v3605_v48 }
 0x7f3   :  { %v3607_v50 = vpop.eup %3606 }
 0x7f4   :  { %3612 = vrcp.f32 %v2967_v47  ;;  %v2973_v51 = vadd.f32 1.0, %v3607_v50  ;;  %v3609_v32 = vpop.eup %3608 }
 0x7f5   :  { %v3611_v52 = vpop.eup %3610 }
 0x7f6   :  { %3614 = vrcp.f32 %v2973_v51  ;;  %v2980_v56 = vadd.f32 1.0, %v3611_v52 }
 0x7f8   :  { %3616 = vrcp.f32 %v2980_v56 }
 0x801   :  { %v3613_v42 = vpop.eup %3612 }
 0x802   :  { %v2985_v54 = vmul.f32 %v3613_v42, %v3609_v32 }
 0x803   :  { %v3615_v55 = vpop.eup %3614 }
 0x804   :  { %v2984_v57 = vmul.f32 %v3615_v55, %v2669_v38 }
 0x805   :  { %v3617_v53 = vpop.eup %3616 }
 0x806   :  { %v2986_v14 = vadd.f32 %v2985_v54, %v2984_v57 }
 0x808   :  { %3618 = vtanh.f32 %v2986_v14  ;;  %3000 = vst [vmem:[%s4560_s8] sm:$0xff] %v2986_v14 }
 0x815   :  { %v3619_v24 = vpop.eup %3618 }
 0x816   :  { %v2988_v62 = vmul.f32 %v3619_v24, %v3617_v53 }
 0x818   :  { %v2991_v8 = vpack.c.bf16 %v2988_v62, %v2988_v62  ;;  %2998 = vst [vmem:[%s4561_s7] sm:$0xff] %v2988_v62 }
 0x81a   :  { %3342 = vst [vmem:[%s4559_s6 + $0x1c] sm:$0xf] %v2991_v8 }

</bundles_post_ra>
